<compile_context>
chip_gen: v5e
topology: v5e:2x2
jax: 0.10.0
libtpu: 0.0.40
codegen_flags: <defaults>
</compile_context>

<pallas_src>
import itertools

import numpy as np
import jax
import jax.numpy as jnp
from jax.experimental import pallas as pl
from jax.experimental.pallas import tpu as pltpu

KS = 3
K = KS ** 3  # 27 kernel offsets


def residual_block_kernel(nvalid_ref, nbr_ref, x_ref, w1_ref, w2_ref, wd_ref,
                          bias_ref, out_ref, onehot_scr, sw_scr):
    """One packed point tile per grid step, transposed (channels x points) layout.

    nvalid_ref: [T]              i32  (SMEM scalar prefetch) valid point count per tile
    nbr_ref:    [1, K, NP]       i32  kernel map (tile-local neighbor index, -1 = none)
    x_ref:      [1, CinP, NP]    bf16 input features, channels on sublanes
    w1_ref:     [K*Cout, CinP]   bf16 conv1 weights, BN1 scale folded, transposed
    w2_ref:     [K*Cout, Cout]   bf16 conv2 weights, BN2 scale folded, transposed
    wd_ref:     [Cout, CinP]     bf16 downsample 1x1x1 conv, BN_d scale folded, transposed
    bias_ref:   [Cout, 2]        f32  col 0 = bias1, col 1 = bias2 + bias_d
    out_ref:    [1, Cout, NP]    f32
    onehot_scr: [K*NP, NP]       bf16 scratch: stacked gather matrices (built once, reused)
    sw_scr:     [Cout, K*NP]     bf16 scratch: weighted features in fused-contraction layout
    """
    g = pl.program_id(0)
    x = x_ref[0]                                   # [CinP, NP] bf16
    npts = x.shape[1]
    cout = out_ref.shape[1]

    # ---- one-hot gather matrices, built once and reused by both convs.
    # G[k*NP + j, i] = 1  iff  source point j is the k-th neighbor of output point i
    # (-1 / padded entries give all-zero columns).  Static unroll: the compares (VPU)
    # and slab stores (vst) overlap the MXU dots below.
    row_src = jax.lax.broadcasted_iota(jnp.int32, (npts, npts), 0)
    for k in range(K):
        nbr_k = nbr_ref[0, k:k + 1, :]                                   # [1, NP] i32
        onehot_scr[k * npts:(k + 1) * npts, :] = (
            row_src == nbr_k).astype(jnp.bfloat16)

    # ---- conv1: one W-dot, 27 static slab copies into the fused [Cout, K*NP]
    # layout, then ONE long-contraction gather dot (instead of 27 dot+add pairs).
    sw1 = jnp.dot(w1_ref[...], x, preferred_element_type=jnp.float32)   # [K*Cout, NP]
    for k in range(K):
        sw_scr[:, k * npts:(k + 1) * npts] = (
            sw1[k * cout:(k + 1) * cout, :].astype(jnp.bfloat16))
    conv1 = jnp.dot(sw_scr[...], onehot_scr[...],
                    preferred_element_type=jnp.float32)                 # [Cout, NP]

    h = jnp.maximum(conv1 + bias_ref[:, 0:1], 0.0).astype(jnp.bfloat16)  # BN1 bias + ReLU

    # ---- conv2: same gather matrices, new weighted features.
    sw2 = jnp.dot(w2_ref[...], h, preferred_element_type=jnp.float32)   # [K*Cout, NP]
    for k in range(K):
        sw_scr[:, k * npts:(k + 1) * npts] = (
            sw2[k * cout:(k + 1) * cout, :].astype(jnp.bfloat16))
    conv2 = jnp.dot(sw_scr[...], onehot_scr[...],
                    preferred_element_type=jnp.float32)                 # [Cout, NP]

    # ---- downsample branch: 1x1x1 conv (BN_d scale folded).
    d = jnp.dot(wd_ref[...], x, preferred_element_type=jnp.float32)     # [Cout, NP]

    # residual add + fused (bias2 + bias_d) + ReLU; zero padded lanes so downstream
    # consumers see clean zero padding.
    lane = jax.lax.broadcasted_iota(jnp.int32, (cout, npts), 1)
    y = jnp.maximum(conv2 + d + bias_ref[:, 1:2], 0.0)
    out_ref[0] = jnp.where(lane < nvalid_ref[g], y, 0.0)


def residual_block(nvalid, nbr, feats_t, w1_t, w2_t, wd_t, bias):
    num_tiles, cinp, npad = feats_t.shape
    cout = wd_t.shape[0]
    kcout = w1_t.shape[0]

    # advisory cost hint for XLA's scheduler around the custom call
    flops_tile = (2 * kcout * cinp * npad          # W1 @ x
                  + 2 * cout * (K * npad) * npad   # fused gather dot (conv1)
                  + 2 * kcout * cout * npad        # W2 @ h
                  + 2 * cout * (K * npad) * npad   # fused gather dot (conv2)
                  + 2 * cout * cinp * npad)        # downsample 1x1x1
    bytes_tile = K * npad * 4 + cinp * npad * 2 + cout * npad * 4
    bytes_const = ((kcout * cinp + kcout * cout + cout * cinp) * 2
                   + cout * 2 * 4 + num_tiles * 4)

    # Per-step VMEM: onehot 27*128*128*2B = 864 KiB + sw 54 KiB + double-buffered
    # blocks (~55 KiB) -> ~1 MiB; explicit 16 MiB budget leaves headroom and fits
    # the default scoped limit on v5e/v6e/v7x.
    grid_spec = pltpu.PrefetchScalarGridSpec(
        num_scalar_prefetch=1,              # per-tile valid point counts live in SMEM
        grid=(num_tiles,),                  # one packed point tile per step; independent
        in_specs=[
            pl.BlockSpec((1, K, npad), lambda t, nv: (t, 0, 0)),
            pl.BlockSpec((1, cinp, npad), lambda t, nv: (t, 0, 0)),
            pl.BlockSpec((kcout, cinp), lambda t, nv: (0, 0)),
            pl.BlockSpec((kcout, cout), lambda t, nv: (0, 0)),
            pl.BlockSpec((cout, cinp), lambda t, nv: (0, 0)),
            pl.BlockSpec((cout, 2), lambda t, nv: (0, 0)),
        ],
        out_specs=pl.BlockSpec((1, cout, npad), lambda t, nv: (t, 0, 0)),
        scratch_shapes=[
            pltpu.VMEM((K * npad, npad), jnp.bfloat16),   # one-hot gather matrices
            pltpu.VMEM((cout, K * npad), jnp.bfloat16),   # fused-layout weighted features
        ],
    )
    return pl.pallas_call(
        residual_block_kernel,
        out_shape=jax.ShapeDtypeStruct((num_tiles, cout, npad), jnp.float32),
        grid_spec=grid_spec,
        compiler_params=pltpu.CompilerParams(
            dimension_semantics=("parallel",),            # tiles split across TCs on v7x
            vmem_limit_bytes=16 * 1024 * 1024),
        cost_estimate=pl.CostEstimate(
            flops=num_tiles * flops_tile, transcendentals=0,
            bytes_accessed=num_tiles * bytes_tile + bytes_const),
    )(nvalid, nbr, feats_t, w1_t, w2_t, wd_t, bias)


# ---------------------------------------------------------------- host glue ---

def build_kernel_map(coords_b):
    """Submanifold kernel map for one item, LOCAL indices: [K, n_pts] i32, -1 = none."""
    lut = {tuple(c): i for i, c in enumerate(coords_b.tolist())}
    offsets = list(itertools.product((-1, 0, 1), repeat=3))
    n = len(coords_b)
    nbr = -np.ones((K, n), np.int32)
    for k, (dx, dy, dz) in enumerate(offsets):
        for i, (x, y, z) in enumerate(coords_b.tolist()):
            nbr[k, i] = lut.get((x + dx, y + dy, z + dz), -1)
    return nbr


def make_bn(key, c, eps=1e-5):
    kg, kb, km, kv = jax.random.split(key, 4)
    gamma = 1.0 + 0.1 * jax.random.normal(kg, (c,), jnp.float32)
    beta = 0.1 * jax.random.normal(kb, (c,), jnp.float32)
    mean = 0.1 * jax.random.normal(km, (c,), jnp.float32)
    var = 1.0 + 0.1 * jax.random.uniform(kv, (c,), jnp.float32)
    scale = gamma / jnp.sqrt(var + eps)
    bias = beta - mean * scale
    return scale, bias


def sparse_conv_ref(src, nbr2d, w):
    out = jnp.zeros((src.shape[0], w.shape[2]), jnp.float32)
    for k in range(K):
        idx = nbr2d[k]
        g = jnp.where((idx >= 0)[:, None], src[jnp.clip(idx, 0, None)], 0.0)
        out = out + g @ w[k]
    return out


def ref_forward(feats_b, nbr2d, w1, w2, wd, s1, b1, s2, b2, sd, bd):
    h = jnp.maximum(sparse_conv_ref(feats_b, nbr2d, w1) * s1 + b1, 0.0)
    y = sparse_conv_ref(h, nbr2d, w2) * s2 + b2
    d = (feats_b @ wd) * sd + bd
    return jnp.maximum(y + d, 0.0)


if __name__ == "__main__":
    key = jax.random.PRNGKey(0)
    k_coord, k_feat, k_w1, k_w2, k_wd, k_bn = jax.random.split(key, 6)

    inc, outc = 4, 8
    cinp = 8                       # Cin padded to a full sublane tile
    grid_size = 16
    batches, pts_per_batch = 4, 48
    items_per_tile = 2             # pack batch items to fill the 128-lane point tiles
    npad = 128
    num_tiles = batches // items_per_tile
    assert items_per_tile * pts_per_batch <= npad

    # deterministic unique voxel coordinates per batch item
    coords_per_batch = []
    for b in range(batches):
        flat = np.asarray(
            jax.random.permutation(jax.random.fold_in(k_coord, b), grid_size ** 3)
        )[:pts_per_batch]
        xs = flat // (grid_size * grid_size)
        ys = (flat // grid_size) % grid_size
        zs = flat % grid_size
        coords_per_batch.append(np.stack([xs, ys, zs], axis=1).astype(np.int64))

    feats = jax.random.normal(k_feat, (batches, pts_per_batch, inc), jnp.float32)
    feats_np = np.asarray(feats)

    # pack items into 128-lane point tiles; kernel-map indices become tile-local
    local_nbrs = [build_kernel_map(c) for c in coords_per_batch]          # [K, pts] each
    nbr_host = -np.ones((num_tiles, K, npad), np.int32)
    feats_host = np.zeros((num_tiles, cinp, npad), np.float32)
    nvalid_host = np.zeros((num_tiles,), np.int32)
    for b in range(batches):
        t, slot = divmod(b, items_per_tile)
        off = slot * pts_per_batch
        nbr_host[t, :, off:off + pts_per_batch] = np.where(
            local_nbrs[b] >= 0, local_nbrs[b] + off, -1)
        feats_host[t, :inc, off:off + pts_per_batch] = feats_np[b].T
        nvalid_host[t] += pts_per_batch

    nbr = jnp.asarray(nbr_host)                                           # [T, K, NPAD]
    nvalid = jnp.asarray(nvalid_host)                                     # [T]
    feats_t = jnp.asarray(feats_host, jnp.bfloat16)                       # [T, CinP, NPAD]

    # conv weights (torchsparse layout [kernel_volume, in, out], bias=False)
    w1 = 0.2 * jax.random.normal(k_w1, (K, inc, outc), jnp.float32)
    w2 = 0.2 * jax.random.normal(k_w2, (K, outc, outc), jnp.float32)
    wd = 0.2 * jax.random.normal(k_wd, (inc, outc), jnp.float32)

    s1, b1 = make_bn(jax.random.fold_in(k_bn, 1), outc)
    s2, b2 = make_bn(jax.random.fold_in(k_bn, 2), outc)
    sd, bd = make_bn(jax.random.fold_in(k_bn, 3), outc)

    # fold BN scales into the conv weights, pad Cin 4->8, transpose to the
    # channels-first kernel layout, cast to bf16 (gather matmul was already bf16).
    w1f = jnp.pad(w1 * s1[None, None, :], ((0, 0), (0, cinp - inc), (0, 0)))
    w1_t = jnp.transpose(w1f, (0, 2, 1)).reshape(K * outc, cinp).astype(jnp.bfloat16)
    w2_t = jnp.transpose(w2 * s2[None, None, :], (0, 2, 1)).reshape(
        K * outc, outc).astype(jnp.bfloat16)
    wdf = jnp.pad(wd * sd[None, :], ((0, cinp - inc), (0, 0)))
    wd_t = wdf.T.astype(jnp.bfloat16)                                     # [outc, cinp]
    bias = jnp.stack([b1, b2 + bd], axis=1)                               # [outc, 2]

    out = jax.block_until_ready(
        residual_block(nvalid, nbr, feats_t, w1_t, w2_t, wd_t, bias))
    out_np = np.asarray(out)

    ok = bool(np.all(np.isfinite(out_np)))
    for b in range(batches):
        t, slot = divmod(b, items_per_tile)
        off = slot * pts_per_batch
        ref_b = np.asarray(ref_forward(feats[b], jnp.asarray(local_nbrs[b]),
                                       w1, w2, wd, s1, b1, s2, b2, sd, bd))
        got_b = out_np[t, :, off:off + pts_per_batch].T                   # [pts, outc]
        ok &= bool(np.allclose(got_b, ref_b, rtol=5e-2, atol=5e-2))
    for t in range(num_tiles):
        ok &= bool(np.allclose(out_np[t, :, int(nvalid_host[t]):], 0.0))  # clean padding

    if ok:
        print("KERNEL_OK")
    else:
        raise SystemExit("mismatch vs reference")
</pallas_src>

<mosaic_0001>
module attributes {stable_mosaic.version = 11 : i64} {
  func.func @residual_block_kernel(%arg0: i32, %arg1: memref<2xi32, #tpu.memory_space<smem>>, %arg2: memref<1x27x128xi32, #tpu.memory_space<vmem>>, %arg3: memref<1x8x128xbf16, #tpu.memory_space<vmem>>, %arg4: memref<216x8xbf16, #tpu.memory_space<vmem>>, %arg5: memref<216x8xbf16, #tpu.memory_space<vmem>>, %arg6: memref<8x8xbf16, #tpu.memory_space<vmem>>, %arg7: memref<8x2xf32, #tpu.memory_space<vmem>>, %arg8: memref<1x8x128xf32, #tpu.memory_space<vmem>>, %arg9: memref<3456x128xbf16, #tpu.memory_space<vmem>>, %arg10: memref<8x3456xbf16, #tpu.memory_space<vmem>>) attributes {dimension_semantics = [#tpu.dimension_semantics<parallel>], iteration_bounds = array<i64: 2>, scalar_prefetch = 1 : i64, scratch_operands = 2 : i64, tpu.core_type = #tpu.core_type<tc>, window_params = [{transform_indices = @transform_0, window_bounds = array<i64: 1, 27, 128>}, {transform_indices = @transform_1, window_bounds = array<i64: 1, 8, 128>}, {pipeline_mode = #tpu.pipeline_mode<synchronous>, transform_indices = @transform_2, window_bounds = array<i64: 216, 8>}, {pipeline_mode = #tpu.pipeline_mode<synchronous>, transform_indices = @transform_3, window_bounds = array<i64: 216, 8>}, {pipeline_mode = #tpu.pipeline_mode<synchronous>, transform_indices = @transform_4, window_bounds = array<i64: 8, 8>}, {pipeline_mode = #tpu.pipeline_mode<synchronous>, transform_indices = @transform_5, window_bounds = array<i64: 8, 2>}, {transform_indices = @transform_6, window_bounds = array<i64: 1, 8, 128>}]} {
    %c0 = arith.constant 0 : index
    %c0_0 = arith.constant 0 : index
    %c0_1 = arith.constant 0 : index
    %0 = vector.load %arg3[%c0, %c0_0, %c0_1] : memref<1x8x128xbf16, #tpu.memory_space<vmem>>, vector<1x8x128xbf16>
    %1 = vector.shape_cast %0 : vector<1x8x128xbf16> to vector<8x128xbf16>
    %2 = tpu.iota {dimensions = array<i32: 0>} : vector<128x128xi32>
    %c0_2 = arith.constant 0 : index
    %c0_3 = arith.constant 0 : index
    %c0_4 = arith.constant 0 : index
    %3 = vector.load %arg2[%c0_2, %c0_3, %c0_4] : memref<1x27x128xi32, #tpu.memory_space<vmem>>, vector<1x1x128xi32>
    %4 = vector.shape_cast %3 : vector<1x1x128xi32> to vector<1x128xi32>
    %5 = vector.broadcast %4 : vector<1x128xi32> to vector<128x128xi32>
    %6 = arith.cmpi eq, %2, %5 : vector<128x128xi32>
    %7 = arith.extui %6 : vector<128x128xi1> to vector<128x128xi32>
    %8 = arith.sitofp %7 : vector<128x128xi32> to vector<128x128xf32>
    %9 = arith.truncf %8 : vector<128x128xf32> to vector<128x128xbf16>
    %c0_5 = arith.constant 0 : index
    %c0_6 = arith.constant 0 : index
    %10 = vector.load %arg9[%c0_5, %c0_6] : memref<3456x128xbf16, #tpu.memory_space<vmem>>, vector<128x128xbf16>
    tpu.vector_store %arg9[%c0_5, %c0_6], %9 {strides = array<i32>} : memref<3456x128xbf16, #tpu.memory_space<vmem>>, vector<128x128xbf16>,
    %c0_7 = arith.constant 0 : index
    %c1 = arith.constant 1 : index
    %c0_8 = arith.constant 0 : index
    %11 = vector.load %arg2[%c0_7, %c1, %c0_8] : memref<1x27x128xi32, #tpu.memory_space<vmem>>, vector<1x1x128xi32>
    %12 = vector.shape_cast %11 : vector<1x1x128xi32> to vector<1x128xi32>
    %13 = vector.broadcast %12 : vector<1x128xi32> to vector<128x128xi32>
    %14 = arith.cmpi eq, %2, %13 : vector<128x128xi32>
    %15 = arith.extui %14 : vector<128x128xi1> to vector<128x128xi32>
    %16 = arith.sitofp %15 : vector<128x128xi32> to vector<128x128xf32>
    %17 = arith.truncf %16 : vector<128x128xf32> to vector<128x128xbf16>
    %c128 = arith.constant 128 : index
    %c0_9 = arith.constant 0 : index
    %18 = vector.load %arg9[%c128, %c0_9] : memref<3456x128xbf16, #tpu.memory_space<vmem>>, vector<128x128xbf16>
    tpu.vector_store %arg9[%c128, %c0_9], %17 {strides = array<i32>} : memref<3456x128xbf16, #tpu.memory_space<vmem>>, vector<128x128xbf16>,
    %c0_10 = arith.constant 0 : index
    %c2 = arith.constant 2 : index
    %c0_11 = arith.constant 0 : index
    %19 = vector.load %arg2[%c0_10, %c2, %c0_11] : memref<1x27x128xi32, #tpu.memory_space<vmem>>, vector<1x1x128xi32>
    %20 = vector.shape_cast %19 : vector<1x1x128xi32> to vector<1x128xi32>
    %21 = vector.broadcast %20 : vector<1x128xi32> to vector<128x128xi32>
    %22 = arith.cmpi eq, %2, %21 : vector<128x128xi32>
    %23 = arith.extui %22 : vector<128x128xi1> to vector<128x128xi32>
    %24 = arith.sitofp %23 : vector<128x128xi32> to vector<128x128xf32>
    %25 = arith.truncf %24 : vector<128x128xf32> to vector<128x128xbf16>
    %c256 = arith.constant 256 : index
    %c0_12 = arith.constant 0 : index
    %26 = vector.load %arg9[%c256, %c0_12] : memref<3456x128xbf16, #tpu.memory_space<vmem>>, vector<128x128xbf16>
    tpu.vector_store %arg9[%c256, %c0_12], %25 {strides = array<i32>} : memref<3456x128xbf16, #tpu.memory_space<vmem>>, vector<128x128xbf16>,
    %c0_13 = arith.constant 0 : index
    %c3 = arith.constant 3 : index
    %c0_14 = arith.constant 0 : index
    %27 = vector.load %arg2[%c0_13, %c3, %c0_14] : memref<1x27x128xi32, #tpu.memory_space<vmem>>, vector<1x1x128xi32>
    %28 = vector.shape_cast %27 : vector<1x1x128xi32> to vector<1x128xi32>
    %29 = vector.broadcast %28 : vector<1x128xi32> to vector<128x128xi32>
    %30 = arith.cmpi eq, %2, %29 : vector<128x128xi32>
    %31 = arith.extui %30 : vector<128x128xi1> to vector<128x128xi32>
    %32 = arith.sitofp %31 : vector<128x128xi32> to vector<128x128xf32>
    %33 = arith.truncf %32 : vector<128x128xf32> to vector<128x128xbf16>
    %c384 = arith.constant 384 : index
    %c0_15 = arith.constant 0 : index
    %34 = vector.load %arg9[%c384, %c0_15] : memref<3456x128xbf16, #tpu.memory_space<vmem>>, vector<128x128xbf16>
    tpu.vector_store %arg9[%c384, %c0_15], %33 {strides = array<i32>} : memref<3456x128xbf16, #tpu.memory_space<vmem>>, vector<128x128xbf16>,
    %c0_16 = arith.constant 0 : index
    %c4 = arith.constant 4 : index
    %c0_17 = arith.constant 0 : index
    %35 = vector.load %arg2[%c0_16, %c4, %c0_17] : memref<1x27x128xi32, #tpu.memory_space<vmem>>, vector<1x1x128xi32>
    %36 = vector.shape_cast %35 : vector<1x1x128xi32> to vector<1x128xi32>
    %37 = vector.broadcast %36 : vector<1x128xi32> to vector<128x128xi32>
    %38 = arith.cmpi eq, %2, %37 : vector<128x128xi32>
    %39 = arith.extui %38 : vector<128x128xi1> to vector<128x128xi32>
    %40 = arith.sitofp %39 : vector<128x128xi32> to vector<128x128xf32>
    %41 = arith.truncf %40 : vector<128x128xf32> to vector<128x128xbf16>
    %c512 = arith.constant 512 : index
    %c0_18 = arith.constant 0 : index
    %42 = vector.load %arg9[%c512, %c0_18] : memref<3456x128xbf16, #tpu.memory_space<vmem>>, vector<128x128xbf16>
    tpu.vector_store %arg9[%c512, %c0_18], %41 {strides = array<i32>} : memref<3456x128xbf16, #tpu.memory_space<vmem>>, vector<128x128xbf16>,
    %c0_19 = arith.constant 0 : index
    %c5 = arith.constant 5 : index
    %c0_20 = arith.constant 0 : index
    %43 = vector.load %arg2[%c0_19, %c5, %c0_20] : memref<1x27x128xi32, #tpu.memory_space<vmem>>, vector<1x1x128xi32>
    %44 = vector.shape_cast %43 : vector<1x1x128xi32> to vector<1x128xi32>
    %45 = vector.broadcast %44 : vector<1x128xi32> to vector<128x128xi32>
    %46 = arith.cmpi eq, %2, %45 : vector<128x128xi32>
    %47 = arith.extui %46 : vector<128x128xi1> to vector<128x128xi32>
    %48 = arith.sitofp %47 : vector<128x128xi32> to vector<128x128xf32>
    %49 = arith.truncf %48 : vector<128x128xf32> to vector<128x128xbf16>
    %c640 = arith.constant 640 : index
    %c0_21 = arith.constant 0 : index
    %50 = vector.load %arg9[%c640, %c0_21] : memref<3456x128xbf16, #tpu.memory_space<vmem>>, vector<128x128xbf16>
    tpu.vector_store %arg9[%c640, %c0_21], %49 {strides = array<i32>} : memref<3456x128xbf16, #tpu.memory_space<vmem>>, vector<128x128xbf16>,
    %c0_22 = arith.constant 0 : index
    %c6 = arith.constant 6 : index
    %c0_23 = arith.constant 0 : index
    %51 = vector.load %arg2[%c0_22, %c6, %c0_23] : memref<1x27x128xi32, #tpu.memory_space<vmem>>, vector<1x1x128xi32>
    %52 = vector.shape_cast %51 : vector<1x1x128xi32> to vector<1x128xi32>
    %53 = vector.broadcast %52 : vector<1x128xi32> to vector<128x128xi32>
    %54 = arith.cmpi eq, %2, %53 : vector<128x128xi32>
    %55 = arith.extui %54 : vector<128x128xi1> to vector<128x128xi32>
    %56 = arith.sitofp %55 : vector<128x128xi32> to vector<128x128xf32>
    %57 = arith.truncf %56 : vector<128x128xf32> to vector<128x128xbf16>
    %c768 = arith.constant 768 : index
    %c0_24 = arith.constant 0 : index
    %58 = vector.load %arg9[%c768, %c0_24] : memref<3456x128xbf16, #tpu.memory_space<vmem>>, vector<128x128xbf16>
    tpu.vector_store %arg9[%c768, %c0_24], %57 {strides = array<i32>} : memref<3456x128xbf16, #tpu.memory_space<vmem>>, vector<128x128xbf16>,
    %c0_25 = arith.constant 0 : index
    %c7 = arith.constant 7 : index
    %c0_26 = arith.constant 0 : index
    %59 = vector.load %arg2[%c0_25, %c7, %c0_26] : memref<1x27x128xi32, #tpu.memory_space<vmem>>, vector<1x1x128xi32>
    %60 = vector.shape_cast %59 : vector<1x1x128xi32> to vector<1x128xi32>
    %61 = vector.broadcast %60 : vector<1x128xi32> to vector<128x128xi32>
    %62 = arith.cmpi eq, %2, %61 : vector<128x128xi32>
    %63 = arith.extui %62 : vector<128x128xi1> to vector<128x128xi32>
    %64 = arith.sitofp %63 : vector<128x128xi32> to vector<128x128xf32>
    %65 = arith.truncf %64 : vector<128x128xf32> to vector<128x128xbf16>
    %c896 = arith.constant 896 : index
    %c0_27 = arith.constant 0 : index
    %66 = vector.load %arg9[%c896, %c0_27] : memref<3456x128xbf16, #tpu.memory_space<vmem>>, vector<128x128xbf16>
    tpu.vector_store %arg9[%c896, %c0_27], %65 {strides = array<i32>} : memref<3456x128xbf16, #tpu.memory_space<vmem>>, vector<128x128xbf16>,
    %c0_28 = arith.constant 0 : index
    %c8 = arith.constant 8 : index
    %c0_29 = arith.constant 0 : index
    %67 = vector.load %arg2[%c0_28, %c8, %c0_29] : memref<1x27x128xi32, #tpu.memory_space<vmem>>, vector<1x1x128xi32>
    %68 = vector.shape_cast %67 : vector<1x1x128xi32> to vector<1x128xi32>
    %69 = vector.broadcast %68 : vector<1x128xi32> to vector<128x128xi32>
    %70 = arith.cmpi eq, %2, %69 : vector<128x128xi32>
    %71 = arith.extui %70 : vector<128x128xi1> to vector<128x128xi32>
    %72 = arith.sitofp %71 : vector<128x128xi32> to vector<128x128xf32>
    %73 = arith.truncf %72 : vector<128x128xf32> to vector<128x128xbf16>
    %c1024 = arith.constant 1024 : index
    %c0_30 = arith.constant 0 : index
    %74 = vector.load %arg9[%c1024, %c0_30] : memref<3456x128xbf16, #tpu.memory_space<vmem>>, vector<128x128xbf16>
    tpu.vector_store %arg9[%c1024, %c0_30], %73 {strides = array<i32>} : memref<3456x128xbf16, #tpu.memory_space<vmem>>, vector<128x128xbf16>,
    %c0_31 = arith.constant 0 : index
    %c9 = arith.constant 9 : index
    %c0_32 = arith.constant 0 : index
    %75 = vector.load %arg2[%c0_31, %c9, %c0_32] : memref<1x27x128xi32, #tpu.memory_space<vmem>>, vector<1x1x128xi32>
    %76 = vector.shape_cast %75 : vector<1x1x128xi32> to vector<1x128xi32>
    %77 = vector.broadcast %76 : vector<1x128xi32> to vector<128x128xi32>
    %78 = arith.cmpi eq, %2, %77 : vector<128x128xi32>
    %79 = arith.extui %78 : vector<128x128xi1> to vector<128x128xi32>
    %80 = arith.sitofp %79 : vector<128x128xi32> to vector<128x128xf32>
    %81 = arith.truncf %80 : vector<128x128xf32> to vector<128x128xbf16>
    %c1152 = arith.constant 1152 : index
    %c0_33 = arith.constant 0 : index
    %82 = vector.load %arg9[%c1152, %c0_33] : memref<3456x128xbf16, #tpu.memory_space<vmem>>, vector<128x128xbf16>
    tpu.vector_store %arg9[%c1152, %c0_33], %81 {strides = array<i32>} : memref<3456x128xbf16, #tpu.memory_space<vmem>>, vector<128x128xbf16>,
    %c0_34 = arith.constant 0 : index
    %c10 = arith.constant 10 : index
    %c0_35 = arith.constant 0 : index
    %83 = vector.load %arg2[%c0_34, %c10, %c0_35] : memref<1x27x128xi32, #tpu.memory_space<vmem>>, vector<1x1x128xi32>
    %84 = vector.shape_cast %83 : vector<1x1x128xi32> to vector<1x128xi32>
    %85 = vector.broadcast %84 : vector<1x128xi32> to vector<128x128xi32>
    %86 = arith.cmpi eq, %2, %85 : vector<128x128xi32>
    %87 = arith.extui %86 : vector<128x128xi1> to vector<128x128xi32>
    %88 = arith.sitofp %87 : vector<128x128xi32> to vector<128x128xf32>
    %89 = arith.truncf %88 : vector<128x128xf32> to vector<128x128xbf16>
    %c1280 = arith.constant 1280 : index
    %c0_36 = arith.constant 0 : index
    %90 = vector.load %arg9[%c1280, %c0_36] : memref<3456x128xbf16, #tpu.memory_space<vmem>>, vector<128x128xbf16>
    tpu.vector_store %arg9[%c1280, %c0_36], %89 {strides = array<i32>} : memref<3456x128xbf16, #tpu.memory_space<vmem>>, vector<128x128xbf16>,
    %c0_37 = arith.constant 0 : index
    %c11 = arith.constant 11 : index
    %c0_38 = arith.constant 0 : index
    %91 = vector.load %arg2[%c0_37, %c11, %c0_38] : memref<1x27x128xi32, #tpu.memory_space<vmem>>, vector<1x1x128xi32>
    %92 = vector.shape_cast %91 : vector<1x1x128xi32> to vector<1x128xi32>
    %93 = vector.broadcast %92 : vector<1x128xi32> to vector<128x128xi32>
    %94 = arith.cmpi eq, %2, %93 : vector<128x128xi32>
    %95 = arith.extui %94 : vector<128x128xi1> to vector<128x128xi32>
    %96 = arith.sitofp %95 : vector<128x128xi32> to vector<128x128xf32>
    %97 = arith.truncf %96 : vector<128x128xf32> to vector<128x128xbf16>
    %c1408 = arith.constant 1408 : index
    %c0_39 = arith.constant 0 : index
    %98 = vector.load %arg9[%c1408, %c0_39] : memref<3456x128xbf16, #tpu.memory_space<vmem>>, vector<128x128xbf16>
    tpu.vector_store %arg9[%c1408, %c0_39], %97 {strides = array<i32>} : memref<3456x128xbf16, #tpu.memory_space<vmem>>, vector<128x128xbf16>,
    %c0_40 = arith.constant 0 : index
    %c12 = arith.constant 12 : index
    %c0_41 = arith.constant 0 : index
    %99 = vector.load %arg2[%c0_40, %c12, %c0_41] : memref<1x27x128xi32, #tpu.memory_space<vmem>>, vector<1x1x128xi32>
    %100 = vector.shape_cast %99 : vector<1x1x128xi32> to vector<1x128xi32>
    %101 = vector.broadcast %100 : vector<1x128xi32> to vector<128x128xi32>
    %102 = arith.cmpi eq, %2, %101 : vector<128x128xi32>
    %103 = arith.extui %102 : vector<128x128xi1> to vector<128x128xi32>
    %104 = arith.sitofp %103 : vector<128x128xi32> to vector<128x128xf32>
    %105 = arith.truncf %104 : vector<128x128xf32> to vector<128x128xbf16>
    %c1536 = arith.constant 1536 : index
    %c0_42 = arith.constant 0 : index
    %106 = vector.load %arg9[%c1536, %c0_42] : memref<3456x128xbf16, #tpu.memory_space<vmem>>, vector<128x128xbf16>
    tpu.vector_store %arg9[%c1536, %c0_42], %105 {strides = array<i32>} : memref<3456x128xbf16, #tpu.memory_space<vmem>>, vector<128x128xbf16>,
    %c0_43 = arith.constant 0 : index
    %c13 = arith.constant 13 : index
    %c0_44 = arith.constant 0 : index
    %107 = vector.load %arg2[%c0_43, %c13, %c0_44] : memref<1x27x128xi32, #tpu.memory_space<vmem>>, vector<1x1x128xi32>
    %108 = vector.shape_cast %107 : vector<1x1x128xi32> to vector<1x128xi32>
    %109 = vector.broadcast %108 : vector<1x128xi32> to vector<128x128xi32>
    %110 = arith.cmpi eq, %2, %109 : vector<128x128xi32>
    %111 = arith.extui %110 : vector<128x128xi1> to vector<128x128xi32>
    %112 = arith.sitofp %111 : vector<128x128xi32> to vector<128x128xf32>
    %113 = arith.truncf %112 : vector<128x128xf32> to vector<128x128xbf16>
    %c1664 = arith.constant 1664 : index
    %c0_45 = arith.constant 0 : index
    %114 = vector.load %arg9[%c1664, %c0_45] : memref<3456x128xbf16, #tpu.memory_space<vmem>>, vector<128x128xbf16>
    tpu.vector_store %arg9[%c1664, %c0_45], %113 {strides = array<i32>} : memref<3456x128xbf16, #tpu.memory_space<vmem>>, vector<128x128xbf16>,
    %c0_46 = arith.constant 0 : index
    %c14 = arith.constant 14 : index
    %c0_47 = arith.constant 0 : index
    %115 = vector.load %arg2[%c0_46, %c14, %c0_47] : memref<1x27x128xi32, #tpu.memory_space<vmem>>, vector<1x1x128xi32>
    %116 = vector.shape_cast %115 : vector<1x1x128xi32> to vector<1x128xi32>
    %117 = vector.broadcast %116 : vector<1x128xi32> to vector<128x128xi32>
    %118 = arith.cmpi eq, %2, %117 : vector<128x128xi32>
    %119 = arith.extui %118 : vector<128x128xi1> to vector<128x128xi32>
    %120 = arith.sitofp %119 : vector<128x128xi32> to vector<128x128xf32>
    %121 = arith.truncf %120 : vector<128x128xf32> to vector<128x128xbf16>
    %c1792 = arith.constant 1792 : index
    %c0_48 = arith.constant 0 : index
    %122 = vector.load %arg9[%c1792, %c0_48] : memref<3456x128xbf16, #tpu.memory_space<vmem>>, vector<128x128xbf16>
    tpu.vector_store %arg9[%c1792, %c0_48], %121 {strides = array<i32>} : memref<3456x128xbf16, #tpu.memory_space<vmem>>, vector<128x128xbf16>,
    %c0_49 = arith.constant 0 : index
    %c15 = arith.constant 15 : index
    %c0_50 = arith.constant 0 : index
    %123 = vector.load %arg2[%c0_49, %c15, %c0_50] : memref<1x27x128xi32, #tpu.memory_space<vmem>>, vector<1x1x128xi32>
    %124 = vector.shape_cast %123 : vector<1x1x128xi32> to vector<1x128xi32>
    %125 = vector.broadcast %124 : vector<1x128xi32> to vector<128x128xi32>
    %126 = arith.cmpi eq, %2, %125 : vector<128x128xi32>
    %127 = arith.extui %126 : vector<128x128xi1> to vector<128x128xi32>
    %128 = arith.sitofp %127 : vector<128x128xi32> to vector<128x128xf32>
    %129 = arith.truncf %128 : vector<128x128xf32> to vector<128x128xbf16>
    %c1920 = arith.constant 1920 : index
    %c0_51 = arith.constant 0 : index
    %130 = vector.load %arg9[%c1920, %c0_51] : memref<3456x128xbf16, #tpu.memory_space<vmem>>, vector<128x128xbf16>
    tpu.vector_store %arg9[%c1920, %c0_51], %129 {strides = array<i32>} : memref<3456x128xbf16, #tpu.memory_space<vmem>>, vector<128x128xbf16>,
    %c0_52 = arith.constant 0 : index
    %c16 = arith.constant 16 : index
    %c0_53 = arith.constant 0 : index
    %131 = vector.load %arg2[%c0_52, %c16, %c0_53] : memref<1x27x128xi32, #tpu.memory_space<vmem>>, vector<1x1x128xi32>
    %132 = vector.shape_cast %131 : vector<1x1x128xi32> to vector<1x128xi32>
    %133 = vector.broadcast %132 : vector<1x128xi32> to vector<128x128xi32>
    %134 = arith.cmpi eq, %2, %133 : vector<128x128xi32>
    %135 = arith.extui %134 : vector<128x128xi1> to vector<128x128xi32>
    %136 = arith.sitofp %135 : vector<128x128xi32> to vector<128x128xf32>
    %137 = arith.truncf %136 : vector<128x128xf32> to vector<128x128xbf16>
    %c2048 = arith.constant 2048 : index
    %c0_54 = arith.constant 0 : index
    %138 = vector.load %arg9[%c2048, %c0_54] : memref<3456x128xbf16, #tpu.memory_space<vmem>>, vector<128x128xbf16>
    tpu.vector_store %arg9[%c2048, %c0_54], %137 {strides = array<i32>} : memref<3456x128xbf16, #tpu.memory_space<vmem>>, vector<128x128xbf16>,
    %c0_55 = arith.constant 0 : index
    %c17 = arith.constant 17 : index
    %c0_56 = arith.constant 0 : index
    %139 = vector.load %arg2[%c0_55, %c17, %c0_56] : memref<1x27x128xi32, #tpu.memory_space<vmem>>, vector<1x1x128xi32>
    %140 = vector.shape_cast %139 : vector<1x1x128xi32> to vector<1x128xi32>
    %141 = vector.broadcast %140 : vector<1x128xi32> to vector<128x128xi32>
    %142 = arith.cmpi eq, %2, %141 : vector<128x128xi32>
    %143 = arith.extui %142 : vector<128x128xi1> to vector<128x128xi32>
    %144 = arith.sitofp %143 : vector<128x128xi32> to vector<128x128xf32>
    %145 = arith.truncf %144 : vector<128x128xf32> to vector<128x128xbf16>
    %c2176 = arith.constant 2176 : index
    %c0_57 = arith.constant 0 : index
    %146 = vector.load %arg9[%c2176, %c0_57] : memref<3456x128xbf16, #tpu.memory_space<vmem>>, vector<128x128xbf16>
    tpu.vector_store %arg9[%c2176, %c0_57], %145 {strides = array<i32>} : memref<3456x128xbf16, #tpu.memory_space<vmem>>, vector<128x128xbf16>,
    %c0_58 = arith.constant 0 : index
    %c18 = arith.constant 18 : index
    %c0_59 = arith.constant 0 : index
    %147 = vector.load %arg2[%c0_58, %c18, %c0_59] : memref<1x27x128xi32, #tpu.memory_space<vmem>>, vector<1x1x128xi32>
    %148 = vector.shape_cast %147 : vector<1x1x128xi32> to vector<1x128xi32>
    %149 = vector.broadcast %148 : vector<1x128xi32> to vector<128x128xi32>
    %150 = arith.cmpi eq, %2, %149 : vector<128x128xi32>
    %151 = arith.extui %150 : vector<128x128xi1> to vector<128x128xi32>
    %152 = arith.sitofp %151 : vector<128x128xi32> to vector<128x128xf32>
    %153 = arith.truncf %152 : vector<128x128xf32> to vector<128x128xbf16>
    %c2304 = arith.constant 2304 : index
    %c0_60 = arith.constant 0 : index
    %154 = vector.load %arg9[%c2304, %c0_60] : memref<3456x128xbf16, #tpu.memory_space<vmem>>, vector<128x128xbf16>
    tpu.vector_store %arg9[%c2304, %c0_60], %153 {strides = array<i32>} : memref<3456x128xbf16, #tpu.memory_space<vmem>>, vector<128x128xbf16>,
    %c0_61 = arith.constant 0 : index
    %c19 = arith.constant 19 : index
    %c0_62 = arith.constant 0 : index
    %155 = vector.load %arg2[%c0_61, %c19, %c0_62] : memref<1x27x128xi32, #tpu.memory_space<vmem>>, vector<1x1x128xi32>
    %156 = vector.shape_cast %155 : vector<1x1x128xi32> to vector<1x128xi32>
    %157 = vector.broadcast %156 : vector<1x128xi32> to vector<128x128xi32>
    %158 = arith.cmpi eq, %2, %157 : vector<128x128xi32>
    %159 = arith.extui %158 : vector<128x128xi1> to vector<128x128xi32>
    %160 = arith.sitofp %159 : vector<128x128xi32> to vector<128x128xf32>
    %161 = arith.truncf %160 : vector<128x128xf32> to vector<128x128xbf16>
    %c2432 = arith.constant 2432 : index
    %c0_63 = arith.constant 0 : index
    %162 = vector.load %arg9[%c2432, %c0_63] : memref<3456x128xbf16, #tpu.memory_space<vmem>>, vector<128x128xbf16>
    tpu.vector_store %arg9[%c2432, %c0_63], %161 {strides = array<i32>} : memref<3456x128xbf16, #tpu.memory_space<vmem>>, vector<128x128xbf16>,
    %c0_64 = arith.constant 0 : index
    %c20 = arith.constant 20 : index
    %c0_65 = arith.constant 0 : index
    %163 = vector.load %arg2[%c0_64, %c20, %c0_65] : memref<1x27x128xi32, #tpu.memory_space<vmem>>, vector<1x1x128xi32>
    %164 = vector.shape_cast %163 : vector<1x1x128xi32> to vector<1x128xi32>
    %165 = vector.broadcast %164 : vector<1x128xi32> to vector<128x128xi32>
    %166 = arith.cmpi eq, %2, %165 : vector<128x128xi32>
    %167 = arith.extui %166 : vector<128x128xi1> to vector<128x128xi32>
    %168 = arith.sitofp %167 : vector<128x128xi32> to vector<128x128xf32>
    %169 = arith.truncf %168 : vector<128x128xf32> to vector<128x128xbf16>
    %c2560 = arith.constant 2560 : index
    %c0_66 = arith.constant 0 : index
    %170 = vector.load %arg9[%c2560, %c0_66] : memref<3456x128xbf16, #tpu.memory_space<vmem>>, vector<128x128xbf16>
    tpu.vector_store %arg9[%c2560, %c0_66], %169 {strides = array<i32>} : memref<3456x128xbf16, #tpu.memory_space<vmem>>, vector<128x128xbf16>,
    %c0_67 = arith.constant 0 : index
    %c21 = arith.constant 21 : index
    %c0_68 = arith.constant 0 : index
    %171 = vector.load %arg2[%c0_67, %c21, %c0_68] : memref<1x27x128xi32, #tpu.memory_space<vmem>>, vector<1x1x128xi32>
    %172 = vector.shape_cast %171 : vector<1x1x128xi32> to vector<1x128xi32>
    %173 = vector.broadcast %172 : vector<1x128xi32> to vector<128x128xi32>
    %174 = arith.cmpi eq, %2, %173 : vector<128x128xi32>
    %175 = arith.extui %174 : vector<128x128xi1> to vector<128x128xi32>
    %176 = arith.sitofp %175 : vector<128x128xi32> to vector<128x128xf32>
    %177 = arith.truncf %176 : vector<128x128xf32> to vector<128x128xbf16>
    %c2688 = arith.constant 2688 : index
    %c0_69 = arith.constant 0 : index
    %178 = vector.load %arg9[%c2688, %c0_69] : memref<3456x128xbf16, #tpu.memory_space<vmem>>, vector<128x128xbf16>
    tpu.vector_store %arg9[%c2688, %c0_69], %177 {strides = array<i32>} : memref<3456x128xbf16, #tpu.memory_space<vmem>>, vector<128x128xbf16>,
    %c0_70 = arith.constant 0 : index
    %c22 = arith.constant 22 : index
    %c0_71 = arith.constant 0 : index
    %179 = vector.load %arg2[%c0_70, %c22, %c0_71] : memref<1x27x128xi32, #tpu.memory_space<vmem>>, vector<1x1x128xi32>
    %180 = vector.shape_cast %179 : vector<1x1x128xi32> to vector<1x128xi32>
    %181 = vector.broadcast %180 : vector<1x128xi32> to vector<128x128xi32>
    %182 = arith.cmpi eq, %2, %181 : vector<128x128xi32>
    %183 = arith.extui %182 : vector<128x128xi1> to vector<128x128xi32>
    %184 = arith.sitofp %183 : vector<128x128xi32> to vector<128x128xf32>
    %185 = arith.truncf %184 : vector<128x128xf32> to vector<128x128xbf16>
    %c2816 = arith.constant 2816 : index
    %c0_72 = arith.constant 0 : index
    %186 = vector.load %arg9[%c2816, %c0_72] : memref<3456x128xbf16, #tpu.memory_space<vmem>>, vector<128x128xbf16>
    tpu.vector_store %arg9[%c2816, %c0_72], %185 {strides = array<i32>} : memref<3456x128xbf16, #tpu.memory_space<vmem>>, vector<128x128xbf16>,
    %c0_73 = arith.constant 0 : index
    %c23 = arith.constant 23 : index
    %c0_74 = arith.constant 0 : index
    %187 = vector.load %arg2[%c0_73, %c23, %c0_74] : memref<1x27x128xi32, #tpu.memory_space<vmem>>, vector<1x1x128xi32>
    %188 = vector.shape_cast %187 : vector<1x1x128xi32> to vector<1x128xi32>
    %189 = vector.broadcast %188 : vector<1x128xi32> to vector<128x128xi32>
    %190 = arith.cmpi eq, %2, %189 : vector<128x128xi32>
    %191 = arith.extui %190 : vector<128x128xi1> to vector<128x128xi32>
    %192 = arith.sitofp %191 : vector<128x128xi32> to vector<128x128xf32>
    %193 = arith.truncf %192 : vector<128x128xf32> to vector<128x128xbf16>
    %c2944 = arith.constant 2944 : index
    %c0_75 = arith.constant 0 : index
    %194 = vector.load %arg9[%c2944, %c0_75] : memref<3456x128xbf16, #tpu.memory_space<vmem>>, vector<128x128xbf16>
    tpu.vector_store %arg9[%c2944, %c0_75], %193 {strides = array<i32>} : memref<3456x128xbf16, #tpu.memory_space<vmem>>, vector<128x128xbf16>,
    %c0_76 = arith.constant 0 : index
    %c24 = arith.constant 24 : index
    %c0_77 = arith.constant 0 : index
    %195 = vector.load %arg2[%c0_76, %c24, %c0_77] : memref<1x27x128xi32, #tpu.memory_space<vmem>>, vector<1x1x128xi32>
    %196 = vector.shape_cast %195 : vector<1x1x128xi32> to vector<1x128xi32>
    %197 = vector.broadcast %196 : vector<1x128xi32> to vector<128x128xi32>
    %198 = arith.cmpi eq, %2, %197 : vector<128x128xi32>
    %199 = arith.extui %198 : vector<128x128xi1> to vector<128x128xi32>
    %200 = arith.sitofp %199 : vector<128x128xi32> to vector<128x128xf32>
    %201 = arith.truncf %200 : vector<128x128xf32> to vector<128x128xbf16>
    %c3072 = arith.constant 3072 : index
    %c0_78 = arith.constant 0 : index
    %202 = vector.load %arg9[%c3072, %c0_78] : memref<3456x128xbf16, #tpu.memory_space<vmem>>, vector<128x128xbf16>
    tpu.vector_store %arg9[%c3072, %c0_78], %201 {strides = array<i32>} : memref<3456x128xbf16, #tpu.memory_space<vmem>>, vector<128x128xbf16>,
    %c0_79 = arith.constant 0 : index
    %c25 = arith.constant 25 : index
    %c0_80 = arith.constant 0 : index
    %203 = vector.load %arg2[%c0_79, %c25, %c0_80] : memref<1x27x128xi32, #tpu.memory_space<vmem>>, vector<1x1x128xi32>
    %204 = vector.shape_cast %203 : vector<1x1x128xi32> to vector<1x128xi32>
    %205 = vector.broadcast %204 : vector<1x128xi32> to vector<128x128xi32>
    %206 = arith.cmpi eq, %2, %205 : vector<128x128xi32>
    %207 = arith.extui %206 : vector<128x128xi1> to vector<128x128xi32>
    %208 = arith.sitofp %207 : vector<128x128xi32> to vector<128x128xf32>
    %209 = arith.truncf %208 : vector<128x128xf32> to vector<128x128xbf16>
    %c3200 = arith.constant 3200 : index
    %c0_81 = arith.constant 0 : index
    %210 = vector.load %arg9[%c3200, %c0_81] : memref<3456x128xbf16, #tpu.memory_space<vmem>>, vector<128x128xbf16>
    tpu.vector_store %arg9[%c3200, %c0_81], %209 {strides = array<i32>} : memref<3456x128xbf16, #tpu.memory_space<vmem>>, vector<128x128xbf16>,
    %c0_82 = arith.constant 0 : index
    %c26 = arith.constant 26 : index
    %c0_83 = arith.constant 0 : index
    %211 = vector.load %arg2[%c0_82, %c26, %c0_83] : memref<1x27x128xi32, #tpu.memory_space<vmem>>, vector<1x1x128xi32>
    %212 = vector.shape_cast %211 : vector<1x1x128xi32> to vector<1x128xi32>
    %213 = vector.broadcast %212 : vector<1x128xi32> to vector<128x128xi32>
    %214 = arith.cmpi eq, %2, %213 : vector<128x128xi32>
    %215 = arith.extui %214 : vector<128x128xi1> to vector<128x128xi32>
    %216 = arith.sitofp %215 : vector<128x128xi32> to vector<128x128xf32>
    %217 = arith.truncf %216 : vector<128x128xf32> to vector<128x128xbf16>
    %c3328 = arith.constant 3328 : index
    %c0_84 = arith.constant 0 : index
    %218 = vector.load %arg9[%c3328, %c0_84] : memref<3456x128xbf16, #tpu.memory_space<vmem>>, vector<128x128xbf16>
    tpu.vector_store %arg9[%c3328, %c0_84], %217 {strides = array<i32>} : memref<3456x128xbf16, #tpu.memory_space<vmem>>, vector<128x128xbf16>,
    %c0_85 = arith.constant 0 : index
    %c0_86 = arith.constant 0 : index
    %219 = vector.load %arg4[%c0_85, %c0_86] : memref<216x8xbf16, #tpu.memory_space<vmem>>, vector<216x8xbf16>
    %cst = arith.constant dense<0.000000e+00> : vector<216x128xf32>
    %220 = tpu.matmul %219, %1, %cst {dimension_numbers = #tpu.dot_dimension_numbers<[1], [0], [0], [1], [0, 0, 1, 1], [], []>} : vector<216x8xbf16>, vector<8x128xbf16>, vector<216x128xf32> -> vector<216x128xf32>
    %221 = vector.extract_strided_slice %220 {offsets = [0, 0], sizes = [8, 128], strides = [1, 1]} : vector<216x128xf32> to vector<8x128xf32>
    %222 = arith.truncf %221 : vector<8x128xf32> to vector<8x128xbf16>
    %c0_87 = arith.constant 0 : index
    %c0_88 = arith.constant 0 : index
    %223 = vector.load %arg10[%c0_87, %c0_88] : memref<8x3456xbf16, #tpu.memory_space<vmem>>, vector<8x128xbf16>
    tpu.vector_store %arg10[%c0_87, %c0_88], %222 {strides = array<i32>} : memref<8x3456xbf16, #tpu.memory_space<vmem>>, vector<8x128xbf16>,
    %224 = vector.extract_strided_slice %220 {offsets = [8, 0], sizes = [8, 128], strides = [1, 1]} : vector<216x128xf32> to vector<8x128xf32>
    %225 = arith.truncf %224 : vector<8x128xf32> to vector<8x128xbf16>
    %c0_89 = arith.constant 0 : index
    %c128_90 = arith.constant 128 : index
    %226 = vector.load %arg10[%c0_89, %c128_90] : memref<8x3456xbf16, #tpu.memory_space<vmem>>, vector<8x128xbf16>
    tpu.vector_store %arg10[%c0_89, %c128_90], %225 {strides = array<i32>} : memref<8x3456xbf16, #tpu.memory_space<vmem>>, vector<8x128xbf16>,
    %227 = vector.extract_strided_slice %220 {offsets = [16, 0], sizes = [8, 128], strides = [1, 1]} : vector<216x128xf32> to vector<8x128xf32>
    %228 = arith.truncf %227 : vector<8x128xf32> to vector<8x128xbf16>
    %c0_91 = arith.constant 0 : index
    %c256_92 = arith.constant 256 : index
    %229 = vector.load %arg10[%c0_91, %c256_92] : memref<8x3456xbf16, #tpu.memory_space<vmem>>, vector<8x128xbf16>
    tpu.vector_store %arg10[%c0_91, %c256_92], %228 {strides = array<i32>} : memref<8x3456xbf16, #tpu.memory_space<vmem>>, vector<8x128xbf16>,
    %230 = vector.extract_strided_slice %220 {offsets = [24, 0], sizes = [8, 128], strides = [1, 1]} : vector<216x128xf32> to vector<8x128xf32>
    %231 = arith.truncf %230 : vector<8x128xf32> to vector<8x128xbf16>
    %c0_93 = arith.constant 0 : index
    %c384_94 = arith.constant 384 : index
    %232 = vector.load %arg10[%c0_93, %c384_94] : memref<8x3456xbf16, #tpu.memory_space<vmem>>, vector<8x128xbf16>
    tpu.vector_store %arg10[%c0_93, %c384_94], %231 {strides = array<i32>} : memref<8x3456xbf16, #tpu.memory_space<vmem>>, vector<8x128xbf16>,
    %233 = vector.extract_strided_slice %220 {offsets = [32, 0], sizes = [8, 128], strides = [1, 1]} : vector<216x128xf32> to vector<8x128xf32>
    %234 = arith.truncf %233 : vector<8x128xf32> to vector<8x128xbf16>
    %c0_95 = arith.constant 0 : index
    %c512_96 = arith.constant 512 : index
    %235 = vector.load %arg10[%c0_95, %c512_96] : memref<8x3456xbf16, #tpu.memory_space<vmem>>, vector<8x128xbf16>
    tpu.vector_store %arg10[%c0_95, %c512_96], %234 {strides = array<i32>} : memref<8x3456xbf16, #tpu.memory_space<vmem>>, vector<8x128xbf16>,
    %236 = vector.extract_strided_slice %220 {offsets = [40, 0], sizes = [8, 128], strides = [1, 1]} : vector<216x128xf32> to vector<8x128xf32>
    %237 = arith.truncf %236 : vector<8x128xf32> to vector<8x128xbf16>
    %c0_97 = arith.constant 0 : index
    %c640_98 = arith.constant 640 : index
    %238 = vector.load %arg10[%c0_97, %c640_98] : memref<8x3456xbf16, #tpu.memory_space<vmem>>, vector<8x128xbf16>
    tpu.vector_store %arg10[%c0_97, %c640_98], %237 {strides = array<i32>} : memref<8x3456xbf16, #tpu.memory_space<vmem>>, vector<8x128xbf16>,
    %239 = vector.extract_strided_slice %220 {offsets = [48, 0], sizes = [8, 128], strides = [1, 1]} : vector<216x128xf32> to vector<8x128xf32>
    %240 = arith.truncf %239 : vector<8x128xf32> to vector<8x128xbf16>
    %c0_99 = arith.constant 0 : index
    %c768_100 = arith.constant 768 : index
    %241 = vector.load %arg10[%c0_99, %c768_100] : memref<8x3456xbf16, #tpu.memory_space<vmem>>, vector<8x128xbf16>
    tpu.vector_store %arg10[%c0_99, %c768_100], %240 {strides = array<i32>} : memref<8x3456xbf16, #tpu.memory_space<vmem>>, vector<8x128xbf16>,
    %242 = vector.extract_strided_slice %220 {offsets = [56, 0], sizes = [8, 128], strides = [1, 1]} : vector<216x128xf32> to vector<8x128xf32>
    %243 = arith.truncf %242 : vector<8x128xf32> to vector<8x128xbf16>
    %c0_101 = arith.constant 0 : index
    %c896_102 = arith.constant 896 : index
    %244 = vector.load %arg10[%c0_101, %c896_102] : memref<8x3456xbf16, #tpu.memory_space<vmem>>, vector<8x128xbf16>
    tpu.vector_store %arg10[%c0_101, %c896_102], %243 {strides = array<i32>} : memref<8x3456xbf16, #tpu.memory_space<vmem>>, vector<8x128xbf16>,
    %245 = vector.extract_strided_slice %220 {offsets = [64, 0], sizes = [8, 128], strides = [1, 1]} : vector<216x128xf32> to vector<8x128xf32>
    %246 = arith.truncf %245 : vector<8x128xf32> to vector<8x128xbf16>
    %c0_103 = arith.constant 0 : index
    %c1024_104 = arith.constant 1024 : index
    %247 = vector.load %arg10[%c0_103, %c1024_104] : memref<8x3456xbf16, #tpu.memory_space<vmem>>, vector<8x128xbf16>
    tpu.vector_store %arg10[%c0_103, %c1024_104], %246 {strides = array<i32>} : memref<8x3456xbf16, #tpu.memory_space<vmem>>, vector<8x128xbf16>,
    %248 = vector.extract_strided_slice %220 {offsets = [72, 0], sizes = [8, 128], strides = [1, 1]} : vector<216x128xf32> to vector<8x128xf32>
    %249 = arith.truncf %248 : vector<8x128xf32> to vector<8x128xbf16>
    %c0_105 = arith.constant 0 : index
    %c1152_106 = arith.constant 1152 : index
    %250 = vector.load %arg10[%c0_105, %c1152_106] : memref<8x3456xbf16, #tpu.memory_space<vmem>>, vector<8x128xbf16>
    tpu.vector_store %arg10[%c0_105, %c1152_106], %249 {strides = array<i32>} : memref<8x3456xbf16, #tpu.memory_space<vmem>>, vector<8x128xbf16>,
    %251 = vector.extract_strided_slice %220 {offsets = [80, 0], sizes = [8, 128], strides = [1, 1]} : vector<216x128xf32> to vector<8x128xf32>
    %252 = arith.truncf %251 : vector<8x128xf32> to vector<8x128xbf16>
    %c0_107 = arith.constant 0 : index
    %c1280_108 = arith.constant 1280 : index
    %253 = vector.load %arg10[%c0_107, %c1280_108] : memref<8x3456xbf16, #tpu.memory_space<vmem>>, vector<8x128xbf16>
    tpu.vector_store %arg10[%c0_107, %c1280_108], %252 {strides = array<i32>} : memref<8x3456xbf16, #tpu.memory_space<vmem>>, vector<8x128xbf16>,
    %254 = vector.extract_strided_slice %220 {offsets = [88, 0], sizes = [8, 128], strides = [1, 1]} : vector<216x128xf32> to vector<8x128xf32>
    %255 = arith.truncf %254 : vector<8x128xf32> to vector<8x128xbf16>
    %c0_109 = arith.constant 0 : index
    %c1408_110 = arith.constant 1408 : index
    %256 = vector.load %arg10[%c0_109, %c1408_110] : memref<8x3456xbf16, #tpu.memory_space<vmem>>, vector<8x128xbf16>
    tpu.vector_store %arg10[%c0_109, %c1408_110], %255 {strides = array<i32>} : memref<8x3456xbf16, #tpu.memory_space<vmem>>, vector<8x128xbf16>,
    %257 = vector.extract_strided_slice %220 {offsets = [96, 0], sizes = [8, 128], strides = [1, 1]} : vector<216x128xf32> to vector<8x128xf32>
    %258 = arith.truncf %257 : vector<8x128xf32> to vector<8x128xbf16>
    %c0_111 = arith.constant 0 : index
    %c1536_112 = arith.constant 1536 : index
    %259 = vector.load %arg10[%c0_111, %c1536_112] : memref<8x3456xbf16, #tpu.memory_space<vmem>>, vector<8x128xbf16>
    tpu.vector_store %arg10[%c0_111, %c1536_112], %258 {strides = array<i32>} : memref<8x3456xbf16, #tpu.memory_space<vmem>>, vector<8x128xbf16>,
    %260 = vector.extract_strided_slice %220 {offsets = [104, 0], sizes = [8, 128], strides = [1, 1]} : vector<216x128xf32> to vector<8x128xf32>
    %261 = arith.truncf %260 : vector<8x128xf32> to vector<8x128xbf16>
    %c0_113 = arith.constant 0 : index
    %c1664_114 = arith.constant 1664 : index
    %262 = vector.load %arg10[%c0_113, %c1664_114] : memref<8x3456xbf16, #tpu.memory_space<vmem>>, vector<8x128xbf16>
    tpu.vector_store %arg10[%c0_113, %c1664_114], %261 {strides = array<i32>} : memref<8x3456xbf16, #tpu.memory_space<vmem>>, vector<8x128xbf16>,
    %263 = vector.extract_strided_slice %220 {offsets = [112, 0], sizes = [8, 128], strides = [1, 1]} : vector<216x128xf32> to vector<8x128xf32>
    %264 = arith.truncf %263 : vector<8x128xf32> to vector<8x128xbf16>
    %c0_115 = arith.constant 0 : index
    %c1792_116 = arith.constant 1792 : index
    %265 = vector.load %arg10[%c0_115, %c1792_116] : memref<8x3456xbf16, #tpu.memory_space<vmem>>, vector<8x128xbf16>
    tpu.vector_store %arg10[%c0_115, %c1792_116], %264 {strides = array<i32>} : memref<8x3456xbf16, #tpu.memory_space<vmem>>, vector<8x128xbf16>,
    %266 = vector.extract_strided_slice %220 {offsets = [120, 0], sizes = [8, 128], strides = [1, 1]} : vector<216x128xf32> to vector<8x128xf32>
    %267 = arith.truncf %266 : vector<8x128xf32> to vector<8x128xbf16>
    %c0_117 = arith.constant 0 : index
    %c1920_118 = arith.constant 1920 : index
    %268 = vector.load %arg10[%c0_117, %c1920_118] : memref<8x3456xbf16, #tpu.memory_space<vmem>>, vector<8x128xbf16>
    tpu.vector_store %arg10[%c0_117, %c1920_118], %267 {strides = array<i32>} : memref<8x3456xbf16, #tpu.memory_space<vmem>>, vector<8x128xbf16>,
    %269 = vector.extract_strided_slice %220 {offsets = [128, 0], sizes = [8, 128], strides = [1, 1]} : vector<216x128xf32> to vector<8x128xf32>
    %270 = arith.truncf %269 : vector<8x128xf32> to vector<8x128xbf16>
    %c0_119 = arith.constant 0 : index
    %c2048_120 = arith.constant 2048 : index
    %271 = vector.load %arg10[%c0_119, %c2048_120] : memref<8x3456xbf16, #tpu.memory_space<vmem>>, vector<8x128xbf16>
    tpu.vector_store %arg10[%c0_119, %c2048_120], %270 {strides = array<i32>} : memref<8x3456xbf16, #tpu.memory_space<vmem>>, vector<8x128xbf16>,
    %272 = vector.extract_strided_slice %220 {offsets = [136, 0], sizes = [8, 128], strides = [1, 1]} : vector<216x128xf32> to vector<8x128xf32>
    %273 = arith.truncf %272 : vector<8x128xf32> to vector<8x128xbf16>
    %c0_121 = arith.constant 0 : index
    %c2176_122 = arith.constant 2176 : index
    %274 = vector.load %arg10[%c0_121, %c2176_122] : memref<8x3456xbf16, #tpu.memory_space<vmem>>, vector<8x128xbf16>
    tpu.vector_store %arg10[%c0_121, %c2176_122], %273 {strides = array<i32>} : memref<8x3456xbf16, #tpu.memory_space<vmem>>, vector<8x128xbf16>,
    %275 = vector.extract_strided_slice %220 {offsets = [144, 0], sizes = [8, 128], strides = [1, 1]} : vector<216x128xf32> to vector<8x128xf32>
    %276 = arith.truncf %275 : vector<8x128xf32> to vector<8x128xbf16>
    %c0_123 = arith.constant 0 : index
    %c2304_124 = arith.constant 2304 : index
    %277 = vector.load %arg10[%c0_123, %c2304_124] : memref<8x3456xbf16, #tpu.memory_space<vmem>>, vector<8x128xbf16>
    tpu.vector_store %arg10[%c0_123, %c2304_124], %276 {strides = array<i32>} : memref<8x3456xbf16, #tpu.memory_space<vmem>>, vector<8x128xbf16>,
    %278 = vector.extract_strided_slice %220 {offsets = [152, 0], sizes = [8, 128], strides = [1, 1]} : vector<216x128xf32> to vector<8x128xf32>
    %279 = arith.truncf %278 : vector<8x128xf32> to vector<8x128xbf16>
    %c0_125 = arith.constant 0 : index
    %c2432_126 = arith.constant 2432 : index
    %280 = vector.load %arg10[%c0_125, %c2432_126] : memref<8x3456xbf16, #tpu.memory_space<vmem>>, vector<8x128xbf16>
    tpu.vector_store %arg10[%c0_125, %c2432_126], %279 {strides = array<i32>} : memref<8x3456xbf16, #tpu.memory_space<vmem>>, vector<8x128xbf16>,
    %281 = vector.extract_strided_slice %220 {offsets = [160, 0], sizes = [8, 128], strides = [1, 1]} : vector<216x128xf32> to vector<8x128xf32>
    %282 = arith.truncf %281 : vector<8x128xf32> to vector<8x128xbf16>
    %c0_127 = arith.constant 0 : index
    %c2560_128 = arith.constant 2560 : index
    %283 = vector.load %arg10[%c0_127, %c2560_128] : memref<8x3456xbf16, #tpu.memory_space<vmem>>, vector<8x128xbf16>
    tpu.vector_store %arg10[%c0_127, %c2560_128], %282 {strides = array<i32>} : memref<8x3456xbf16, #tpu.memory_space<vmem>>, vector<8x128xbf16>,
    %284 = vector.extract_strided_slice %220 {offsets = [168, 0], sizes = [8, 128], strides = [1, 1]} : vector<216x128xf32> to vector<8x128xf32>
    %285 = arith.truncf %284 : vector<8x128xf32> to vector<8x128xbf16>
    %c0_129 = arith.constant 0 : index
    %c2688_130 = arith.constant 2688 : index
    %286 = vector.load %arg10[%c0_129, %c2688_130] : memref<8x3456xbf16, #tpu.memory_space<vmem>>, vector<8x128xbf16>
    tpu.vector_store %arg10[%c0_129, %c2688_130], %285 {strides = array<i32>} : memref<8x3456xbf16, #tpu.memory_space<vmem>>, vector<8x128xbf16>,
    %287 = vector.extract_strided_slice %220 {offsets = [176, 0], sizes = [8, 128], strides = [1, 1]} : vector<216x128xf32> to vector<8x128xf32>
    %288 = arith.truncf %287 : vector<8x128xf32> to vector<8x128xbf16>
    %c0_131 = arith.constant 0 : index
    %c2816_132 = arith.constant 2816 : index
    %289 = vector.load %arg10[%c0_131, %c2816_132] : memref<8x3456xbf16, #tpu.memory_space<vmem>>, vector<8x128xbf16>
    tpu.vector_store %arg10[%c0_131, %c2816_132], %288 {strides = array<i32>} : memref<8x3456xbf16, #tpu.memory_space<vmem>>, vector<8x128xbf16>,
    %290 = vector.extract_strided_slice %220 {offsets = [184, 0], sizes = [8, 128], strides = [1, 1]} : vector<216x128xf32> to vector<8x128xf32>
    %291 = arith.truncf %290 : vector<8x128xf32> to vector<8x128xbf16>
    %c0_133 = arith.constant 0 : index
    %c2944_134 = arith.constant 2944 : index
    %292 = vector.load %arg10[%c0_133, %c2944_134] : memref<8x3456xbf16, #tpu.memory_space<vmem>>, vector<8x128xbf16>
    tpu.vector_store %arg10[%c0_133, %c2944_134], %291 {strides = array<i32>} : memref<8x3456xbf16, #tpu.memory_space<vmem>>, vector<8x128xbf16>,
    %293 = vector.extract_strided_slice %220 {offsets = [192, 0], sizes = [8, 128], strides = [1, 1]} : vector<216x128xf32> to vector<8x128xf32>
    %294 = arith.truncf %293 : vector<8x128xf32> to vector<8x128xbf16>
    %c0_135 = arith.constant 0 : index
    %c3072_136 = arith.constant 3072 : index
    %295 = vector.load %arg10[%c0_135, %c3072_136] : memref<8x3456xbf16, #tpu.memory_space<vmem>>, vector<8x128xbf16>
    tpu.vector_store %arg10[%c0_135, %c3072_136], %294 {strides = array<i32>} : memref<8x3456xbf16, #tpu.memory_space<vmem>>, vector<8x128xbf16>,
    %296 = vector.extract_strided_slice %220 {offsets = [200, 0], sizes = [8, 128], strides = [1, 1]} : vector<216x128xf32> to vector<8x128xf32>
    %297 = arith.truncf %296 : vector<8x128xf32> to vector<8x128xbf16>
    %c0_137 = arith.constant 0 : index
    %c3200_138 = arith.constant 3200 : index
    %298 = vector.load %arg10[%c0_137, %c3200_138] : memref<8x3456xbf16, #tpu.memory_space<vmem>>, vector<8x128xbf16>
    tpu.vector_store %arg10[%c0_137, %c3200_138], %297 {strides = array<i32>} : memref<8x3456xbf16, #tpu.memory_space<vmem>>, vector<8x128xbf16>,
    %299 = vector.extract_strided_slice %220 {offsets = [208, 0], sizes = [8, 128], strides = [1, 1]} : vector<216x128xf32> to vector<8x128xf32>
    %300 = arith.truncf %299 : vector<8x128xf32> to vector<8x128xbf16>
    %c0_139 = arith.constant 0 : index
    %c3328_140 = arith.constant 3328 : index
    %301 = vector.load %arg10[%c0_139, %c3328_140] : memref<8x3456xbf16, #tpu.memory_space<vmem>>, vector<8x128xbf16>
    tpu.vector_store %arg10[%c0_139, %c3328_140], %300 {strides = array<i32>} : memref<8x3456xbf16, #tpu.memory_space<vmem>>, vector<8x128xbf16>,
    %c0_141 = arith.constant 0 : index
    %c0_142 = arith.constant 0 : index
    %302 = vector.load %arg10[%c0_141, %c0_142] : memref<8x3456xbf16, #tpu.memory_space<vmem>>, vector<8x3456xbf16>
    %c0_143 = arith.constant 0 : index
    %c0_144 = arith.constant 0 : index
    %303 = vector.load %arg9[%c0_143, %c0_144] : memref<3456x128xbf16, #tpu.memory_space<vmem>>, vector<3456x128xbf16>
    %cst_145 = arith.constant dense<0.000000e+00> : vector<8x128xf32>
    %304 = tpu.matmul %302, %303, %cst_145 {dimension_numbers = #tpu.dot_dimension_numbers<[1], [0], [0], [1], [0, 0, 1, 1], [], []>} : vector<8x3456xbf16>, vector<3456x128xbf16>, vector<8x128xf32> -> vector<8x128xf32>
    %c0_146 = arith.constant 0 : index
    %c0_147 = arith.constant 0 : index
    %305 = vector.load %arg7[%c0_146, %c0_147] : memref<8x2xf32, #tpu.memory_space<vmem>>, vector<8x1xf32>
    %306 = vector.broadcast %305 : vector<8x1xf32> to vector<8x128xf32>
    %307 = arith.addf %304, %306 : vector<8x128xf32>
    %cst_148 = arith.constant 0.000000e+00 : f32
    %308 = vector.broadcast %cst_148 : f32 to vector<8x128xf32>
    %309 = arith.maximumf %307, %308 : vector<8x128xf32>
    %310 = arith.truncf %309 : vector<8x128xf32> to vector<8x128xbf16>
    %c0_149 = arith.constant 0 : index
    %c0_150 = arith.constant 0 : index
    %311 = vector.load %arg5[%c0_149, %c0_150] : memref<216x8xbf16, #tpu.memory_space<vmem>>, vector<216x8xbf16>
    %cst_151 = arith.constant dense<0.000000e+00> : vector<216x128xf32>
    %312 = tpu.matmul %311, %310, %cst_151 {dimension_numbers = #tpu.dot_dimension_numbers<[1], [0], [0], [1], [0, 0, 1, 1], [], []>} : vector<216x8xbf16>, vector<8x128xbf16>, vector<216x128xf32> -> vector<216x128xf32>
    %313 = vector.extract_strided_slice %312 {offsets = [0, 0], sizes = [8, 128], strides = [1, 1]} : vector<216x128xf32> to vector<8x128xf32>
    %314 = arith.truncf %313 : vector<8x128xf32> to vector<8x128xbf16>
    %c0_152 = arith.constant 0 : index
    %c0_153 = arith.constant 0 : index
    %315 = vector.load %arg10[%c0_152, %c0_153] : memref<8x3456xbf16, #tpu.memory_space<vmem>>, vector<8x128xbf16>
    tpu.vector_store %arg10[%c0_152, %c0_153], %314 {strides = array<i32>} : memref<8x3456xbf16, #tpu.memory_space<vmem>>, vector<8x128xbf16>,
    %316 = vector.extract_strided_slice %312 {offsets = [8, 0], sizes = [8, 128], strides = [1, 1]} : vector<216x128xf32> to vector<8x128xf32>
    %317 = arith.truncf %316 : vector<8x128xf32> to vector<8x128xbf16>
    %c0_154 = arith.constant 0 : index
    %c128_155 = arith.constant 128 : index
    %318 = vector.load %arg10[%c0_154, %c128_155] : memref<8x3456xbf16, #tpu.memory_space<vmem>>, vector<8x128xbf16>
    tpu.vector_store %arg10[%c0_154, %c128_155], %317 {strides = array<i32>} : memref<8x3456xbf16, #tpu.memory_space<vmem>>, vector<8x128xbf16>,
    %319 = vector.extract_strided_slice %312 {offsets = [16, 0], sizes = [8, 128], strides = [1, 1]} : vector<216x128xf32> to vector<8x128xf32>
    %320 = arith.truncf %319 : vector<8x128xf32> to vector<8x128xbf16>
    %c0_156 = arith.constant 0 : index
    %c256_157 = arith.constant 256 : index
    %321 = vector.load %arg10[%c0_156, %c256_157] : memref<8x3456xbf16, #tpu.memory_space<vmem>>, vector<8x128xbf16>
    tpu.vector_store %arg10[%c0_156, %c256_157], %320 {strides = array<i32>} : memref<8x3456xbf16, #tpu.memory_space<vmem>>, vector<8x128xbf16>,
    %322 = vector.extract_strided_slice %312 {offsets = [24, 0], sizes = [8, 128], strides = [1, 1]} : vector<216x128xf32> to vector<8x128xf32>
    %323 = arith.truncf %322 : vector<8x128xf32> to vector<8x128xbf16>
    %c0_158 = arith.constant 0 : index
    %c384_159 = arith.constant 384 : index
    %324 = vector.load %arg10[%c0_158, %c384_159] : memref<8x3456xbf16, #tpu.memory_space<vmem>>, vector<8x128xbf16>
    tpu.vector_store %arg10[%c0_158, %c384_159], %323 {strides = array<i32>} : memref<8x3456xbf16, #tpu.memory_space<vmem>>, vector<8x128xbf16>,
    %325 = vector.extract_strided_slice %312 {offsets = [32, 0], sizes = [8, 128], strides = [1, 1]} : vector<216x128xf32> to vector<8x128xf32>
    %326 = arith.truncf %325 : vector<8x128xf32> to vector<8x128xbf16>
    %c0_160 = arith.constant 0 : index
    %c512_161 = arith.constant 512 : index
    %327 = vector.load %arg10[%c0_160, %c512_161] : memref<8x3456xbf16, #tpu.memory_space<vmem>>, vector<8x128xbf16>
    tpu.vector_store %arg10[%c0_160, %c512_161], %326 {strides = array<i32>} : memref<8x3456xbf16, #tpu.memory_space<vmem>>, vector<8x128xbf16>,
    %328 = vector.extract_strided_slice %312 {offsets = [40, 0], sizes = [8, 128], strides = [1, 1]} : vector<216x128xf32> to vector<8x128xf32>
    %329 = arith.truncf %328 : vector<8x128xf32> to vector<8x128xbf16>
    %c0_162 = arith.constant 0 : index
    %c640_163 = arith.constant 640 : index
    %330 = vector.load %arg10[%c0_162, %c640_163] : memref<8x3456xbf16, #tpu.memory_space<vmem>>, vector<8x128xbf16>
    tpu.vector_store %arg10[%c0_162, %c640_163], %329 {strides = array<i32>} : memref<8x3456xbf16, #tpu.memory_space<vmem>>, vector<8x128xbf16>,
    %331 = vector.extract_strided_slice %312 {offsets = [48, 0], sizes = [8, 128], strides = [1, 1]} : vector<216x128xf32> to vector<8x128xf32>
    %332 = arith.truncf %331 : vector<8x128xf32> to vector<8x128xbf16>
    %c0_164 = arith.constant 0 : index
    %c768_165 = arith.constant 768 : index
    %333 = vector.load %arg10[%c0_164, %c768_165] : memref<8x3456xbf16, #tpu.memory_space<vmem>>, vector<8x128xbf16>
    tpu.vector_store %arg10[%c0_164, %c768_165], %332 {strides = array<i32>} : memref<8x3456xbf16, #tpu.memory_space<vmem>>, vector<8x128xbf16>,
    %334 = vector.extract_strided_slice %312 {offsets = [56, 0], sizes = [8, 128], strides = [1, 1]} : vector<216x128xf32> to vector<8x128xf32>
    %335 = arith.truncf %334 : vector<8x128xf32> to vector<8x128xbf16>
    %c0_166 = arith.constant 0 : index
    %c896_167 = arith.constant 896 : index
    %336 = vector.load %arg10[%c0_166, %c896_167] : memref<8x3456xbf16, #tpu.memory_space<vmem>>, vector<8x128xbf16>
    tpu.vector_store %arg10[%c0_166, %c896_167], %335 {strides = array<i32>} : memref<8x3456xbf16, #tpu.memory_space<vmem>>, vector<8x128xbf16>,
    %337 = vector.extract_strided_slice %312 {offsets = [64, 0], sizes = [8, 128], strides = [1, 1]} : vector<216x128xf32> to vector<8x128xf32>
    %338 = arith.truncf %337 : vector<8x128xf32> to vector<8x128xbf16>
    %c0_168 = arith.constant 0 : index
    %c1024_169 = arith.constant 1024 : index
    %339 = vector.load %arg10[%c0_168, %c1024_169] : memref<8x3456xbf16, #tpu.memory_space<vmem>>, vector<8x128xbf16>
    tpu.vector_store %arg10[%c0_168, %c1024_169], %338 {strides = array<i32>} : memref<8x3456xbf16, #tpu.memory_space<vmem>>, vector<8x128xbf16>,
    %340 = vector.extract_strided_slice %312 {offsets = [72, 0], sizes = [8, 128], strides = [1, 1]} : vector<216x128xf32> to vector<8x128xf32>
    %341 = arith.truncf %340 : vector<8x128xf32> to vector<8x128xbf16>
    %c0_170 = arith.constant 0 : index
    %c1152_171 = arith.constant 1152 : index
    %342 = vector.load %arg10[%c0_170, %c1152_171] : memref<8x3456xbf16, #tpu.memory_space<vmem>>, vector<8x128xbf16>
    tpu.vector_store %arg10[%c0_170, %c1152_171], %341 {strides = array<i32>} : memref<8x3456xbf16, #tpu.memory_space<vmem>>, vector<8x128xbf16>,
    %343 = vector.extract_strided_slice %312 {offsets = [80, 0], sizes = [8, 128], strides = [1, 1]} : vector<216x128xf32> to vector<8x128xf32>
    %344 = arith.truncf %343 : vector<8x128xf32> to vector<8x128xbf16>
    %c0_172 = arith.constant 0 : index
    %c1280_173 = arith.constant 1280 : index
    %345 = vector.load %arg10[%c0_172, %c1280_173] : memref<8x3456xbf16, #tpu.memory_space<vmem>>, vector<8x128xbf16>
    tpu.vector_store %arg10[%c0_172, %c1280_173], %344 {strides = array<i32>} : memref<8x3456xbf16, #tpu.memory_space<vmem>>, vector<8x128xbf16>,
    %346 = vector.extract_strided_slice %312 {offsets = [88, 0], sizes = [8, 128], strides = [1, 1]} : vector<216x128xf32> to vector<8x128xf32>
    %347 = arith.truncf %346 : vector<8x128xf32> to vector<8x128xbf16>
    %c0_174 = arith.constant 0 : index
    %c1408_175 = arith.constant 1408 : index
    %348 = vector.load %arg10[%c0_174, %c1408_175] : memref<8x3456xbf16, #tpu.memory_space<vmem>>, vector<8x128xbf16>
    tpu.vector_store %arg10[%c0_174, %c1408_175], %347 {strides = array<i32>} : memref<8x3456xbf16, #tpu.memory_space<vmem>>, vector<8x128xbf16>,
    %349 = vector.extract_strided_slice %312 {offsets = [96, 0], sizes = [8, 128], strides = [1, 1]} : vector<216x128xf32> to vector<8x128xf32>
    %350 = arith.truncf %349 : vector<8x128xf32> to vector<8x128xbf16>
    %c0_176 = arith.constant 0 : index
    %c1536_177 = arith.constant 1536 : index
    %351 = vector.load %arg10[%c0_176, %c1536_177] : memref<8x3456xbf16, #tpu.memory_space<vmem>>, vector<8x128xbf16>
    tpu.vector_store %arg10[%c0_176, %c1536_177], %350 {strides = array<i32>} : memref<8x3456xbf16, #tpu.memory_space<vmem>>, vector<8x128xbf16>,
    %352 = vector.extract_strided_slice %312 {offsets = [104, 0], sizes = [8, 128], strides = [1, 1]} : vector<216x128xf32> to vector<8x128xf32>
    %353 = arith.truncf %352 : vector<8x128xf32> to vector<8x128xbf16>
    %c0_178 = arith.constant 0 : index
    %c1664_179 = arith.constant 1664 : index
    %354 = vector.load %arg10[%c0_178, %c1664_179] : memref<8x3456xbf16, #tpu.memory_space<vmem>>, vector<8x128xbf16>
    tpu.vector_store %arg10[%c0_178, %c1664_179], %353 {strides = array<i32>} : memref<8x3456xbf16, #tpu.memory_space<vmem>>, vector<8x128xbf16>,
    %355 = vector.extract_strided_slice %312 {offsets = [112, 0], sizes = [8, 128], strides = [1, 1]} : vector<216x128xf32> to vector<8x128xf32>
    %356 = arith.truncf %355 : vector<8x128xf32> to vector<8x128xbf16>
    %c0_180 = arith.constant 0 : index
    %c1792_181 = arith.constant 1792 : index
    %357 = vector.load %arg10[%c0_180, %c1792_181] : memref<8x3456xbf16, #tpu.memory_space<vmem>>, vector<8x128xbf16>
    tpu.vector_store %arg10[%c0_180, %c1792_181], %356 {strides = array<i32>} : memref<8x3456xbf16, #tpu.memory_space<vmem>>, vector<8x128xbf16>,
    %358 = vector.extract_strided_slice %312 {offsets = [120, 0], sizes = [8, 128], strides = [1, 1]} : vector<216x128xf32> to vector<8x128xf32>
    %359 = arith.truncf %358 : vector<8x128xf32> to vector<8x128xbf16>
    %c0_182 = arith.constant 0 : index
    %c1920_183 = arith.constant 1920 : index
    %360 = vector.load %arg10[%c0_182, %c1920_183] : memref<8x3456xbf16, #tpu.memory_space<vmem>>, vector<8x128xbf16>
    tpu.vector_store %arg10[%c0_182, %c1920_183], %359 {strides = array<i32>} : memref<8x3456xbf16, #tpu.memory_space<vmem>>, vector<8x128xbf16>,
    %361 = vector.extract_strided_slice %312 {offsets = [128, 0], sizes = [8, 128], strides = [1, 1]} : vector<216x128xf32> to vector<8x128xf32>
    %362 = arith.truncf %361 : vector<8x128xf32> to vector<8x128xbf16>
    %c0_184 = arith.constant 0 : index
    %c2048_185 = arith.constant 2048 : index
    %363 = vector.load %arg10[%c0_184, %c2048_185] : memref<8x3456xbf16, #tpu.memory_space<vmem>>, vector<8x128xbf16>
    tpu.vector_store %arg10[%c0_184, %c2048_185], %362 {strides = array<i32>} : memref<8x3456xbf16, #tpu.memory_space<vmem>>, vector<8x128xbf16>,
    %364 = vector.extract_strided_slice %312 {offsets = [136, 0], sizes = [8, 128], strides = [1, 1]} : vector<216x128xf32> to vector<8x128xf32>
    %365 = arith.truncf %364 : vector<8x128xf32> to vector<8x128xbf16>
    %c0_186 = arith.constant 0 : index
    %c2176_187 = arith.constant 2176 : index
    %366 = vector.load %arg10[%c0_186, %c2176_187] : memref<8x3456xbf16, #tpu.memory_space<vmem>>, vector<8x128xbf16>
    tpu.vector_store %arg10[%c0_186, %c2176_187], %365 {strides = array<i32>} : memref<8x3456xbf16, #tpu.memory_space<vmem>>, vector<8x128xbf16>,
    %367 = vector.extract_strided_slice %312 {offsets = [144, 0], sizes = [8, 128], strides = [1, 1]} : vector<216x128xf32> to vector<8x128xf32>
    %368 = arith.truncf %367 : vector<8x128xf32> to vector<8x128xbf16>
    %c0_188 = arith.constant 0 : index
    %c2304_189 = arith.constant 2304 : index
    %369 = vector.load %arg10[%c0_188, %c2304_189] : memref<8x3456xbf16, #tpu.memory_space<vmem>>, vector<8x128xbf16>
    tpu.vector_store %arg10[%c0_188, %c2304_189], %368 {strides = array<i32>} : memref<8x3456xbf16, #tpu.memory_space<vmem>>, vector<8x128xbf16>,
    %370 = vector.extract_strided_slice %312 {offsets = [152, 0], sizes = [8, 128], strides = [1, 1]} : vector<216x128xf32> to vector<8x128xf32>
    %371 = arith.truncf %370 : vector<8x128xf32> to vector<8x128xbf16>
    %c0_190 = arith.constant 0 : index
    %c2432_191 = arith.constant 2432 : index
    %372 = vector.load %arg10[%c0_190, %c2432_191] : memref<8x3456xbf16, #tpu.memory_space<vmem>>, vector<8x128xbf16>
    tpu.vector_store %arg10[%c0_190, %c2432_191], %371 {strides = array<i32>} : memref<8x3456xbf16, #tpu.memory_space<vmem>>, vector<8x128xbf16>,
    %373 = vector.extract_strided_slice %312 {offsets = [160, 0], sizes = [8, 128], strides = [1, 1]} : vector<216x128xf32> to vector<8x128xf32>
    %374 = arith.truncf %373 : vector<8x128xf32> to vector<8x128xbf16>
    %c0_192 = arith.constant 0 : index
    %c2560_193 = arith.constant 2560 : index
    %375 = vector.load %arg10[%c0_192, %c2560_193] : memref<8x3456xbf16, #tpu.memory_space<vmem>>, vector<8x128xbf16>
    tpu.vector_store %arg10[%c0_192, %c2560_193], %374 {strides = array<i32>} : memref<8x3456xbf16, #tpu.memory_space<vmem>>, vector<8x128xbf16>,
    %376 = vector.extract_strided_slice %312 {offsets = [168, 0], sizes = [8, 128], strides = [1, 1]} : vector<216x128xf32> to vector<8x128xf32>
    %377 = arith.truncf %376 : vector<8x128xf32> to vector<8x128xbf16>
    %c0_194 = arith.constant 0 : index
    %c2688_195 = arith.constant 2688 : index
    %378 = vector.load %arg10[%c0_194, %c2688_195] : memref<8x3456xbf16, #tpu.memory_space<vmem>>, vector<8x128xbf16>
    tpu.vector_store %arg10[%c0_194, %c2688_195], %377 {strides = array<i32>} : memref<8x3456xbf16, #tpu.memory_space<vmem>>, vector<8x128xbf16>,
    %379 = vector.extract_strided_slice %312 {offsets = [176, 0], sizes = [8, 128], strides = [1, 1]} : vector<216x128xf32> to vector<8x128xf32>
    %380 = arith.truncf %379 : vector<8x128xf32> to vector<8x128xbf16>
    %c0_196 = arith.constant 0 : index
    %c2816_197 = arith.constant 2816 : index
    %381 = vector.load %arg10[%c0_196, %c2816_197] : memref<8x3456xbf16, #tpu.memory_space<vmem>>, vector<8x128xbf16>
    tpu.vector_store %arg10[%c0_196, %c2816_197], %380 {strides = array<i32>} : memref<8x3456xbf16, #tpu.memory_space<vmem>>, vector<8x128xbf16>,
    %382 = vector.extract_strided_slice %312 {offsets = [184, 0], sizes = [8, 128], strides = [1, 1]} : vector<216x128xf32> to vector<8x128xf32>
    %383 = arith.truncf %382 : vector<8x128xf32> to vector<8x128xbf16>
    %c0_198 = arith.constant 0 : index
    %c2944_199 = arith.constant 2944 : index
    %384 = vector.load %arg10[%c0_198, %c2944_199] : memref<8x3456xbf16, #tpu.memory_space<vmem>>, vector<8x128xbf16>
    tpu.vector_store %arg10[%c0_198, %c2944_199], %383 {strides = array<i32>} : memref<8x3456xbf16, #tpu.memory_space<vmem>>, vector<8x128xbf16>,
    %385 = vector.extract_strided_slice %312 {offsets = [192, 0], sizes = [8, 128], strides = [1, 1]} : vector<216x128xf32> to vector<8x128xf32>
    %386 = arith.truncf %385 : vector<8x128xf32> to vector<8x128xbf16>
    %c0_200 = arith.constant 0 : index
    %c3072_201 = arith.constant 3072 : index
    %387 = vector.load %arg10[%c0_200, %c3072_201] : memref<8x3456xbf16, #tpu.memory_space<vmem>>, vector<8x128xbf16>
    tpu.vector_store %arg10[%c0_200, %c3072_201], %386 {strides = array<i32>} : memref<8x3456xbf16, #tpu.memory_space<vmem>>, vector<8x128xbf16>,
    %388 = vector.extract_strided_slice %312 {offsets = [200, 0], sizes = [8, 128], strides = [1, 1]} : vector<216x128xf32> to vector<8x128xf32>
    %389 = arith.truncf %388 : vector<8x128xf32> to vector<8x128xbf16>
    %c0_202 = arith.constant 0 : index
    %c3200_203 = arith.constant 3200 : index
    %390 = vector.load %arg10[%c0_202, %c3200_203] : memref<8x3456xbf16, #tpu.memory_space<vmem>>, vector<8x128xbf16>
    tpu.vector_store %arg10[%c0_202, %c3200_203], %389 {strides = array<i32>} : memref<8x3456xbf16, #tpu.memory_space<vmem>>, vector<8x128xbf16>,
    %391 = vector.extract_strided_slice %312 {offsets = [208, 0], sizes = [8, 128], strides = [1, 1]} : vector<216x128xf32> to vector<8x128xf32>
    %392 = arith.truncf %391 : vector<8x128xf32> to vector<8x128xbf16>
    %c0_204 = arith.constant 0 : index
    %c3328_205 = arith.constant 3328 : index
    %393 = vector.load %arg10[%c0_204, %c3328_205] : memref<8x3456xbf16, #tpu.memory_space<vmem>>, vector<8x128xbf16>
    tpu.vector_store %arg10[%c0_204, %c3328_205], %392 {strides = array<i32>} : memref<8x3456xbf16, #tpu.memory_space<vmem>>, vector<8x128xbf16>,
    %c0_206 = arith.constant 0 : index
    %c0_207 = arith.constant 0 : index
    %394 = vector.load %arg10[%c0_206, %c0_207] : memref<8x3456xbf16, #tpu.memory_space<vmem>>, vector<8x3456xbf16>
    %c0_208 = arith.constant 0 : index
    %c0_209 = arith.constant 0 : index
    %395 = vector.load %arg9[%c0_208, %c0_209] : memref<3456x128xbf16, #tpu.memory_space<vmem>>, vector<3456x128xbf16>
    %cst_210 = arith.constant dense<0.000000e+00> : vector<8x128xf32>
    %396 = tpu.matmul %394, %395, %cst_210 {dimension_numbers = #tpu.dot_dimension_numbers<[1], [0], [0], [1], [0, 0, 1, 1], [], []>} : vector<8x3456xbf16>, vector<3456x128xbf16>, vector<8x128xf32> -> vector<8x128xf32>
    %c0_211 = arith.constant 0 : index
    %c0_212 = arith.constant 0 : index
    %397 = vector.load %arg6[%c0_211, %c0_212] : memref<8x8xbf16, #tpu.memory_space<vmem>>, vector<8x8xbf16>
    %cst_213 = arith.constant dense<0.000000e+00> : vector<8x128xf32>
    %398 = tpu.matmul %397, %1, %cst_213 {dimension_numbers = #tpu.dot_dimension_numbers<[1], [0], [0], [1], [0, 0, 1, 1], [], []>} : vector<8x8xbf16>, vector<8x128xbf16>, vector<8x128xf32> -> vector<8x128xf32>
    %399 = tpu.iota {dimensions = array<i32: 1>} : vector<8x128xi32>
    %400 = arith.addf %396, %398 : vector<8x128xf32>
    %c0_214 = arith.constant 0 : index
    %c1_215 = arith.constant 1 : index
    %401 = vector.load %arg7[%c0_214, %c1_215] : memref<8x2xf32, #tpu.memory_space<vmem>>, vector<8x1xf32>
    %402 = vector.broadcast %401 : vector<8x1xf32> to vector<8x128xf32>
    %403 = arith.addf %400, %402 : vector<8x128xf32>
    %cst_216 = arith.constant 0.000000e+00 : f32
    %404 = vector.broadcast %cst_216 : f32 to vector<8x128xf32>
    %405 = arith.maximumf %403, %404 : vector<8x128xf32>
    %406 = arith.index_cast %arg0 : i32 to index
    %407 = memref.load %arg1[%406] : memref<2xi32, #tpu.memory_space<smem>>
    %408 = vector.broadcast %407 : i32 to vector<8x128xi32>
    %409 = arith.cmpi slt, %399, %408 : vector<8x128xi32>
    %cst_217 = arith.constant 0.000000e+00 : f32
    %410 = vector.broadcast %cst_217 : f32 to vector<8x128xf32>
    %411 = arith.select %409, %405, %410 : vector<8x128xi1>, vector<8x128xf32>
    %c0_218 = arith.constant 0 : index
    %c0_219 = arith.constant 0 : index
    %c0_220 = arith.constant 0 : index
    %412 = vector.load %arg8[%c0_218, %c0_219, %c0_220] : memref<1x8x128xf32, #tpu.memory_space<vmem>>, vector<1x8x128xf32>
    %413 = vector.shape_cast %412 : vector<1x8x128xf32> to vector<8x128xf32>
    %414 = vector.shape_cast %411 : vector<8x128xf32> to vector<1x8x128xf32>
    tpu.vector_store %arg8[%c0_218, %c0_219, %c0_220], %414 {strides = array<i32>} : memref<1x8x128xf32, #tpu.memory_space<vmem>>, vector<1x8x128xf32>,
    return
  }
  func.func @transform_0(%arg0: i32, %arg1: memref<2xi32, #tpu.memory_space<smem>>) -> (i32, i32, i32) {
    %c0_i32 = arith.constant 0 : i32
    %c0_i32_0 = arith.constant 0 : i32
    %c0_i32_1 = arith.constant 0 : i32
    return %arg0, %c0_i32, %c0_i32_0 : i32, i32, i32
  }
  func.func @transform_1(%arg0: i32, %arg1: memref<2xi32, #tpu.memory_space<smem>>) -> (i32, i32, i32) {
    %c0_i32 = arith.constant 0 : i32
    %c0_i32_0 = arith.constant 0 : i32
    %c0_i32_1 = arith.constant 0 : i32
    return %arg0, %c0_i32, %c0_i32_0 : i32, i32, i32
  }
  func.func @transform_2(%arg0: i32, %arg1: memref<2xi32, #tpu.memory_space<smem>>) -> (i32, i32) {
    %c0_i32 = arith.constant 0 : i32
    %c0_i32_0 = arith.constant 0 : i32
    %c0_i32_1 = arith.constant 0 : i32
    return %c0_i32, %c0_i32_0 : i32, i32
  }
  func.func @transform_3(%arg0: i32, %arg1: memref<2xi32, #tpu.memory_space<smem>>) -> (i32, i32) {
    %c0_i32 = arith.constant 0 : i32
    %c0_i32_0 = arith.constant 0 : i32
    %c0_i32_1 = arith.constant 0 : i32
    return %c0_i32, %c0_i32_0 : i32, i32
  }
  func.func @transform_4(%arg0: i32, %arg1: memref<2xi32, #tpu.memory_space<smem>>) -> (i32, i32) {
    %c0_i32 = arith.constant 0 : i32
    %c0_i32_0 = arith.constant 0 : i32
    %c0_i32_1 = arith.constant 0 : i32
    return %c0_i32, %c0_i32_0 : i32, i32
  }
  func.func @transform_5(%arg0: i32, %arg1: memref<2xi32, #tpu.memory_space<smem>>) -> (i32, i32) {
    %c0_i32 = arith.constant 0 : i32
    %c0_i32_0 = arith.constant 0 : i32
    %c0_i32_1 = arith.constant 0 : i32
    return %c0_i32, %c0_i32_0 : i32, i32
  }
  func.func @transform_6(%arg0: i32, %arg1: memref<2xi32, #tpu.memory_space<smem>>) -> (i32, i32, i32) {
    %c0_i32 = arith.constant 0 : i32
    %c0_i32_0 = arith.constant 0 : i32
    %c0_i32_1 = arith.constant 0 : i32
    return %arg0, %c0_i32, %c0_i32_0 : i32, i32, i32
  }
}

</mosaic_0001>

<bundles_post_ra>
// kernel: tpu_custom_call.1
= control target key start
LH: loop header
LB: loop body
LE: loop exit
PB: predicated region body
PF: predicated region fallthrough
CT: control target
= control target key end

     0   :  { %s11491_s27 = smov [#allocation5]   ;;  %s13236_s0 = inlined_call_operand.vmem [shape: s32[2], index: 0, kind: input, shape index: {}]   ;;  %s13237_s1 = inlined_call_operand.vmem [shape: s32[2,27,128], index: 1, kind: input, shape index: {}]   ;;  %s13238_s2 = inlined_call_operand.vmem [shape: bf16[2,8,128], index: 2, kind: input, shape index: {}]   ;;  %s13239_s3 = inlined_call_operand.vmem [shape: bf16[216,8], index: 3, kind: input, shape index: {}]   ;;  %s13240_s4 = inlined_call_operand.vmem [shape: bf16[216,8], index: 4, kind: input, shape index: {}]   ;;  %s13241_s5 = inlined_call_operand.vmem [shape: bf16[8,8], index: 5, kind: input, shape index: {}]   ;;  %s13242_s6 = inlined_call_operand.vmem [shape: f32[8,2], index: 6, kind: input, shape index: {}]   ;;  %s13243_s7 = inlined_call_operand.hbm [shape: f32[2,8,128], index: 7, kind: output, shape index: {}]  }
   0x1   :  { %s13_s26 = sshll.u32 %s13236_s0, 4  ;;  %s14_s26 = int_to_ptr.vmem [resolvable:$true] %s13_s26 }
   0x2   :  { %16 = dma.vmem_to_smem %s14_s26, 16, %s11491_s27, [#allocation4] }
   0x3   :  { %11469 = dma.done.wait [#allocation4], 16 }
   0x4   :  { %11470 = vsyncadd [#allocation4], 4294967280 }
   0x5   :  { %19 = sfence }
   0x6   :  { %20 = vsyncpa [#allocation7], 0 }
   0x7   :  { %22 = vsyncpa [#allocation7 + $0x1], 0  ;;  %s11538_s28 = smov 0   ;;  %s11540_s29 = smov 0  }
   0x8   :  { %s11542_s30 = smov 0   ;;  %s11544_s8 = smov 0  }
   0x9 LB: > { %s11559_s0 = sadd.s32 4294967295, %s11489_s8   ;;  %s7558_s9 = sadd.s32 4294967294, %s11489_s8   ;;  %s11489_s8 = sphi %s11544_s8, %s13249_s8   ;;  %s11485_s30 = sphi %s11542_s30, %s13248_s30   ;;  %s11481_s29 = sphi %s11540_s29, %s13247_s29   ;;  %s11477_s28 = sphi %s11538_s28, %s13246_s28  }
   0xa   : > { %s11563_s10 = sadd.s32 1, %s11489_s8   ;;  %s171_s11 = sadd.s32 1, %s11485_s30 }
   0xb   : > { %s168_s12 = ssub.s32 %s11489_s8, %s11563_s10  ;;  %p181_p0 = scmp.ne.s32.totalorder %s11485_s30, %s11481_s29 }
   0xc   : > { %p169_p1 = scmp.eq.s32.totalorder %s168_s12, 0  ;;  %p182_p2 = scmp.eq.s32.totalorder %s11559_s0, 1 }
   0xd   : > { %p187_p3 = scmp.ne.s32.totalorder %s11481_s29, %s11477_s28  ;;  %p188_p4 = scmp.eq.s32.totalorder %s7558_s9, 1 }
   0xe   : > { %s11574_s13 = scalar_select %p169_p1, %s11485_s30, %s171_s11  }
   0xf   : > { %p11576_p5 = por %p182_p2, %p181_p0  ;;  %p11580_p6 = por %p188_p4, %p187_p3 }
  0x10   : > { %p7561_p7 = scmp.ge.s32.totalorder %s11489_s8, 1  ;;  %p233_p8 = scmp.lt.s32.totalorder %s11489_s8, 3 }
  0x12   : > { %p234_p9 = pnand %p7561_p7, %p233_p8 }
  0x13   : > { %p267_p10 = scmp.lt.s32.totalorder (!%p234_p9), %s11559_s0, 1  ;;  %s7466_s9 = sld [smem:[#allocation5 + %s11559_s0]] (!%p234_p9) }
  0x14   : > { %237 = sbr.rel (%p234_p9) target bundleno = 1040 (0x410), region = 44  ;;  %s264_s11 = sand.u32 (!%p234_p9), 1, %s11481_s29  }
  0x15   : > { %s7562_s12 = sshll.u32 (!%p234_p9), %s264_s11, 3  ;;  %s11445_s27 = scalar_lea.hbm (!%p234_p9), %s13243_s7, 16 }
  0x16   : > { %s266_s20 = scalar_lea.vmem (!%p234_p9), [#allocation6], %s7562_s12 }
  0x17   : > { %s7484_s22 = sshll.u32 (!%p234_p9), %s266_s20, 4  ;;  %s7485_s22 = int_to_ptr.vmem [resolvable:$true] %s7484_s22 }
  0x19   : > { %s268_s16 = scalar_select %p267_p10, %s11559_s0, 1  ;;  %vm2647_vm0 = vcmask 1043456   ;;  %v9864_v0 = vld [vmem:[%s13239_s3] sm:$0xff]  ;;  %vm2604_vm1 = vcmask 64512   ;;  %v9865_v3 = vld [vmem:[%s13239_s3 + $0x8] sm:$0xff]  ;;  %v9866_v4 = vld [vmem:[%s13239_s3 + $0x10] sm:$0xff]  ;;  %v278_v5 = vlaneseq }
  0x1a   : > { %v11492_v10 = vmov 0.0   ;;  %v9867_v25 = vld [vmem:[%s13239_s3 + $0x18] sm:$0xff] }
  0x1b   : > { %s9863_s17 = sshll.u32 %s268_s16, 5  ;;  %s7565_s18 = sshll.u32 %s268_s16, 2  ;;  %v11613_v6 = vshrl.u32 %v278_v5, 7 }
  0x1c   : > { %s11591_s21 = scalar_lea.vmem %s13237_s1, %s9863_s17  ;;  %s275_s24 = scalar_lea.vmem %s13238_s2, %s7565_s18 }
  0x1d   : > { %v277_v1 = vld [vmem:[%s275_s24] sm:$0xf]  ;;  %v11616_v7 = vadd.s32 112, %v11613_v6  ;;  %v11619_v8 = vadd.s32 120, %v11613_v6  ;;  %v11634_v15 = vadd.s32 96, %v11613_v6  ;;  %v11637_v16 = vadd.s32 104, %v11613_v6 }
  0x1e   : > { %v11600_v2 = vsel %vm2647_vm0, %v277_v1, 0  ;;  %v11622_v9 = vld [vmem:[%s11591_s21] ss:$0 sm:$0xff]  ;;  %v11631_v13 = vld [vmem:[%s11591_s21 + $0x1] ss:$0 sm:$0xff]  ;;  %v11652_v23 = vadd.s32 80, %v11613_v6 }
  0x1f   : > { %2658 = vmatpush.bf16.msra.mxu0 %v11600_v2  ;;  %vm311_vm2 = vcmp.eq.s32.totalorder %v11616_v7, %v11622_v9  ;;  %vm312_vm3 = vcmp.eq.s32.totalorder %v11619_v8, %v11622_v9  ;;  %vm393_vm4 = vcmp.eq.s32.totalorder %v11616_v7, %v11631_v13  ;;  %vm394_vm5 = vcmp.eq.s32.totalorder %v11619_v8, %v11631_v13  ;;  %v11698_v44 = vld [vmem:[%s11591_s21 + $0x2] ss:$0 sm:$0xff]  ;;  %s9860_s16 = sshll.u32 %s11559_s0, 3  ;;  %s7472_s0 = scalar_lea.sflag [#allocation7], %s264_s11 }
  0x20   : > { %v7580_v11 = vsel %vm311_vm2, 1.0, %v11492_v10  ;;  %v7581_v12 = vsel %vm312_vm3, 1.0, %v11492_v10  ;;  %v7596_v17 = vsel %vm393_vm4, 1.0, %v11492_v10  ;;  %v7597_v18 = vsel %vm394_vm5, 1.0, %v11492_v10  ;;  %s7482_s19 = scalar_lea.hbm %s13243_s7, %s9860_s16 }
  0x21   : > { %v10344_v14 = vpack.c.bf16 %v7581_v12, %v7580_v11  ;;  %vm309_vm6 = vcmp.eq.s32.totalorder %v11634_v15, %v11622_v9  ;;  %vm310_vm7 = vcmp.eq.s32.totalorder %v11637_v16, %v11622_v9  ;;  %v10368_v19 = vpack.c.bf16 %v7597_v18, %v7596_v17  ;;  %s7486_s23 = sshll.u32 %s7482_s19, 4  ;;  %s7487_s23 = int_to_ptr.hbm [resolvable:$true] %s7486_s23 }
  0x22   : > { %8050 = vmatmul.msk.bf16.vlgmr.msra.gmra.mxu0 %vm2604_vm1, %v9864_v0  ;;  %v7578_v20 = vsel %vm309_vm6, 1.0, %v11492_v10  ;;  %v7579_v21 = vsel %vm310_vm7, 1.0, %v11492_v10  ;;  %v11655_v24 = vadd.s32 88, %v11613_v6  ;;  %vm391_vm8 = vcmp.eq.s32.totalorder %v11634_v15, %v11631_v13  ;;  %s11439_s24 = sshra.s32 %s7487_s23, 4  ;;  %s11440_s24 = int_to_ptr.hbm [resolvable:$true] %s11439_s24 }
  0x23   : > { %11106 = vst [vmem:[#allocation2 + $0x378] sm:$0xff] %v10344_v14   ;;  %v10341_v22 = vpack.c.bf16 %v7579_v21, %v7578_v20  ;;  %vm392_vm9 = vcmp.eq.s32.totalorder %v11637_v16, %v11631_v13  ;;  %v7594_v26 = vsel %vm391_vm8, 1.0, %v11492_v10  ;;  %vm307_vm10 = vcmp.eq.s32.totalorder %v11652_v23, %v11622_v9  ;;  %s11441_s25 = scalar_lea.hbm %s11440_s24, 8  ;;  %p11446_p0 = scmp.lt.s32.totalorder %s11440_s24, %s13243_s7 }
  0x24   : > { %11114 = vst [vmem:[#allocation2 + $0x2b8] sm:$0xff] %v10368_v19   ;;  %v7595_v27 = vsel %vm392_vm9, 1.0, %v11492_v10  ;;  %vm308_vm11 = vcmp.eq.s32.totalorder %v11655_v24, %v11622_v9  ;;  %v7576_v29 = vsel %vm307_vm10, 1.0, %v11492_v10  ;;  %v11673_v32 = vadd.s32 64, %v11613_v6  ;;  %p11442_p11 = scmp.ne.s32.totalorder %s11440_s24, %s11441_s25  ;;  %p11447_p1 = scmp.lt.s32.totalorder %s11445_s27, %s11441_s25 }
  0x25   : > { %11105 = vst [vmem:[#allocation2 + $0x440] sm:$0xff] %v10341_v22   ;;  %v10365_v28 = vpack.c.bf16 %v7595_v27, %v7594_v26  ;;  %v7577_v30 = vsel %vm308_vm11, 1.0, %v11492_v10  ;;  %v11676_v33 = vadd.s32 72, %v11613_v6  ;;  %vm389_vm12 = vcmp.eq.s32.totalorder %v11652_v23, %v11631_v13 }
  0x26   : > { %v10338_v31 = vpack.c.bf16 %v7577_v30, %v7576_v29  ;;  %vm390_vm13 = vcmp.eq.s32.totalorder %v11655_v24, %v11631_v13  ;;  %v7592_v35 = vsel %vm389_vm12, 1.0, %v11492_v10  ;;  %vm305_vm14 = vcmp.eq.s32.totalorder %v11673_v32, %v11622_v9  ;;  %p11443_p12 = pnand %p11442_p11, %p11576_p5  ;;  %p11448_p2 = por %p11447_p1, %p11446_p0 }
  0x27   : > { %11113 = vst [vmem:[#allocation2 + $0x58] sm:$0xff] %v10365_v28   ;;  %v7593_v36 = vsel %vm390_vm13, 1.0, %v11492_v10  ;;  %vm306_vm15 = vcmp.eq.s32.totalorder %v11676_v33, %v11622_v9  ;;  %v7574_v38 = vsel %vm305_vm14, 1.0, %v11492_v10  ;;  %v11692_v42 = vadd.s32 48, %v11613_v6 }
  0x28   : > { %11104 = vst [vmem:[#allocation2 + $0x328] sm:$0xff] %v10338_v31   ;;  %v10362_v37 = vpack.c.bf16 %v7593_v36, %v7592_v35  ;;  %v7575_v39 = vsel %vm306_vm15, 1.0, %v11492_v10  ;;  %v11695_v43 = vadd.s32 56, %v11613_v6  ;;  %vm387_vm2 = vcmp.eq.s32.totalorder %v11673_v32, %v11631_v13  ;;  %v11777_v36 = vld [vmem:[%s11591_s21 + $0x3] ss:$0 sm:$0xff]  ;;  %p11444_p13 = pneg %p11443_p12 }
  0x29   : > { %v10335_v41 = vpack.c.bf16 %v7575_v39, %v7574_v38  ;;  %vm388_vm3 = vcmp.eq.s32.totalorder %v11676_v33, %v11631_v13  ;;  %v7590_v46 = vsel %vm387_vm2, 1.0, %v11492_v10  ;;  %vm303_vm4 = vcmp.eq.s32.totalorder %v11692_v42, %v11622_v9 }
  0x2a   : > { %v9884_v34 = vld [vmem:[#allocation2 + $0x378] sm:$0xff]  ;;  %11112 = vst [vmem:[#allocation2 + $0x500] sm:$0xff] %v10362_v37   ;;  %v7591_v47 = vsel %vm388_vm3, 1.0, %v11492_v10  ;;  %vm304_vm5 = vcmp.eq.s32.totalorder %v11695_v43, %v11622_v9  ;;  %v7572_v49 = vsel %vm303_vm4, 1.0, %v11492_v10  ;;  %vm475_vm6 = vcmp.eq.s32.totalorder %v11616_v7, %v11698_v44  ;;  %p11449_p3 = pnand %p11448_p2, %p11444_p13 }
  0x2b   : > { %4626 = vmatpush.bf16.msra.mxu1 %v9884_v34  ;;  %v9892_v40 = vld [vmem:[#allocation2 + $0x2b8] sm:$0xff]  ;;  %11103 = vst [vmem:[#allocation2 + $0x450] sm:$0xff] %v10335_v41   ;;  %v10359_v48 = vpack.c.bf16 %v7591_v47, %v7590_v46  ;;  %v7573_v50 = vsel %vm304_vm5, 1.0, %v11492_v10  ;;  %vm476_vm7 = vcmp.eq.s32.totalorder %v11619_v8, %v11698_v44  ;;  %v7612_v53 = vsel %vm475_vm6, 1.0, %v11492_v10  ;;  %v11793_v46 = vld [vmem:[%s11591_s21 + $0x4] ss:$0 sm:$0xff] }
  0x2c   : > { %v9883_v45 = vld [vmem:[#allocation2 + $0x440] sm:$0xff]  ;;  %4639 = vmatpush.bf16.msra.mxu2 %v9892_v40  ;;  %v10332_v52 = vpack.c.bf16 %v7573_v50, %v7572_v49  ;;  %v11718_v54 = vadd.s32 32, %v11613_v6  ;;  %v7613_v56 = vsel %vm476_vm7, 1.0, %v11492_v10  ;;  %vm385_vm8 = vcmp.eq.s32.totalorder %v11692_v42, %v11631_v13 }
  0x2d   : > { %11111 = vst [vmem:[#allocation2 + $0x548] sm:$0xff] %v10359_v48   ;;  %vm386_vm9 = vcmp.eq.s32.totalorder %v11695_v43, %v11631_v13  ;;  %v11726_v57 = vadd.s32 40, %v11613_v6  ;;  %v10392_v58 = vpack.c.bf16 %v7613_v56, %v7612_v53  ;;  %v7588_v59 = vsel %vm385_vm8, 1.0, %v11492_v10 }
  0x2e   : > { %v9891_v51 = vld [vmem:[#allocation2 + $0x58] sm:$0xff]  ;;  %11102 = vst [vmem:[#allocation2 + $0x18] sm:$0xff] %v10332_v52   ;;  %v7589_v60 = vsel %vm386_vm9, 1.0, %v11492_v10  ;;  %vm301_vm10 = vcmp.eq.s32.totalorder %v11718_v54, %v11622_v9  ;;  %vm473_vm12 = vcmp.eq.s32.totalorder %v11634_v15, %v11698_v44  ;;  %vm474_vm13 = vcmp.eq.s32.totalorder %v11637_v16, %v11698_v44 }
  0x2f   : > { %4627 = vmatpush.bf16.msra.mxu1 %v9883_v45  ;;  %v9882_v55 = vld [vmem:[#allocation2 + $0x328] sm:$0xff]  ;;  %v10356_v61 = vpack.c.bf16 %v7589_v60, %v7588_v59  ;;  %vm302_vm11 = vcmp.eq.s32.totalorder %v11726_v57, %v11622_v9  ;;  %v7570_v62 = vsel %vm301_vm10, 1.0, %v11492_v10  ;;  %11122 = vst [vmem:[#allocation2 + $0x3b8] sm:$0xff] %v10392_v58   ;;  %v7610_v1 = vsel %vm473_vm12, 1.0, %v11492_v10 }
  0x30   : > { %4640 = vmatpush.bf16.msra.mxu2 %v9891_v51  ;;  %v7571_v0 = vsel %vm302_vm11, 1.0, %v11492_v10  ;;  %v7611_v14 = vsel %vm474_vm13, 1.0, %v11492_v10  ;;  %vm383_vm14 = vcmp.eq.s32.totalorder %v11718_v54, %v11631_v13  ;;  %vm384_vm15 = vcmp.eq.s32.totalorder %v11726_v57, %v11631_v13 }
  0x31   : > { %v9890_v63 = vld [vmem:[#allocation2 + $0x500] sm:$0xff]  ;;  %11110 = vst [vmem:[#allocation2 + $0x318] sm:$0xff] %v10356_v61   ;;  %v10329_v12 = vpack.c.bf16 %v7571_v0, %v7570_v62  ;;  %v10389_v17 = vpack.c.bf16 %v7611_v14, %v7610_v1  ;;  %v7586_v18 = vsel %vm383_vm14, 1.0, %v11492_v10  ;;  %v7587_v19 = vsel %vm384_vm15, 1.0, %v11492_v10 }
  0x32   : > { %8051 = vmatmul.msk.bf16.gmra.mxu0 %vm2604_vm1, %v9865_v3  ;;  %v11742_v3 = vadd.s32 16, %v11613_v6  ;;  %v9881_v11 = vld [vmem:[#allocation2 + $0x450] sm:$0xff]  ;;  %v11755_v20 = vadd.s32 24, %v11613_v6  ;;  %v10353_v21 = vpack.c.bf16 %v7587_v19, %v7586_v18  ;;  %vm471_vm3 = vcmp.eq.s32.totalorder %v11652_v23, %v11698_v44  ;;  %v9869_v18 = vld [vmem:[%s13239_s3 + $0x28] sm:$0xff] }
  0x33   : > { %4628 = vmatpush.bf16.msra.mxu1 %v9882_v55  ;;  %11101 = vst [vmem:[#allocation2 + $0x4d8] sm:$0xff] %v10329_v12   ;;  %vm472_vm5 = vcmp.eq.s32.totalorder %v11655_v24, %v11698_v44  ;;  %v7608_v26 = vsel %vm471_vm3, 1.0, %v11492_v10  ;;  %v11780_v39 = vadd.s32 8, %v11613_v6  ;;  %vm297_vm8 = vcmp.eq.s32.totalorder %v11613_v6, %v11622_v9 }
  0x34   : > { %4641 = vmatpush.bf16.msra.mxu2 %v9890_v63  ;;  %vm299_vm2 = vcmp.eq.s32.totalorder %v11742_v3, %v11622_v9  ;;  %v9889_v22 = vld [vmem:[#allocation2 + $0x548] sm:$0xff]  ;;  %11121 = vst [vmem:[#allocation2 + $0x40] sm:$0xff] %v10389_v17   ;;  %vm300_vm4 = vcmp.eq.s32.totalorder %v11755_v20, %v11622_v9  ;;  %v7609_v29 = vsel %vm472_vm5, 1.0, %v11492_v10  ;;  %vm381_vm6 = vcmp.eq.s32.totalorder %v11742_v3, %v11631_v13 }
  0x35   : > { %v9880_v27 = vld [vmem:[#allocation2 + $0x18] sm:$0xff]  ;;  %11109 = vst [vmem:[#allocation2 + $0x490] sm:$0xff] %v10353_v21   ;;  %v7569_v28 = vsel %vm300_vm4, 1.0, %v11492_v10  ;;  %vm382_vm7 = vcmp.eq.s32.totalorder %v11755_v20, %v11631_v13  ;;  %v10386_v31 = vpack.c.bf16 %v7609_v29, %v7608_v26  ;;  %v7584_v34 = vsel %vm381_vm6, 1.0, %v11492_v10 }
  0x36   : > { %v7585_v35 = vsel %vm382_vm7, 1.0, %v11492_v10  ;;  %v9900_v37 = vld [vmem:[#allocation2 + $0x3b8] sm:$0xff]  ;;  %vm469_vm9 = vcmp.eq.s32.totalorder %v11673_v32, %v11698_v44  ;;  %v7566_v41 = vsel %vm297_vm8, 1.0, %v11492_v10  ;;  %vm470_vm10 = vcmp.eq.s32.totalorder %v11676_v33, %v11698_v44 }
  0x37   : > { %4629 = vmatpush.bf16.msra.mxu1 %v9881_v11  ;;  %v10350_v38 = vpack.c.bf16 %v7585_v35, %v7584_v34  ;;  %v7606_v45 = vsel %vm469_vm9, 1.0, %v11492_v10  ;;  %vm557_vm11 = vcmp.eq.s32.totalorder %v11616_v7, %v11777_v36  ;;  %4652 = vmatpush.bf16.msra.mxu3 %v9900_v37  ;;  %11120 = vst [vmem:[#allocation2 + $0x338] sm:$0xff] %v10386_v31   ;;  %v7607_v47 = vsel %vm470_vm10, 1.0, %v11492_v10 }
  0x38   : > { %4642 = vmatpush.bf16.msra.mxu2 %v9889_v22  ;;  %v9888_v40 = vld [vmem:[#allocation2 + $0x318] sm:$0xff]  ;;  %vm298_vm12 = vcmp.eq.s32.totalorder %v11780_v39, %v11622_v9  ;;  %vm558_vm13 = vcmp.eq.s32.totalorder %v11619_v8, %v11777_v36  ;;  %v7628_v48 = vsel %vm557_vm11, 1.0, %v11492_v10  ;;  %v10383_v51 = vpack.c.bf16 %v7607_v47, %v7606_v45 }
  0x39   : > { %11108 = vst [vmem:[#allocation2 + $0x510] sm:$0xff] %v10350_v38   ;;  %v7567_v50 = vsel %vm298_vm12, 1.0, %v11492_v10  ;;  %v7629_v52 = vsel %vm558_vm13, 1.0, %v11492_v10  ;;  %vm379_vm14 = vcmp.eq.s32.totalorder %v11613_v6, %v11631_v13  ;;  %vm380_vm15 = vcmp.eq.s32.totalorder %v11780_v39, %v11631_v13 }
  0x3a   : > { %v9879_v49 = vld [vmem:[#allocation2 + $0x4d8] sm:$0xff]  ;;  %v10323_v9 = vpack.c.bf16 %v7567_v50, %v7566_v41  ;;  %v10416_v55 = vpack.c.bf16 %v7629_v52, %v7628_v48  ;;  %v7582_v56 = vsel %vm379_vm14, 1.0, %v11492_v10  ;;  %11119 = vst [vmem:[#allocation2 + $0x660] sm:$0xff] %v10383_v51   ;;  %v7583_v59 = vsel %vm380_vm15, 1.0, %v11492_v10 }
  0x3b   : > { %4630 = vmatpush.bf16.msra.mxu1 %v9880_v27  ;;  %v9899_v53 = vld [vmem:[#allocation2 + $0x40] sm:$0xff]  ;;  %vm468_vm3 = vcmp.eq.s32.totalorder %v11695_v43, %v11698_v44  ;;  %vm639_vm4 = vcmp.eq.s32.totalorder %v11616_v7, %v11793_v46  ;;  %v10347_v60 = vpack.c.bf16 %v7583_v59, %v7582_v56  ;;  %vm640_vm5 = vcmp.eq.s32.totalorder %v11619_v8, %v11793_v46 }
  0x3c   : > { %4643 = vmatpush.bf16.msra.mxu2 %v9888_v40  ;;  %v9887_v58 = vld [vmem:[#allocation2 + $0x490] sm:$0xff]  ;;  %4653 = vmatpush.bf16.msra.mxu3 %v9899_v53  ;;  %10324 = vst [vmem:[#allocation2 + $0x2b0] sm:$0xff] %v10323_v9   ;;  %v7605_v61 = vsel %vm468_vm3, 1.0, %v11492_v10  ;;  %v7644_v63 = vsel %vm639_vm4, 1.0, %v11492_v10  ;;  %v7645_v0 = vsel %vm640_vm5, 1.0, %v11492_v10  ;;  %vm555_vm6 = vcmp.eq.s32.totalorder %v11634_v15, %v11777_v36 }
  0x3d   : > { %11130 = vst [vmem:[#allocation2 + $0x50] sm:$0xff] %v10416_v55   ;;  %vm556_vm7 = vcmp.eq.s32.totalorder %v11637_v16, %v11777_v36  ;;  %v7626_v11 = vsel %vm555_vm6, 1.0, %v11492_v10  ;;  %vm465_vm8 = vcmp.eq.s32.totalorder %v11718_v54, %v11698_v44  ;;  %vm466_vm9 = vcmp.eq.s32.totalorder %v11726_v57, %v11698_v44  ;;  %v11857_v40 = vld [vmem:[%s11591_s21 + $0x15] ss:$0 sm:$0xff]  ;;  %v11879_v59 = vld [vmem:[%s11591_s21 + $0x5] ss:$0 sm:$0xff] }
  0x3e   : > { %11107 = vst [vmem:[#allocation2 + $0x108] sm:$0xff] %v10347_v60   ;;  %v9898_v12 = vld [vmem:[#allocation2 + $0x338] sm:$0xff]  ;;  %v7627_v14 = vsel %vm556_vm7, 1.0, %v11492_v10  ;;  %v7602_v17 = vsel %vm465_vm8, 1.0, %v11492_v10  ;;  %vm637_vm10 = vcmp.eq.s32.totalorder %v11634_v15, %v11793_v46  ;;  %v7603_v22 = vsel %vm466_vm9, 1.0, %v11492_v10 }
  0x3f   : > { %4631 = vmatpush.bf16.msra.mxu1 %v9879_v49  ;;  %v10413_v21 = vpack.c.bf16 %v7627_v14, %v7626_v11  ;;  %vm638_vm11 = vcmp.eq.s32.totalorder %v11637_v16, %v11793_v46  ;;  %v10377_v26 = vpack.c.bf16 %v7603_v22, %v7602_v17  ;;  %vm553_vm12 = vcmp.eq.s32.totalorder %v11652_v23, %v11777_v36 }
  0x40   : > { %4644 = vmatpush.bf16.msra.mxu2 %v9887_v58  ;;  %v9886_v19 = vld [vmem:[#allocation2 + $0x510] sm:$0xff]  ;;  %4654 = vmatpush.bf16.msra.mxu3 %v9898_v12  ;;  %v7643_v27 = vsel %vm638_vm11, 1.0, %v11492_v10  ;;  %vm554_vm13 = vcmp.eq.s32.totalorder %v11655_v24, %v11777_v36  ;;  %vm463_vm14 = vcmp.eq.s32.totalorder %v11742_v3, %v11698_v44  ;;  %vm464_vm15 = vcmp.eq.s32.totalorder %v11755_v20, %v11698_v44 }
  0x41   : > { %11129 = vst [vmem:[#allocation2 + $0x5e8] sm:$0xff] %v10413_v21   ;;  %v7625_v31 = vsel %vm554_vm13, 1.0, %v11492_v10  ;;  %v7600_v37 = vsel %vm463_vm14, 1.0, %v11492_v10  ;;  %v7601_v41 = vsel %vm464_vm15, 1.0, %v11492_v10  ;;  %vm636_vm3 = vcmp.eq.s32.totalorder %v11655_v24, %v11793_v46 }
  0x42   : > { %8052 = vmatmul.msk.bf16.gmra.mxu0 %vm2604_vm1, %v9866_v4  ;;  %v9868_v4 = vld [vmem:[%s13239_s3 + $0x20] sm:$0xff]  ;;  %11117 = vst [vmem:[#allocation2 + $0x540] sm:$0xff] %v10377_v26   ;;  %vm551_vm4 = vcmp.eq.s32.totalorder %v11673_v32, %v11777_v36  ;;  %v10374_v48 = vpack.c.bf16 %v7601_v41, %v7600_v37  ;;  %v7641_v49 = vsel %vm636_vm3, 1.0, %v11492_v10  ;;  %vm552_vm5 = vcmp.eq.s32.totalorder %v11676_v33, %v11777_v36 }
  0x43   : > { %v9877_v34 = vld [vmem:[#allocation2 + $0x2b0] sm:$0xff]  ;;  %v7622_v50 = vsel %vm551_vm4, 1.0, %v11492_v10  ;;  %vm2033_vm6 = vcmp.eq.s32.totalorder %v11616_v7, %v11857_v40  ;;  %vm2034_vm7 = vcmp.eq.s32.totalorder %v11619_v8, %v11857_v40  ;;  %v7623_v53 = vsel %vm552_vm5, 1.0, %v11492_v10 }
  0x44   : > { %4645 = vmatpush.bf16.msra.mxu2 %v9886_v19  ;;  %v9908_v38 = vld [vmem:[#allocation2 + $0x50] sm:$0xff]  ;;  %v7916_v55 = vsel %vm2033_vm6, 1.0, %v11492_v10  ;;  %v7917_v56 = vsel %vm2034_vm7, 1.0, %v11492_v10  ;;  %11116 = vst [vmem:[#allocation2 + $0x590] sm:$0xff] %v10374_v48   ;;  %v10407_v58 = vpack.c.bf16 %v7623_v53, %v7622_v50  ;;  %vm461_vm8 = vcmp.eq.s32.totalorder %v11613_v6, %v11698_v44 }
  0x45   : > { %v9885_v47 = vld [vmem:[#allocation2 + $0x108] sm:$0xff]  ;;  %v10848_v60 = vpack.c.bf16 %v7917_v56, %v7916_v55  ;;  %vm462_vm9 = vcmp.eq.s32.totalorder %v11780_v39, %v11698_v44  ;;  %vm634_vm11 = vcmp.eq.s32.totalorder %v11676_v33, %v11793_v46  ;;  %vm550_vm13 = vcmp.eq.s32.totalorder %v11695_v43, %v11777_v36 }
  0x46   : > { %11127 = vst [vmem:[#allocation2 + $0x528] sm:$0xff] %v10407_v58   ;;  %v7621_v14 = vsel %vm550_vm13, 1.0, %v11492_v10  ;;  %vm721_vm14 = vcmp.eq.s32.totalorder %v11616_v7, %v11879_v59  ;;  %vm722_vm15 = vcmp.eq.s32.totalorder %v11619_v8, %v11879_v59  ;;  %vm632_vm3 = vcmp.eq.s32.totalorder %v11695_v43, %v11793_v46 }
  0x47   : > { %11274 = vst [vmem:[#allocation2 + $0x520] sm:$0xff] %v10848_v60   ;;  %v7660_v19 = vsel %vm721_vm14, 1.0, %v11492_v10  ;;  %v7661_v21 = vsel %vm722_vm15, 1.0, %v11492_v10  ;;  %vm547_vm4 = vcmp.eq.s32.totalorder %v11718_v54, %v11777_v36  ;;  %vm548_vm5 = vcmp.eq.s32.totalorder %v11726_v57, %v11777_v36  ;;  %v11946_v60 = vld [vmem:[%s11591_s21 + $0x6] ss:$0 sm:$0xff] }
  0x48   : > { %4646 = vmatpush.bf16.msra.mxu2 %v9885_v47  ;;  %v10464_v22 = vpack.c.bf16 %v7661_v21, %v7660_v19  ;;  %vm719_vm6 = vcmp.eq.s32.totalorder %v11634_v15, %v11879_v59  ;;  %vm720_vm7 = vcmp.eq.s32.totalorder %v11637_v16, %v11879_v59  ;;  %vm718_vm13 = vcmp.eq.s32.totalorder %v11655_v24, %v11879_v59 }
  0x49   : > { %v7659_v41 = vsel %vm720_vm7, 1.0, %v11492_v10  ;;  %v7657_v58 = vsel %vm718_vm13, 1.0, %v11492_v10  ;;  %vm627_vm14 = vcmp.eq.s32.totalorder %v11742_v3, %v11793_v46  ;;  %vm628_vm15 = vcmp.eq.s32.totalorder %v11755_v20, %v11793_v46 }
  0x4a   : > { %11146 = vst [vmem:[#allocation2 + $0xa0] sm:$0xff] %v10464_v22   ;;  %vm804_vm7 = vcmp.eq.s32.totalorder %v11619_v8, %v11946_v60 }
  0x4b   : > { %v9894_v26 = vld [vmem:[#allocation2 + $0x590] sm:$0xff]  ;;  %v7677_v22 = vsel %vm804_vm7, 1.0, %v11492_v10  ;;  %vm800_vm7 = vcmp.eq.s32.totalorder %v11655_v24, %v11946_v60 }
  0x52   : > { %8053 = vmatmul.msk.bf16.gmra.mxu0 %vm2604_vm1, %v9867_v25  ;;  %v7568_v25 = vsel %vm299_vm2, 1.0, %v11492_v10  ;;  %vm467_vm2 = vcmp.eq.s32.totalorder %v11692_v42, %v11698_v44  ;;  %v9895_v44 = vld [vmem:[#allocation2 + $0x540] sm:$0xff] }
  0x53   : > { %v10326_v30 = vpack.c.bf16 %v7569_v28, %v7568_v25  ;;  %v7604_v13 = vsel %vm467_vm2, 1.0, %v11492_v10  ;;  %v7642_v25 = vsel %vm637_vm10, 1.0, %v11492_v10  ;;  %v9897_v28 = vld [vmem:[#allocation2 + $0x660] sm:$0xff]  ;;  %vm635_vm2 = vcmp.eq.s32.totalorder %v11652_v23, %v11793_v46 }
  0x54   : > { %v10380_v62 = vpack.c.bf16 %v7605_v61, %v7604_v13  ;;  %v10437_v29 = vpack.c.bf16 %v7643_v27, %v7642_v25  ;;  %v7640_v45 = vsel %vm635_vm2, 1.0, %v11492_v10  ;;  %4655 = vmatpush.bf16.msra.mxu3 %v9897_v28  ;;  %v7598_v13 = vsel %vm461_vm8, 1.0, %v11492_v10  ;;  %v9907_v61 = vld [vmem:[#allocation2 + $0x5e8] sm:$0xff] }
  0x55   : > { %11100 = vst [vmem:[#allocation2 + $0x3b0] sm:$0xff] %v10326_v30   ;;  %v7624_v30 = vsel %vm553_vm12, 1.0, %v11492_v10  ;;  %v10434_v52 = vpack.c.bf16 %v7641_v49, %v7640_v45  ;;  %vm633_vm10 = vcmp.eq.s32.totalorder %v11673_v32, %v11793_v46  ;;  %vm549_vm12 = vcmp.eq.s32.totalorder %v11692_v42, %v11777_v36  ;;  %v10052_v45 = vld [vmem:[#allocation2 + $0x520] sm:$0xff] }
  0x56   : > { %11118 = vst [vmem:[#allocation2 + $0x3c0] sm:$0xff] %v10380_v62   ;;  %v10410_v35 = vpack.c.bf16 %v7625_v31, %v7624_v30  ;;  %v7599_v62 = vsel %vm462_vm9, 1.0, %v11492_v10  ;;  %vm631_vm2 = vcmp.eq.s32.totalorder %v11692_v42, %v11793_v46  ;;  %v7637_v27 = vsel %vm632_vm3, 1.0, %v11492_v10  ;;  %4899 = vmatpush.bf16.msrb.mxu0 %v10052_v45 }
  0x57   : > { %11137 = vst [vmem:[#allocation2 + $0x588] sm:$0xff] %v10437_v29   ;;  %v7636_v25 = vsel %vm631_vm2, 1.0, %v11492_v10  ;;  %v7618_v30 = vsel %vm547_vm4, 1.0, %v11492_v10  ;;  %v7619_v31 = vsel %vm548_vm5, 1.0, %v11492_v10  ;;  %vm629_vm8 = vcmp.eq.s32.totalorder %v11718_v54, %v11793_v46 }
  0x58   : > { %11128 = vst [vmem:[#allocation2 + $0x8] sm:$0xff] %v10410_v35   ;;  %v10428_v29 = vpack.c.bf16 %v7637_v27, %v7636_v25  ;;  %v9905_v35 = vld [vmem:[#allocation2 + $0x528] sm:$0xff]  ;;  %v10401_v37 = vpack.c.bf16 %v7619_v31, %v7618_v30  ;;  %vm630_vm9 = vcmp.eq.s32.totalorder %v11726_v57, %v11793_v46  ;;  %v7634_v48 = vsel %vm629_vm8, 1.0, %v11492_v10 }
  0x59   : > { %11136 = vst [vmem:[#allocation2 + $0x690] sm:$0xff] %v10434_v52   ;;  %v7635_v49 = vsel %vm630_vm9, 1.0, %v11492_v10  ;;  %vm543_vm2 = vcmp.eq.s32.totalorder %v11613_v6, %v11777_v36  ;;  %vm544_vm3 = vcmp.eq.s32.totalorder %v11780_v39, %v11777_v36  ;;  %vm715_vm4 = vcmp.eq.s32.totalorder %v11673_v32, %v11879_v59 }
  0x5a   : > { %11134 = vst [vmem:[#allocation2 + $0x98] sm:$0xff] %v10428_v29   ;;  %vm716_vm5 = vcmp.eq.s32.totalorder %v11676_v33, %v11879_v59  ;;  %vm625_vm8 = vcmp.eq.s32.totalorder %v11613_v6, %v11793_v46  ;;  %vm626_vm9 = vcmp.eq.s32.totalorder %v11780_v39, %v11793_v46 }
  0x5b   : > { %11125 = vst [vmem:[#allocation2 + $0xd0] sm:$0xff] %v10401_v37   ;;  %v7630_v27 = vsel %vm625_vm8, 1.0, %v11492_v10  ;;  %vm709_vm8 = vcmp.eq.s32.totalorder %v11742_v3, %v11879_v59 }
  0x5c   : > { %v9878_v1 = vld [vmem:[#allocation2 + $0x3b0] sm:$0xff] }
  0x5d   : > { %4632 = vmatpush.bf16.msra.mxu1 %v9878_v1  ;;  %v9896_v51 = vld [vmem:[#allocation2 + $0x3c0] sm:$0xff]  ;;  %v7639_v1 = vsel %vm634_vm11, 1.0, %v11492_v10  ;;  %vm546_vm11 = vcmp.eq.s32.totalorder %v11755_v20, %v11777_v36 }
  0x5e   : > { %4656 = vmatpush.bf16.msra.mxu3 %v9896_v51  ;;  %v9915_v11 = vld [vmem:[#allocation2 + $0x588] sm:$0xff]  ;;  %v10425_v51 = vpack.c.bf16 %v7635_v49, %v7634_v48  ;;  %v7617_v53 = vsel %vm546_vm11, 1.0, %v11492_v10  ;;  %vm714_vm11 = vcmp.eq.s32.totalorder %v11695_v43, %v11879_v59 }
  0x5f   : > { %v9906_v17 = vld [vmem:[#allocation2 + $0x8] sm:$0xff]  ;;  %v7653_v31 = vsel %vm714_vm11, 1.0, %v11492_v10 }
  0x60   : > { %v9914_v28 = vld [vmem:[#allocation2 + $0x690] sm:$0xff]  ;;  %11133 = vst [vmem:[#allocation2 + $0x670] sm:$0xff] %v10425_v51   ;;  %v9871_v51 = vld [vmem:[%s13239_s3 + $0x38] sm:$0xff] }
  0x61   : > { %4633 = vmatpush.bf16.msra.mxu1 %v9877_v34  ;;  %v9870_v34 = vld [vmem:[%s13239_s3 + $0x30] sm:$0xff] }
  0x62   : > { %8054 = vmatmul.msk.bf16.gmra.mxu0 %vm2604_vm1, %v9868_v4  ;;  %v10440_v4 = vpack.c.bf16 %v7645_v0, %v7644_v63  ;;  %v7638_v63 = vsel %vm633_vm10, 1.0, %v11492_v10  ;;  %v10371_v0 = vpack.c.bf16 %v7599_v62, %v7598_v13  ;;  %4657 = vmatpush.bf16.msra.mxu3 %v9895_v44  ;;  %vm545_vm10 = vcmp.eq.s32.totalorder %v11742_v3, %v11777_v36 }
  0x63   : > { %v10431_v12 = vpack.c.bf16 %v7639_v1, %v7638_v63  ;;  %v7616_v52 = vsel %vm545_vm10, 1.0, %v11492_v10  ;;  %v7632_v62 = vsel %vm627_vm14, 1.0, %v11492_v10  ;;  %v9924_v63 = vld [vmem:[#allocation2 + $0xa0] sm:$0xff]  ;;  %v7633_v44 = vsel %vm628_vm15, 1.0, %v11492_v10 }
  0x64   : > { %11138 = vst [vmem:[#allocation2 + $0x5b0] sm:$0xff] %v10440_v4   ;;  %v7620_v4 = vsel %vm549_vm12, 1.0, %v11492_v10  ;;  %vm717_vm12 = vcmp.eq.s32.totalorder %v11652_v23, %v11879_v59  ;;  %v10398_v55 = vpack.c.bf16 %v7617_v53, %v7616_v52  ;;  %v10422_v1 = vpack.c.bf16 %v7633_v44, %v7632_v62 }
  0x65   : > { %4665 = vmatpush.bf16.msrb.mxu1 %v9908_v38  ;;  %11115 = vst [vmem:[#allocation2 + $0x580] sm:$0xff] %v10371_v0   ;;  %v7658_v38 = vsel %vm719_vm6, 1.0, %v11492_v10  ;;  %v7656_v56 = vsel %vm717_vm12, 1.0, %v11492_v10  ;;  %v7614_v0 = vsel %vm543_vm2, 1.0, %v11492_v10  ;;  %vm803_vm6 = vcmp.eq.s32.totalorder %v11616_v7, %v11946_v60 }
  0x66   : > { %11135 = vst [vmem:[#allocation2] sm:$0xff] %v10431_v12   ;;  %4658 = vmatpush.bf16.msra.mxu3 %v9894_v26  ;;  %v10461_v47 = vpack.c.bf16 %v7659_v41, %v7658_v38  ;;  %v11964_v12 = vld [vmem:[%s11591_s21 + $0x7] ss:$0 sm:$0xff]  ;;  %v7676_v21 = vsel %vm803_vm6, 1.0, %v11492_v10  ;;  %vm713_vm10 = vcmp.eq.s32.totalorder %v11692_v42, %v11879_v59  ;;  %vm801_vm14 = vcmp.eq.s32.totalorder %v11634_v15, %v11946_v60 }
  0x67   : > { %11124 = vst [vmem:[#allocation2 + $0x250] sm:$0xff] %v10398_v55   ;;  %v10488_v26 = vpack.c.bf16 %v7677_v22, %v7676_v21  ;;  %v7652_v29 = vsel %vm713_vm10, 1.0, %v11492_v10  ;;  %vm885_vm12 = vcmp.eq.s32.totalorder %v11616_v7, %v11964_v12  ;;  %v9911_v30 = vld [vmem:[#allocation2 + $0x670] sm:$0xff]  ;;  %vm886_vm13 = vcmp.eq.s32.totalorder %v11619_v8, %v11964_v12 }
  0x68   : > { %11145 = vst [vmem:[#allocation2 + $0x5d8] sm:$0xff] %v10461_v47   ;;  %v10452_v37 = vpack.c.bf16 %v7653_v31, %v7652_v29  ;;  %v7693_v38 = vsel %vm886_vm13, 1.0, %v11492_v10  ;;  %vm802_vm15 = vcmp.eq.s32.totalorder %v11637_v16, %v11946_v60  ;;  %v7674_v47 = vsel %vm801_vm14, 1.0, %v11492_v10 }
  0x69   : > { %4666 = vmatpush.bf16.msrb.mxu1 %v9907_v61  ;;  %v10458_v61 = vpack.c.bf16 %v7657_v58, %v7656_v56  ;;  %11132 = vst [vmem:[#allocation2 + $0x3c8] sm:$0xff] %v10422_v1   ;;  %v7675_v48 = vsel %vm802_vm15, 1.0, %v11492_v10  ;;  %vm711_vm2 = vcmp.eq.s32.totalorder %v11718_v54, %v11879_v59  ;;  %vm799_vm6 = vcmp.eq.s32.totalorder %v11652_v23, %v11946_v60 }
  0x6a   : > { %11154 = vst [vmem:[#allocation2 + $0x4f0] sm:$0xff] %v10488_v26   ;;  %v10485_v49 = vpack.c.bf16 %v7675_v48, %v7674_v47  ;;  %vm881_vm10 = vcmp.eq.s32.totalorder %v11652_v23, %v11964_v12  ;;  %vm882_vm11 = vcmp.eq.s32.totalorder %v11655_v24, %v11964_v12  ;;  %vm798_vm13 = vcmp.eq.s32.totalorder %v11676_v33, %v11946_v60 }
  0x6b   : > { %v9916_v9 = vld [vmem:[#allocation2 + $0x5b0] sm:$0xff]  ;;  %11144 = vst [vmem:[#allocation2 + $0x3e0] sm:$0xff] %v10458_v61   ;;  %vm707_vm14 = vcmp.eq.s32.totalorder %v11613_v6, %v11879_v59  ;;  %v7671_v22 = vsel %vm798_vm13, 1.0, %v11492_v10  ;;  %vm708_vm15 = vcmp.eq.s32.totalorder %v11780_v39, %v11879_v59  ;;  %vm794_vm13 = vcmp.eq.s32.totalorder %v11726_v57, %v11946_v60 }
  0x6c   : > { %4678 = vmatpush.bf16.msrb.mxu2 %v9916_v9  ;;  %v9893_v50 = vld [vmem:[#allocation2 + $0x580] sm:$0xff]  ;;  %11142 = vst [vmem:[#allocation2 + $0x210] sm:$0xff] %v10452_v37   ;;  %v7646_v26 = vsel %vm707_vm14, 1.0, %v11492_v10  ;;  %v11493_v37 = vmov 0  }
  0x6d   : > { %4667 = vmatpush.bf16.msrb.mxu1 %v9906_v17  ;;  %v9913_v9 = vld [vmem:[#allocation2] sm:$0xff]  ;;  %4659 = vmatpush.bf16.msra.mxu3 %v9893_v50  ;;  %v7655_v17 = vsel %vm716_vm5, 1.0, %v11492_v10  ;;  %v7650_v50 = vsel %vm711_vm2, 1.0, %v11492_v10  ;;  %vm884_vm5 = vcmp.eq.s32.totalorder %v11637_v16, %v11964_v12  ;;  %11153 = vst [vmem:[#allocation2 + $0x348] sm:$0xff] %v10485_v49   ;;  %vm879_vm2 = vcmp.eq.s32.totalorder %v11673_v32, %v11964_v12 }
  0x6e   : > { %v7691_v58 = vsel %vm884_vm5, 1.0, %v11492_v10  ;;  %v7686_v29 = vsel %vm879_vm2, 1.0, %v11492_v10  ;;  %vm796_vm5 = vcmp.eq.s32.totalorder %v11695_v43, %v11946_v60  ;;  %11382 = vset.pattern.permute.xlu0 %v11493_v37  ;;  %vm875_vm2 = vcmp.eq.s32.totalorder %v11718_v54, %v11964_v12 }
  0x6f   : > { %v9923_v25 = vld [vmem:[#allocation2 + $0x5d8] sm:$0xff] }
  0x70   : > { %4679 = vmatpush.bf16.msrb.mxu2 %v9915_v11  ;;  %v7654_v11 = vsel %vm715_vm4, 1.0, %v11492_v10  ;;  %vm883_vm4 = vcmp.eq.s32.totalorder %v11634_v15, %v11964_v12  ;;  %v9910_v52 = vld [vmem:[#allocation2 + $0x3c8] sm:$0xff] }
  0x71   : > { %4668 = vmatpush.bf16.msrb.mxu1 %v9905_v35  ;;  %4691 = vmatpush.bf16.msrb.mxu3 %v9924_v63  ;;  %v10455_v19 = vpack.c.bf16 %v7655_v17, %v7654_v11  ;;  %v9902_v35 = vld [vmem:[#allocation2 + $0x250] sm:$0xff]  ;;  %v7673_v63 = vsel %vm800_vm7, 1.0, %v11492_v10  ;;  %v7688_v11 = vsel %vm881_vm10, 1.0, %v11492_v10  ;;  %v12038_v17 = vld [vmem:[%s11591_s21 + $0x8] ss:$0 sm:$0xff]  ;;  %vm2031_vm7 = vcmp.eq.s32.totalorder %v11634_v15, %v11857_v40 }
  0x72   : > { %8055 = vmatmul.msk.bf16.gmra.mxu0 %vm2604_vm1, %v9869_v18  ;;  %v10404_v18 = vpack.c.bf16 %v7621_v14, %v7620_v4  ;;  %v7615_v4 = vsel %vm544_vm3, 1.0, %v11492_v10  ;;  %v9912_v14 = vld [vmem:[#allocation2 + $0x98] sm:$0xff]  ;;  %v9922_v41 = vld [vmem:[#allocation2 + $0x3e0] sm:$0xff]  ;;  %vm712_vm3 = vcmp.eq.s32.totalorder %v11726_v57, %v11879_v59  ;;  %vm877_vm10 = vcmp.eq.s32.totalorder %v11692_v42, %v11964_v12 }
  0x73   : > { %v10395_v36 = vpack.c.bf16 %v7615_v4, %v7614_v0  ;;  %11143 = vst [vmem:[#allocation2 + $0x308] sm:$0xff] %v10455_v19   ;;  %v7651_v53 = vsel %vm712_vm3, 1.0, %v11492_v10  ;;  %v7648_v0 = vsel %vm709_vm8, 1.0, %v11492_v10  ;;  %vm880_vm3 = vcmp.eq.s32.totalorder %v11676_v33, %v11964_v12 }
  0x74   : > { %11126 = vst [vmem:[#allocation2 + $0x390] sm:$0xff] %v10404_v18   ;;  %4680 = vmatpush.bf16.msrb.mxu2 %v9914_v28  ;;  %v9903_v18 = vld [vmem:[#allocation2 + $0xd0] sm:$0xff]  ;;  %v7631_v28 = vsel %vm626_vm9, 1.0, %v11492_v10  ;;  %v10449_v56 = vpack.c.bf16 %v7651_v53, %v7650_v50  ;;  %vm710_vm9 = vcmp.eq.s32.totalorder %v11755_v20, %v11879_v59  ;;  %v7687_v59 = vsel %vm880_vm3, 1.0, %v11492_v10 }
  0x75   : > { %11123 = vst [vmem:[#allocation2 + $0x190] sm:$0xff] %v10395_v36   ;;  %4692 = vmatpush.bf16.msrb.mxu3 %v9923_v25  ;;  %v10419_v46 = vpack.c.bf16 %v7631_v28, %v7630_v27  ;;  %v7649_v1 = vsel %vm710_vm9, 1.0, %v11492_v10  ;;  %v7689_v36 = vsel %vm882_vm11, 1.0, %v11492_v10  ;;  %v7647_v27 = vsel %vm708_vm15, 1.0, %v11492_v10 }
  0x76   : > { %11141 = vst [vmem:[#allocation2 + $0x600] sm:$0xff] %v10449_v56   ;;  %v10446_v4 = vpack.c.bf16 %v7649_v1, %v7648_v0  ;;  %v10506_v19 = vpack.c.bf16 %v7689_v36, %v7688_v11  ;;  %v10443_v28 = vpack.c.bf16 %v7647_v27, %v7646_v26  ;;  %vm2032_vm8 = vcmp.eq.s32.totalorder %v11637_v16, %v11857_v40 }
  0x77   : > { %11131 = vst [vmem:[#allocation2 + $0x10] sm:$0xff] %v10419_v46   ;;  %v10503_v31 = vpack.c.bf16 %v7687_v59, %v7686_v29  ;;  %vm968_vm9 = vcmp.eq.s32.totalorder %v11619_v8, %v12038_v17  ;;  %vm878_vm11 = vcmp.eq.s32.totalorder %v11695_v43, %v11964_v12  ;;  %v7667_v56 = vsel %vm794_vm13, 1.0, %v11492_v10 }
  0x78   : > { %4681 = vmatpush.bf16.msrb.mxu2 %v9913_v9  ;;  %v7690_v9 = vsel %vm883_vm4, 1.0, %v11492_v10  ;;  %11140 = vst [vmem:[#allocation2 + $0x4e0] sm:$0xff] %v10446_v4   ;;  %vm795_vm4 = vcmp.eq.s32.totalorder %v11692_v42, %v11946_v60  ;;  %v7709_v49 = vsel %vm968_vm9, 1.0, %v11492_v10  ;;  %v7685_v53 = vsel %vm878_vm11, 1.0, %v11492_v10 }
  0x79   : > { %4693 = vmatpush.bf16.msrb.mxu3 %v9922_v41  ;;  %v10509_v62 = vpack.c.bf16 %v7691_v58, %v7690_v9  ;;  %11160 = vst [vmem:[#allocation2 + $0x330] sm:$0xff] %v10506_v19   ;;  %v7669_v41 = vsel %vm796_vm5, 1.0, %v11492_v10  ;;  %vm965_vm14 = vcmp.eq.s32.totalorder %v11634_v15, %v12038_v17  ;;  %vm966_vm15 = vcmp.eq.s32.totalorder %v11637_v16, %v12038_v17  ;;  %v9872_v58 = vld [vmem:[%s13239_s3 + $0x40] sm:$0xff]  ;;  %v12115_v19 = vld [vmem:[%s11591_s21 + $0x9] ss:$0 sm:$0xff] }
  0x7a   : > { %v9921_v61 = vld [vmem:[#allocation2 + $0x308] sm:$0xff]  ;;  %11139 = vst [vmem:[#allocation2 + $0x5c0] sm:$0xff] %v10443_v28   ;;  %vm876_vm3 = vcmp.eq.s32.totalorder %v11726_v57, %v11964_v12  ;;  %v7682_v1 = vsel %vm875_vm2, 1.0, %v11492_v10  ;;  %vm792_vm5 = vcmp.eq.s32.totalorder %v11755_v20, %v11946_v60  ;;  %vm874_vm9 = vcmp.eq.s32.totalorder %v11755_v20, %v11964_v12 }
  0x7b   : > { %v9904_v13 = vld [vmem:[#allocation2 + $0x390] sm:$0xff]  ;;  %11161 = vst [vmem:[#allocation2 + $0x6a0] sm:$0xff] %v10509_v62   ;;  %v7707_v62 = vsel %vm966_vm15, 1.0, %v11492_v10  ;;  %v7683_v4 = vsel %vm876_vm3, 1.0, %v11492_v10  ;;  %v7665_v36 = vsel %vm792_vm5, 1.0, %v11492_v10  ;;  %v7681_v28 = vsel %vm874_vm9, 1.0, %v11492_v10 }
  0x7c   : > { %4669 = vmatpush.bf16.msrb.mxu1 %v9904_v13  ;;  %4682 = vmatpush.bf16.msrb.mxu2 %v9912_v14  ;;  %v9901_v55 = vld [vmem:[#allocation2 + $0x190] sm:$0xff]  ;;  %v7672_v13 = vsel %vm799_vm6, 1.0, %v11492_v10  ;;  %vm967_vm6 = vcmp.eq.s32.totalorder %v11616_v7, %v12038_v17  ;;  %11159 = vst [vmem:[#allocation2 + $0x640] sm:$0xff] %v10503_v31   ;;  %vm790_vm11 = vcmp.eq.s32.totalorder %v11780_v39, %v11946_v60  ;;  %v12139_v31 = vld [vmem:[%s11591_s21 + $0xa] ss:$0 sm:$0xff] }
  0x7d   : > { %v10482_v44 = vpack.c.bf16 %v7673_v63, %v7672_v13  ;;  %4694 = vmatpush.bf16.msrb.mxu3 %v9921_v61  ;;  %v9919_v46 = vld [vmem:[#allocation2 + $0x600] sm:$0xff]  ;;  %v7708_v48 = vsel %vm967_vm6, 1.0, %v11492_v10  ;;  %v7706_v61 = vsel %vm965_vm14, 1.0, %v11492_v10  ;;  %vm963_vm6 = vcmp.eq.s32.totalorder %v11652_v23, %v12038_v17 }
  0x7e   : > { %v9909_v14 = vld [vmem:[#allocation2 + $0x10] sm:$0xff]  ;;  %v10533_v0 = vpack.c.bf16 %v7707_v62, %v7706_v61  ;;  %vm962_vm13 = vcmp.eq.s32.totalorder %v11676_v33, %v12038_v17  ;;  %vm1049_vm14 = vcmp.eq.s32.totalorder %v11616_v7, %v12115_v19  ;;  %vm1050_vm15 = vcmp.eq.s32.totalorder %v11619_v8, %v12115_v19 }
  0x7f   : > { %11152 = vst [vmem:[#allocation2 + $0x4d0] sm:$0xff] %v10482_v44   ;;  %v9918_v50 = vld [vmem:[#allocation2 + $0x4e0] sm:$0xff]  ;;  %vm871_vm2 = vcmp.eq.s32.totalorder %v11613_v6, %v11964_v12  ;;  %vm872_vm3 = vcmp.eq.s32.totalorder %v11780_v39, %v11964_v12  ;;  %vm960_vm5 = vcmp.eq.s32.totalorder %v11695_v43, %v12038_v17  ;;  %vm1048_vm9 = vcmp.eq.s32.totalorder %v11637_v16, %v12115_v19 }
  0x80   : > { %4670 = vmatpush.bf16.msrb.mxu1 %v9903_v18  ;;  %4683 = vmatpush.bf16.msrb.mxu2 %v9911_v30  ;;  %v9920_v18 = vld [vmem:[#allocation2 + $0x210] sm:$0xff]  ;;  %v7668_v30 = vsel %vm795_vm4, 1.0, %v11492_v10  ;;  %vm791_vm4 = vcmp.eq.s32.totalorder %v11742_v3, %v11946_v60  ;;  %11169 = vst [vmem:[#allocation2 + $0x350] sm:$0xff] %v10533_v0   ;;  %v7723_v0 = vsel %vm1048_vm9, 1.0, %v11492_v10  ;;  %vm1044_vm9 = vcmp.eq.s32.totalorder %v11676_v33, %v12115_v19 }
  0x81   : > { %4695 = vmatpush.bf16.msrb.mxu3 %v9920_v18  ;;  %v10476_v47 = vpack.c.bf16 %v7669_v41, %v7668_v30  ;;  %v9917_v44 = vld [vmem:[#allocation2 + $0x5c0] sm:$0xff]  ;;  %v7664_v11 = vsel %vm791_vm4, 1.0, %v11492_v10  ;;  %v7704_v18 = vsel %vm963_vm6, 1.0, %v11492_v10  ;;  %v7663_v30 = vsel %vm790_vm11, 1.0, %v11492_v10 }
  0x82   : > { %8056 = vmatmul.msk.bf16.gmra.mxu0 %vm2604_vm1, %v9870_v34  ;;  %v7692_v34 = vsel %vm885_vm12, 1.0, %v11492_v10  ;;  %vm797_vm12 = vcmp.eq.s32.totalorder %v11673_v32, %v11946_v60  ;;  %v7725_v41 = vsel %vm1050_vm15, 1.0, %v11492_v10  ;;  %vm959_vm4 = vcmp.eq.s32.totalorder %v11692_v42, %v12038_v17 }
  0x83   : > { %v10512_v45 = vpack.c.bf16 %v7693_v38, %v7692_v34  ;;  %v7670_v21 = vsel %vm797_vm12, 1.0, %v11492_v10  ;;  %v7914_v34 = vsel %vm2031_vm7, 1.0, %v11492_v10  ;;  %v3229_v38 = vld [vmem:[%s13242_s6] sm:$0xff]  ;;  %vm793_vm12 = vcmp.eq.s32.totalorder %v11718_v54, %v11946_v60  ;;  %11150 = vst [vmem:[#allocation2 + $0x400] sm:$0xff] %v10476_v47  }
  0x84   : > { %4671 = vmatpush.bf16.msrb.mxu1 %v9902_v35  ;;  %4684 = vmatpush.bf16.msrb.mxu2 %v9910_v52  ;;  %v10479_v25 = vpack.c.bf16 %v7671_v22, %v7670_v21  ;;  %v7915_v35 = vsel %vm2032_vm8, 1.0, %v11492_v10  ;;  %v7684_v52 = vsel %vm877_vm10, 1.0, %v11492_v10  ;;  %v7666_v9 = vsel %vm793_vm12, 1.0, %v11492_v10 }
  0x85   : > { %11162 = vst [vmem:[#allocation2 + $0x2a8] sm:$0xff] %v10512_v45   ;;  %v10845_v45 = vpack.c.bf16 %v7915_v35, %v7914_v34  ;;  %4696 = vmatpush.bf16.msrb.mxu3 %v9919_v46  ;;  %3232 = vperm.xlu0 %11382, %v3229_v38   ;;  %v10473_v13 = vpack.c.bf16 %v7667_v56, %v7666_v9  ;;  %v7703_v34 = vsel %vm962_vm13, 1.0, %v11492_v10  ;;  %v7724_v35 = vsel %vm1049_vm14, 1.0, %v11492_v10  ;;  %v9932_v9 = vld [vmem:[#allocation2 + $0x4f0] sm:$0xff] }
  0x86   : > { %11151 = vst [vmem:[#allocation2 + $0x3f8] sm:$0xff] %v10479_v25   ;;  %vm964_vm7 = vcmp.eq.s32.totalorder %v11655_v24, %v12038_v17  ;;  %v10470_v21 = vpack.c.bf16 %v7665_v36, %v7664_v11  ;;  %vm873_vm8 = vcmp.eq.s32.totalorder %v11742_v3, %v11964_v12  ;;  %vm789_vm10 = vcmp.eq.s32.totalorder %v11613_v6, %v11946_v60  ;;  %v9931_v36 = vld [vmem:[#allocation2 + $0x348] sm:$0xff] }
  0x87   : > { %11273 = vst [vmem:[#allocation2 + $0x4b0] sm:$0xff] %v10845_v45   ;;  %v7705_v22 = vsel %vm964_vm7, 1.0, %v11492_v10  ;;  %v7680_v27 = vsel %vm873_vm8, 1.0, %v11492_v10  ;;  %v7662_v59 = vsel %vm789_vm10, 1.0, %v11492_v10  ;;  %vm961_vm12 = vcmp.eq.s32.totalorder %v11673_v32, %v12038_v17 }
  0x88   : > { %4672 = vmatpush.bf16.msrb.mxu1 %v9901_v55  ;;  %4685 = vmatpush.bf16.msrb.mxu2 %v9909_v14  ;;  %v10500_v55 = vpack.c.bf16 %v7685_v53, %v7684_v52  ;;  %11149 = vst [vmem:[#allocation2 + $0x2c8] sm:$0xff] %v10473_v13   ;;  %v10497_v14 = vpack.c.bf16 %v7683_v4, %v7682_v1  ;;  %v7702_v46 = vsel %vm961_vm12, 1.0, %v11492_v10  ;;  %v7700_v52 = vsel %vm959_vm4, 1.0, %v11492_v10  ;;  %v9873_v1 = vld [vmem:[%s13239_s3 + $0x48] sm:$0xff] }
  0x89   : > { %4697 = vmatpush.bf16.msrb.mxu3 %v9918_v50  ;;  %v10530_v26 = vpack.c.bf16 %v7705_v22, %v7704_v18  ;;  %11148 = vst [vmem:[#allocation2 + $0x4a0] sm:$0xff] %v10470_v21   ;;  %v10494_v29 = vpack.c.bf16 %v7681_v28, %v7680_v27  ;;  %v10467_v60 = vpack.c.bf16 %v7663_v30, %v7662_v59  ;;  %v7701_v53 = vsel %vm960_vm5, 1.0, %v11492_v10  ;;  %v9939_v18 = vld [vmem:[#allocation2 + $0x6a0] sm:$0xff] }
  0x8a   : > { %11158 = vst [vmem:[#allocation2 + $0x5c8] sm:$0xff] %v10500_v55   ;;  %v10527_v38 = vpack.c.bf16 %v7703_v34, %v7702_v46  ;;  %v10560_v47 = vpack.c.bf16 %v7725_v41, %v7724_v35  ;;  %vm1131_vm6 = vcmp.eq.s32.totalorder %v11616_v7, %v12139_v31  ;;  %v10524_v56 = vpack.c.bf16 %v7701_v53, %v7700_v52  ;;  %v9930_v46 = vld [vmem:[#allocation2 + $0x4d0] sm:$0xff]  ;;  %v9937_v52 = vld [vmem:[#allocation2 + $0x640] sm:$0xff] }
  0x8b   : > { %11157 = vst [vmem:[#allocation2 + $0x518] sm:$0xff] %v10497_v14   ;;  %vm1132_vm7 = vcmp.eq.s32.totalorder %v11619_v8, %v12139_v31  ;;  %vm1047_vm8 = vcmp.eq.s32.totalorder %v11634_v15, %v12115_v19  ;;  %vm957_vm10 = vcmp.eq.s32.totalorder %v11718_v54, %v12038_v17  ;;  %vm958_vm11 = vcmp.eq.s32.totalorder %v11726_v57, %v12038_v17 }
  0x8c   : > { %11168 = vst [vmem:[#allocation2 + $0x1c8] sm:$0xff] %v10530_v26   ;;  %v9940_v55 = vld [vmem:[#allocation2 + $0x2a8] sm:$0xff]  ;;  %v7741_v62 = vsel %vm1132_vm7, 1.0, %v11492_v10  ;;  %v7698_v11 = vsel %vm957_vm10, 1.0, %v11492_v10  ;;  %vm1129_vm12 = vcmp.eq.s32.totalorder %v11634_v15, %v12139_v31  ;;  %v7699_v21 = vsel %vm958_vm11, 1.0, %v11492_v10 }
  0x8d   : > { %4698 = vmatpush.bf16.msrb.mxu3 %v9917_v44  ;;  %11156 = vst [vmem:[#allocation2 + $0x630] sm:$0xff] %v10494_v29   ;;  %v7722_v44 = vsel %vm1047_vm8, 1.0, %v11492_v10  ;;  %vm1130_vm13 = vcmp.eq.s32.totalorder %v11637_v16, %v12139_v31  ;;  %v7738_v22 = vsel %vm1129_vm12, 1.0, %v11492_v10  ;;  %vm1045_vm14 = vcmp.eq.s32.totalorder %v11652_v23, %v12115_v19 }
  0x8e   : > { %v10051_v25 = vld [vmem:[#allocation2 + $0x4b0] sm:$0xff]  ;;  %11147 = vst [vmem:[#allocation2 + $0x358] sm:$0xff] %v10467_v60   ;;  %v10557_v4 = vpack.c.bf16 %v7723_v0, %v7722_v44  ;;  %v7739_v26 = vsel %vm1130_vm13, 1.0, %v11492_v10  ;;  %vm1046_vm15 = vcmp.eq.s32.totalorder %v11655_v24, %v12115_v19  ;;  %v7720_v27 = vsel %vm1045_vm14, 1.0, %v11492_v10  ;;  %v9928_v0 = vld [vmem:[#allocation2 + $0x400] sm:$0xff] }
  0x8f   : > { %4900 = vmatpush.bf16.msrb.mxu0 %v10051_v25  ;;  %11167 = vst [vmem:[#allocation2 + $0xb8] sm:$0xff] %v10527_v38   ;;  %v10521_v25 = vpack.c.bf16 %v7699_v21, %v7698_v11  ;;  %v10581_v28 = vpack.c.bf16 %v7739_v26, %v7738_v22  ;;  %v7721_v29 = vsel %vm1046_vm15, 1.0, %v11492_v10  ;;  %vm2029_vm4 = vcmp.eq.s32.totalorder %v11652_v23, %v11857_v40  ;;  %v9938_v60 = vld [vmem:[#allocation2 + $0x330] sm:$0xff] }
  0x90   : > { %11178 = vst [vmem:[#allocation2 + $0x410] sm:$0xff] %v10560_v47   ;;  %vm2030_vm5 = vcmp.eq.s32.totalorder %v11655_v24, %v11857_v40  ;;  %v10554_v59 = vpack.c.bf16 %v7721_v29, %v7720_v27  ;;  %v7912_v34 = vsel %vm2029_vm4, 1.0, %v11492_v10  ;;  %vm1128_vm7 = vcmp.eq.s32.totalorder %v11655_v24, %v12139_v31  ;;  %v12217_v47 = vld [vmem:[%s11591_s21 + $0xb] ss:$0 sm:$0xff] }
  0x91   : > { %11166 = vst [vmem:[#allocation2 + $0x1e8] sm:$0xff] %v10524_v56   ;;  %v7913_v35 = vsel %vm2030_vm5, 1.0, %v11492_v10  ;;  %vm1043_vm8 = vcmp.eq.s32.totalorder %v11673_v32, %v12115_v19  ;;  %vm953_vm10 = vcmp.eq.s32.totalorder %v11613_v6, %v12038_v17  ;;  %vm954_vm11 = vcmp.eq.s32.totalorder %v11780_v39, %v12038_v17 }
  0x92   : > { %8057 = vmatmul.msk.bf16.gmra.mxu0 %vm2604_vm1, %v9871_v51  ;;  %v10536_v51 = vpack.c.bf16 %v7709_v49, %v7708_v48  ;;  %v7678_v48 = vsel %vm871_vm2, 1.0, %v11492_v10  ;;  %v7679_v49 = vsel %vm872_vm3, 1.0, %v11492_v10  ;;  %11177 = vst [vmem:[#allocation2 + $0x158] sm:$0xff] %v10557_v4   ;;  %vm955_vm2 = vcmp.eq.s32.totalorder %v11742_v3, %v12038_v17 }
  0x93   : > { %v10491_v50 = vpack.c.bf16 %v7679_v49, %v7678_v48  ;;  %vm956_vm3 = vcmp.eq.s32.totalorder %v11755_v20, %v12038_v17  ;;  %11165 = vst [vmem:[#allocation2 + $0x110] sm:$0xff] %v10521_v25   ;;  %v7696_v30 = vsel %vm955_vm2, 1.0, %v11492_v10  ;;  %v10842_v40 = vpack.c.bf16 %v7913_v35, %v7912_v34 }
  0x94   : > { %11170 = vst [vmem:[#allocation2 + $0x570] sm:$0xff] %v10536_v51   ;;  %v7718_v49 = vsel %vm1043_vm8, 1.0, %v11492_v10  ;;  %vm1125_vm12 = vcmp.eq.s32.totalorder %v11673_v32, %v12139_v31  ;;  %vm1126_vm13 = vcmp.eq.s32.totalorder %v11676_v33, %v12139_v31  ;;  %vm1041_vm14 = vcmp.eq.s32.totalorder %v11692_v42, %v12115_v19 }
  0x95   : > { %11155 = vst [vmem:[#allocation2 + $0x178] sm:$0xff] %v10491_v50   ;;  %v7719_v50 = vsel %vm1044_vm9, 1.0, %v11492_v10  ;;  %v7734_v17 = vsel %vm1125_vm12, 1.0, %v11492_v10  ;;  %vm1042_vm15 = vcmp.eq.s32.totalorder %v11695_v43, %v12115_v19  ;;  %vm1213_vm2 = vcmp.eq.s32.totalorder %v11616_v7, %v12217_v47 }
  0x96   : > { %11185 = vst [vmem:[#allocation2 + $0x4c8] sm:$0xff] %v10581_v28   ;;  %v10551_v53 = vpack.c.bf16 %v7719_v50, %v7718_v49  ;;  %v7716_v44 = vsel %vm1041_vm14, 1.0, %v11492_v10  ;;  %v7717_v4 = vsel %vm1042_vm15, 1.0, %v11492_v10  ;;  %v7756_v11 = vsel %vm1213_vm2, 1.0, %v11492_v10  ;;  %v9874_v28 = vld [vmem:[%s13239_s3 + $0x50] sm:$0xff] }
  0x97   : > { %11176 = vst [vmem:[#allocation2 + $0x320] sm:$0xff] %v10554_v59   ;;  %vm1123_vm4 = vcmp.eq.s32.totalorder %v11692_v42, %v12139_v31  ;;  %v10548_v21 = vpack.c.bf16 %v7717_v4, %v7716_v44  ;;  %vm1124_vm5 = vcmp.eq.s32.totalorder %v11695_v43, %v12139_v31  ;;  %vm1211_vm8 = vcmp.eq.s32.totalorder %v11634_v15, %v12217_v47  ;;  %v9925_v4 = vld [vmem:[#allocation2 + $0x358] sm:$0xff] }
  0x98   : > { %11272 = vst [vmem:[#allocation2 + $0x498] sm:$0xff] %v10842_v40   ;;  %v7732_v27 = vsel %vm1123_vm4, 1.0, %v11492_v10  ;;  %v7733_v29 = vsel %vm1124_vm5, 1.0, %v11492_v10  ;;  %vm1212_vm9 = vcmp.eq.s32.totalorder %v11637_v16, %v12217_v47  ;;  %v9935_v40 = vld [vmem:[#allocation2 + $0x518] sm:$0xff]  ;;  %vm1037_vm12 = vcmp.eq.s32.totalorder %v11742_v3, %v12115_v19 }
  0x99   : > { %11175 = vst [vmem:[#allocation2 + $0x28] sm:$0xff] %v10551_v53   ;;  %v10572_v34 = vpack.c.bf16 %v7733_v29, %v7732_v27  ;;  %vm1209_vm14 = vcmp.eq.s32.totalorder %v11652_v23, %v12217_v47  ;;  %vm1210_vm15 = vcmp.eq.s32.totalorder %v11655_v24, %v12217_v47  ;;  %vm1119_vm2 = vcmp.eq.s32.totalorder %v11742_v3, %v12139_v31 }
  0x9a   : > { %11174 = vst [vmem:[#allocation2 + $0x140] sm:$0xff] %v10548_v21   ;;  %vm1035_vm4 = vcmp.eq.s32.totalorder %v11613_v6, %v12115_v19  ;;  %vm1036_vm5 = vcmp.eq.s32.totalorder %v11780_v39, %v12115_v19 }
  0x9b   : > { %11182 = vst [vmem:[#allocation2 + $0x438] sm:$0xff] %v10572_v34   ;;  %v7710_v44 = vsel %vm1035_vm4, 1.0, %v11492_v10  ;;  %vm1203_vm4 = vcmp.eq.s32.totalorder %v11718_v54, %v12217_v47 }
  0x9c   : > { %v9933_v21 = vld [vmem:[#allocation2 + $0x178] sm:$0xff] }
  0x9f   : > { %v2660_v63 = vpop.f32.mrf.mxu0  ;;  %v10050_v25 = vld [vmem:[#allocation2 + $0x498] sm:$0xff] }
  0xa0   : > { %4901 = vmatpush.bf16.msrb.mxu0 %v10050_v25 }
  0xa2   : > { %8058 = vmatmul.msk.bf16.gmra.mxu0 %vm2604_vm1, %v9872_v58  ;;  %v7740_v58 = vsel %vm1131_vm6, 1.0, %v11492_v10  ;;  %vm1127_vm6 = vcmp.eq.s32.totalorder %v11652_v23, %v12139_v31 }
  0xa3   : > { %v7736_v41 = vsel %vm1127_vm6, 1.0, %v11492_v10  ;;  %vm1039_vm6 = vcmp.eq.s32.totalorder %v11718_v54, %v12115_v19 }
  0xa4   : > { %v7714_v59 = vsel %vm1039_vm6, 1.0, %v11492_v10  ;;  %vm1207_vm6 = vcmp.eq.s32.totalorder %v11673_v32, %v12217_v47 }
  0xa7   : > { %v2662_v37 = vpop.f32.mrf.mxu0 }
  0xa8   : > { %v10973_v45 = vpack.c.bf16 %v2662_v37, %v2660_v63  ;;  %v10584_v63 = vpack.c.bf16 %v7741_v62, %v7740_v58  ;;  %v7697_v37 = vsel %vm956_vm3, 1.0, %v11492_v10  ;;  %vm1214_vm3 = vcmp.eq.s32.totalorder %v11619_v8, %v12217_v47 }
  0xa9   : > { %v10518_v38 = vpack.c.bf16 %v7697_v37, %v7696_v30  ;;  %v7757_v22 = vsel %vm1214_vm3, 1.0, %v11492_v10  ;;  %v7754_v37 = vsel %vm1211_vm8, 1.0, %v11492_v10  ;;  %vm1120_vm3 = vcmp.eq.s32.totalorder %v11755_v20, %v12139_v31 }
  0xaa   : > { %v3249_v51 = vunpack.c.l.b16 %v10973_v45  ;;  %v3250_v12 = vunpack.c.h.b16 %v10973_v45  ;;  %11186 = vst [vmem:[#allocation2 + $0x48] sm:$0xff] %v10584_v63   ;;  %v7737_v45 = vsel %vm1128_vm7, 1.0, %v11492_v10  ;;  %v10608_v26 = vpack.c.bf16 %v7757_v22, %v7756_v11  ;;  %v9945_v11 = vld [vmem:[#allocation2 + $0xb8] sm:$0xff] }
  0xab   : > { %v10578_v48 = vpack.c.bf16 %v7737_v45, %v7736_v41  ;;  %11164 = vst [vmem:[#allocation2 + $0x538] sm:$0xff] %v10518_v38   ;;  %vm1040_vm7 = vcmp.eq.s32.totalorder %v11726_v57, %v12115_v19  ;;  %v7755_v41 = vsel %vm1212_vm9, 1.0, %v11492_v10 }
  0xac   : > { %v3276_v13 = vpack.c.b16 %v3249_v51, %v3249_v51  ;;  %v3277_v61 = vpack.c.b16 %v3250_v12, %v3250_v12  ;;  %v9929_v12 = vld [vmem:[#allocation2 + $0x3f8] sm:$0xff]  ;;  %11194 = vst [vmem:[#allocation2 + $0x290] sm:$0xff] %v10608_v26   ;;  %v7715_v35 = vsel %vm1040_vm7, 1.0, %v11492_v10  ;;  %v10605_v45 = vpack.c.bf16 %v7755_v41, %v7754_v37 }
  0xad   : > { %11184 = vst [vmem:[#allocation2 + $0x2c0] sm:$0xff] %v10578_v48   ;;  %v10545_v38 = vpack.c.bf16 %v7715_v35, %v7714_v59  ;;  %vm1208_vm7 = vcmp.eq.s32.totalorder %v11676_v33, %v12217_v47 }
  0xae   : > { %4634 = vmatmul.bf16.vlgmr.msra.gmra.mxu1 %v3276_v13  ;;  %4647 = vmatmul.bf16.vlgmr.msra.gmra.mxu2 %v3277_v61  ;;  %v7735_v13 = vsel %vm1126_vm13, 1.0, %v11492_v10  ;;  %vm1038_vm13 = vcmp.eq.s32.totalorder %v11755_v20, %v12115_v19  ;;  %11193 = vst [vmem:[#allocation2 + $0x300] sm:$0xff] %v10605_v45   ;;  %v7750_v19 = vsel %vm1207_vm6, 1.0, %v11492_v10  ;;  %v7751_v22 = vsel %vm1208_vm7, 1.0, %v11492_v10 }
  0xaf   : > { %v2665_v14 = vpop.f32.mrf.mxu0  ;;  %4704 = vmatpush.bf16.msra.mxu1 %v9932_v9  ;;  %4717 = vmatpush.bf16.msra.mxu2 %v9940_v55  ;;  %v7694_v9 = vsel %vm953_vm10, 1.0, %v11492_v10  ;;  %v7695_v55 = vsel %vm954_vm11, 1.0, %v11492_v10  ;;  %v10575_v63 = vpack.c.bf16 %v7735_v13, %v7734_v17  ;;  %vm1121_vm10 = vcmp.eq.s32.totalorder %v11718_v54, %v12139_v31  ;;  %11173 = vst [vmem:[#allocation2 + $0x1f8] sm:$0xff] %v10545_v38   ;;  %v12291_v13 = vld [vmem:[%s11591_s21 + $0xc] ss:$0 sm:$0xff] }
  0xb0   : > { %v10515_v58 = vpack.c.bf16 %v7695_v55, %v7694_v9  ;;  %vm1122_vm11 = vcmp.eq.s32.totalorder %v11726_v57, %v12139_v31  ;;  %v7730_v48 = vsel %vm1121_vm10, 1.0, %v11492_v10  ;;  %v7713_v53 = vsel %vm1038_vm13, 1.0, %v11492_v10  ;;  %v9934_v55 = vld [vmem:[#allocation2 + $0x630] sm:$0xff] }
  0xb1   : > { %11183 = vst [vmem:[#allocation2 + $0x2a0] sm:$0xff] %v10575_v63   ;;  %v7731_v49 = vsel %vm1122_vm11, 1.0, %v11492_v10  ;;  %v7752_v9 = vsel %vm1209_vm14, 1.0, %v11492_v10  ;;  %v7728_v17 = vsel %vm1119_vm2, 1.0, %v11492_v10  ;;  %vm1295_vm8 = vcmp.eq.s32.totalorder %v11616_v7, %v12291_v13 }
  0xb2   : > { %8059 = vmatmul.msk.bf16.gmra.mxu0 %vm2604_vm1, %v9873_v1  ;;  %11163 = vst [vmem:[#allocation2 + $0x5a0] sm:$0xff] %v10515_v58   ;;  %v9948_v1 = vld [vmem:[#allocation2 + $0x570] sm:$0xff]  ;;  %v10569_v50 = vpack.c.bf16 %v7731_v49, %v7730_v48  ;;  %v7753_v58 = vsel %vm1210_vm15, 1.0, %v11492_v10  ;;  %vm1296_vm9 = vcmp.eq.s32.totalorder %v11619_v8, %v12291_v13  ;;  %v10599_v25 = vpack.c.bf16 %v7751_v22, %v7750_v19  ;;  %v9875_v48 = vld [vmem:[%s13239_s3 + $0x58] sm:$0xff]  ;;  %v2535_v49 = vld [vmem:[%s13239_s3 + $0x68] sm:$0xf] }
  0xb3   : > { %4705 = vmatpush.bf16.msra.mxu1 %v9931_v36  ;;  %4718 = vmatpush.bf16.msra.mxu2 %v9939_v18  ;;  %v9936_v18 = vld [vmem:[#allocation2 + $0x5c8] sm:$0xff]  ;;  %v7772_v26 = vsel %vm1295_vm8, 1.0, %v11492_v10  ;;  %v7773_v27 = vsel %vm1296_vm9, 1.0, %v11492_v10  ;;  %vm1117_vm10 = vcmp.eq.s32.totalorder %v11613_v6, %v12139_v31  ;;  %vm1118_vm11 = vcmp.eq.s32.totalorder %v11780_v39, %v12139_v31  ;;  %v9955_v31 = vld [vmem:[#allocation2 + $0x158] sm:$0xff] }
  0xb4   : > { %11181 = vst [vmem:[#allocation2 + $0x3a8] sm:$0xff] %v10569_v50   ;;  %v7726_v34 = vsel %vm1117_vm10, 1.0, %v11492_v10  ;;  %v7727_v35 = vsel %vm1118_vm11, 1.0, %v11492_v10  ;;  %vm1206_vm13 = vcmp.eq.s32.totalorder %v11695_v43, %v12217_v47  ;;  %vm1293_vm2 = vcmp.eq.s32.totalorder %v11634_v15, %v12291_v13  ;;  %v9953_v22 = vld [vmem:[#allocation2 + $0x28] sm:$0xff] }
  0xb5   : > { %11191 = vst [vmem:[#allocation2 + $0x200] sm:$0xff] %v10599_v25   ;;  %v10563_v38 = vpack.c.bf16 %v7727_v35, %v7726_v34  ;;  %v7749_v45 = vsel %vm1206_vm13, 1.0, %v11492_v10  ;;  %vm1291_vm10 = vcmp.eq.s32.totalorder %v11652_v23, %v12291_v13  ;;  %vm1292_vm11 = vcmp.eq.s32.totalorder %v11655_v24, %v12291_v13 }
  0xb6   : > { %vm1202_vm13 = vcmp.eq.s32.totalorder %v11755_v20, %v12217_v47 }
  0xb7   : > { %v2667_v51 = vpop.f32.mrf.mxu0  ;;  %4706 = vmatpush.bf16.msra.mxu1 %v9930_v46  ;;  %4719 = vmatpush.bf16.msra.mxu2 %v9938_v60  ;;  %v9927_v46 = vld [vmem:[#allocation2 + $0x2c8] sm:$0xff]  ;;  %v9947_v60 = vld [vmem:[#allocation2 + $0x350] sm:$0xff]  ;;  %11179 = vst [vmem:[#allocation2 + $0x258] sm:$0xff] %v10563_v38  }
  0xb8   : > { %v10978_v56 = vpack.c.bf16 %v2667_v51, %v2665_v14  ;;  %v7712_v51 = vsel %vm1037_vm12, 1.0, %v11492_v10  ;;  %vm1205_vm12 = vcmp.eq.s32.totalorder %v11692_v42, %v12217_v47  ;;  %v9961_v34 = vld [vmem:[#allocation2 + $0x2a0] sm:$0xff]  ;;  %v9972_v38 = vld [vmem:[#allocation2 + $0x290] sm:$0xff] }
  0xb9   : > { %v7748_v41 = vsel %vm1205_vm12, 1.0, %v11492_v10  ;;  %vm1201_vm12 = vcmp.eq.s32.totalorder %v11742_v3, %v12217_v47 }
  0xba   : > { %v3251_v61 = vunpack.c.l.b16 %v10978_v56  ;;  %v3252_v62 = vunpack.c.h.b16 %v10978_v56  ;;  %v10542_v56 = vpack.c.bf16 %v7713_v53, %v7712_v51  ;;  %v10596_v50 = vpack.c.bf16 %v7749_v45, %v7748_v41  ;;  %v9943_v53 = vld [vmem:[#allocation2 + $0x110] sm:$0xff] }
  0xbb   : > { %4707 = vmatpush.bf16.msra.mxu1 %v9929_v12  ;;  %4720 = vmatpush.bf16.msra.mxu2 %v9937_v52  ;;  %v9926_v12 = vld [vmem:[#allocation2 + $0x4a0] sm:$0xff]  ;;  %v9946_v52 = vld [vmem:[#allocation2 + $0x1c8] sm:$0xff] }
  0xbc   : > { %v3278_v14 = vpack.c.b16 %v3251_v61, %v3251_v61  ;;  %v3279_v36 = vpack.c.b16 %v3252_v62, %v3252_v62  ;;  %v10602_v61 = vpack.c.bf16 %v7753_v58, %v7752_v9  ;;  %v7729_v62 = vsel %vm1120_vm3, 1.0, %v11492_v10  ;;  %11172 = vst [vmem:[#allocation2 + $0x618] sm:$0xff] %v10542_v56   ;;  %v9963_v9 = vld [vmem:[#allocation2 + $0x4c8] sm:$0xff] }
  0xbd   : > { %v10566_v63 = vpack.c.bf16 %v7729_v62, %v7728_v17  ;;  %vm1294_vm3 = vcmp.eq.s32.totalorder %v11637_v16, %v12291_v13  ;;  %v7770_v58 = vsel %vm1293_vm2, 1.0, %v11492_v10  ;;  %v9954_v17 = vld [vmem:[#allocation2 + $0x320] sm:$0xff]  ;;  %11190 = vst [vmem:[#allocation2 + $0xb0] sm:$0xff] %v10596_v50   ;;  %vm1289_vm2 = vcmp.eq.s32.totalorder %v11673_v32, %v12291_v13  ;;  %v12399_v50 = vld [vmem:[%s11591_s21 + $0xe] ss:$0 sm:$0xff] }
  0xbe   : > { %4660 = vmatmul.bf16.vlgmr.msra.gmra.mxu3 %v3278_v14  ;;  %4673 = vmatmul.bf16.vlgmr.msrb.gmra.mxu1 %v3279_v36  ;;  %11192 = vst [vmem:[#allocation2 + $0x240] sm:$0xff] %v10602_v61   ;;  %v7771_v61 = vsel %vm1294_vm3, 1.0, %v11492_v10  ;;  %vm1290_vm3 = vcmp.eq.s32.totalorder %v11676_v33, %v12291_v13 }
  0xbf   : > { %v12259_v30 = vpop.f32.mrf.mxu0  ;;  %4708 = vmatpush.bf16.msra.mxu1 %v9928_v0  ;;  %4730 = vmatpush.bf16.msra.mxu3 %v9948_v1  ;;  %v7711_v0 = vsel %vm1036_vm5, 1.0, %v11492_v10  ;;  %11180 = vst [vmem:[#allocation2 + $0xa8] sm:$0xff] %v10566_v63   ;;  %vm1204_vm5 = vcmp.eq.s32.totalorder %v11726_v57, %v12217_v47  ;;  %v10629_v63 = vpack.c.bf16 %v7771_v61, %v7770_v58  ;;  %v9951_v61 = vld [vmem:[#allocation2 + $0x1f8] sm:$0xff] }
  0xc0   : > { %4721 = vmatpush.bf16.msra.mxu2 %v9936_v18  ;;  %v10539_v14 = vpack.c.bf16 %v7711_v0, %v7710_v44  ;;  %v9956_v18 = vld [vmem:[#allocation2 + $0x410] sm:$0xff]  ;;  %v7746_v44 = vsel %vm1203_vm4, 1.0, %v11492_v10  ;;  %v7747_v0 = vsel %vm1204_vm5, 1.0, %v11492_v10  ;;  %vm1199_vm4 = vcmp.eq.s32.totalorder %v11613_v6, %v12217_v47 }
  0xc1   : > { %11201 = vst [vmem:[#allocation2 + $0x80] sm:$0xff] %v10629_v63   ;;  %vm1200_vm5 = vcmp.eq.s32.totalorder %v11780_v39, %v12217_v47  ;;  %v9971_v63 = vld [vmem:[#allocation2 + $0x300] sm:$0xff] }
  0xc2   : > { %8060 = vmatmul.msk.bf16.gmra.mxu0 %vm2604_vm1, %v9874_v28  ;;  %11171 = vst [vmem:[#allocation2 + $0x5a8] sm:$0xff] %v10539_v14   ;;  %v12316_v28 = vld [vmem:[%s11591_s21 + $0xd] ss:$0 sm:$0xff]  ;;  %v9962_v14 = vld [vmem:[#allocation2 + $0x2c0] sm:$0xff] }
  0xc3   : > { %4709 = vmatpush.bf16.msra.mxu1 %v9927_v46  ;;  %4731 = vmatpush.bf16.msra.mxu3 %v9947_v60  ;;  %v9944_v46 = vld [vmem:[#allocation2 + $0x1e8] sm:$0xff]  ;;  %vm1377_vm14 = vcmp.eq.s32.totalorder %v11616_v7, %v12316_v28  ;;  %vm1378_vm15 = vcmp.eq.s32.totalorder %v11619_v8, %v12316_v28  ;;  %vm1375_vm6 = vcmp.eq.s32.totalorder %v11634_v15, %v12316_v28 }
  0xc4   : > { %4722 = vmatpush.bf16.msra.mxu2 %v9935_v40  ;;  %v9964_v60 = vld [vmem:[#allocation2 + $0x48] sm:$0xff]  ;;  %v7788_v51 = vsel %vm1377_vm14, 1.0, %v11492_v10  ;;  %vm1376_vm9 = vcmp.eq.s32.totalorder %v11637_v16, %v12316_v28  ;;  %vm1373_vm14 = vcmp.eq.s32.totalorder %v11652_v23, %v12316_v28 }
  0xc5   : > { %v7784_v41 = vsel %vm1373_vm14, 1.0, %v11492_v10  ;;  %vm1285_vm14 = vcmp.eq.s32.totalorder %v11718_v54, %v12291_v13 }
  0xc7   : > { %v2672_v1 = vpop.f32.mrf.mxu0  ;;  %4710 = vmatpush.bf16.msra.mxu1 %v9926_v12  ;;  %4732 = vmatpush.bf16.msra.mxu3 %v9946_v52  ;;  %v7789_v12 = vsel %vm1378_vm15, 1.0, %v11492_v10  ;;  %vm1374_vm15 = vcmp.eq.s32.totalorder %v11655_v24, %v12316_v28 }
  0xc8   : > { %v10983_v36 = vpack.c.bf16 %v2672_v1, %v12259_v30  ;;  %4723 = vmatpush.bf16.msra.mxu2 %v9934_v55  ;;  %v10632_v30 = vpack.c.bf16 %v7773_v27, %v7772_v26  ;;  %v2589_v55 = vunpack.c.l.b16 %v2535_v49  ;;  %v10656_v56 = vpack.c.bf16 %v7789_v12, %v7788_v51  ;;  %v9942_v1 = vld [vmem:[#allocation2 + $0x538] sm:$0xff] }
  0xc9   : > { %v7768_v27 = vsel %vm1291_vm10, 1.0, %v11492_v10  ;;  %v7785_v45 = vsel %vm1374_vm15, 1.0, %v11492_v10  ;;  %v7766_v49 = vsel %vm1289_vm2, 1.0, %v11492_v10  ;;  %vm1459_vm10 = vcmp.eq.s32.totalorder %v11616_v7, %v12399_v50 }
  0xca   : > { %v3253_v29 = vunpack.c.l.b16 %v10983_v36  ;;  %v3254_v59 = vunpack.c.h.b16 %v10983_v36  ;;  %11202 = vst [vmem:[#allocation2 + $0x3d0] sm:$0xff] %v10632_v30   ;;  %v12352_v62 = vpack.c.b16 %v2589_v55, %v2589_v55  ;;  %v7745_v30 = vsel %vm1202_vm13, 1.0, %v11492_v10 }
  0xcb   : > { %4711 = vmatpush.bf16.msra.mxu1 %v9925_v4  ;;  %4733 = vmatpush.bf16.msra.mxu3 %v9945_v11  ;;  %11210 = vst [vmem:[#allocation2 + $0x298] sm:$0xff] %v10656_v56   ;;  %v12358_v4 = vld [vmem:[%s11591_s21 + $0x15] ss:$0 sm:$0xff]  ;;  %v10593_v11 = vpack.c.bf16 %v7747_v0, %v7746_v44  ;;  %v7742_v55 = vsel %vm1199_vm4, 1.0, %v11492_v10  ;;  %v7743_v56 = vsel %vm1200_vm5, 1.0, %v11492_v10  ;;  %vm1370_vm13 = vcmp.eq.s32.totalorder %v11695_v43, %v12316_v28 }
  0xcc   : > { %4724 = vmatpush.bf16.msra.mxu2 %v9933_v21  ;;  %v3280_v37 = vpack.c.b16 %v3253_v29, %v3253_v29  ;;  %v3281_v40 = vpack.c.b16 %v3254_v59, %v3254_v59  ;;  %vm2027_vm7 = vcmp.eq.s32.totalorder %v11673_v32, %v12358_v4  ;;  %vm2028_vm8 = vcmp.eq.s32.totalorder %v11676_v33, %v12358_v4 }
  0xcd   : > { %v7910_v19 = vsel %vm2027_vm7, 1.0, %v11492_v10  ;;  %v7911_v36 = vsel %vm2028_vm8, 1.0, %v11492_v10  ;;  %v7787_v21 = vsel %vm1376_vm9, 1.0, %v11492_v10  ;;  %11189 = vst [vmem:[#allocation2 + $0x460] sm:$0xff] %v10593_v11   ;;  %v7769_v29 = vsel %vm1292_vm11, 1.0, %v11492_v10 }
  0xce   : > { %4686 = vmatmul.bf16.vlgmr.msrb.gmra.mxu2 %v3280_v37  ;;  %4699 = vmatmul.bf16.vlgmr.msrb.gmra.mxu3 %v3281_v40  ;;  %v10839_v25 = vpack.c.bf16 %v7911_v36, %v7910_v19  ;;  %v7744_v59 = vsel %vm1201_vm12, 1.0, %v11492_v10  ;;  %v10626_v35 = vpack.c.bf16 %v7769_v29, %v7768_v27  ;;  %v10587_v44 = vpack.c.bf16 %v7743_v56, %v7742_v55  ;;  %v9950_v27 = vld [vmem:[#allocation2 + $0x618] sm:$0xff]  ;;  %v9970_v29 = vld [vmem:[#allocation2 + $0x240] sm:$0xff] }
  0xcf   : > { %4743 = vmatpush.bf16.msrb.mxu1 %v9956_v18  ;;  %v2675_v52 = vpop.f32.mrf.mxu0  ;;  %4734 = vmatpush.bf16.msra.mxu3 %v9944_v46  ;;  %v7786_v18 = vsel %vm1375_vm6, 1.0, %v11492_v10  ;;  %v10590_v37 = vpack.c.bf16 %v7745_v30, %v7744_v59  ;;  %vm1371_vm6 = vcmp.eq.s32.totalorder %v11673_v32, %v12316_v28  ;;  %vm1372_vm7 = vcmp.eq.s32.totalorder %v11676_v33, %v12316_v28  ;;  %v9957_v56 = vld [vmem:[#allocation2 + $0x258] sm:$0xff] }
  0xd0   : > { %4756 = vmatpush.bf16.msrb.mxu2 %v9964_v60  ;;  %v10653_v26 = vpack.c.bf16 %v7787_v21, %v7786_v18  ;;  %11271 = vst [vmem:[#allocation2 + $0x118] sm:$0xff] %v10839_v25   ;;  %v9941_v60 = vld [vmem:[#allocation2 + $0x5a0] sm:$0xff]  ;;  %v7782_v47 = vsel %vm1371_vm6, 1.0, %v11492_v10  ;;  %vm1287_vm8 = vcmp.eq.s32.totalorder %v11692_v42, %v12291_v13  ;;  %vm1288_vm9 = vcmp.eq.s32.totalorder %v11695_v43, %v12291_v13  ;;  %v9959_v18 = vld [vmem:[#allocation2 + $0x3a8] sm:$0xff] }
  0xd1   : > { %11200 = vst [vmem:[#allocation2 + $0x2e0] sm:$0xff] %v10626_v35   ;;  %v7783_v11 = vsel %vm1372_vm7, 1.0, %v11492_v10  ;;  %v7765_v19 = vsel %vm1288_vm9, 1.0, %v11492_v10  ;;  %vm1460_vm11 = vcmp.eq.s32.totalorder %v11619_v8, %v12399_v50  ;;  %v7804_v25 = vsel %vm1459_vm10, 1.0, %v11492_v10 }
  0xd2   : > { %8061 = vmatmul.msk.bf16.gmra.mxu0 %vm2604_vm1, %v9875_v48  ;;  %11209 = vst [vmem:[#allocation2 + $0xc0] sm:$0xff] %v10653_v26   ;;  %v10650_v48 = vpack.c.bf16 %v7785_v45, %v7784_v41  ;;  %v10647_v21 = vpack.c.bf16 %v7783_v11, %v7782_v47  ;;  %v7805_v26 = vsel %vm1460_vm11, 1.0, %v11492_v10  ;;  %vm1369_vm12 = vcmp.eq.s32.totalorder %v11692_v42, %v12316_v28  ;;  %v9969_v41 = vld [vmem:[#allocation2 + $0x200] sm:$0xff]  ;;  %v9968_v47 = vld [vmem:[#allocation2 + $0xb0] sm:$0xff] }
  0xd3   : > { %4744 = vmatpush.bf16.msrb.mxu1 %v9955_v31  ;;  %4735 = vmatpush.bf16.msra.mxu3 %v9943_v53  ;;  %v9952_v31 = vld [vmem:[#allocation2 + $0x140] sm:$0xff]  ;;  %11188 = vst [vmem:[#allocation2 + $0x420] sm:$0xff] %v10590_v37   ;;  %v9960_v53 = vld [vmem:[#allocation2 + $0x438] sm:$0xff]  ;;  %v10680_v59 = vpack.c.bf16 %v7805_v26, %v7804_v25  ;;  %v7780_v30 = vsel %vm1369_vm12, 1.0, %v11492_v10  ;;  %vm1286_vm15 = vcmp.eq.s32.totalorder %v11726_v57, %v12291_v13  ;;  %v9958_v37 = vld [vmem:[#allocation2 + $0xa8] sm:$0xff] }
  0xd4   : > { %4757 = vmatpush.bf16.msrb.mxu2 %v9963_v9  ;;  %11208 = vst [vmem:[#allocation2 + $0x1f0] sm:$0xff] %v10650_v48   ;;  %v7763_v35 = vsel %vm1286_vm15, 1.0, %v11492_v10  ;;  %vm1457_vm2 = vcmp.eq.s32.totalorder %v11634_v15, %v12399_v50  ;;  %vm1367_vm4 = vcmp.eq.s32.totalorder %v11718_v54, %v12316_v28  ;;  %vm1368_vm5 = vcmp.eq.s32.totalorder %v11726_v57, %v12316_v28  ;;  %v9979_v11 = vld [vmem:[#allocation2 + $0x80] sm:$0xff] }
  0xd5   : > { %11187 = vst [vmem:[#allocation2 + $0x5d0] sm:$0xff] %v10587_v44   ;;  %v7778_v48 = vsel %vm1367_vm4, 1.0, %v11492_v10  ;;  %vm1283_vm6 = vcmp.eq.s32.totalorder %v11742_v3, %v12291_v13  ;;  %vm1284_vm7 = vcmp.eq.s32.totalorder %v11755_v20, %v12291_v13  ;;  %vm1456_vm9 = vcmp.eq.s32.totalorder %v11655_v24, %v12399_v50 }
  0xd6   : > { %11207 = vst [vmem:[#allocation2 + $0x78] sm:$0xff] %v10647_v21   ;;  %vm1365_vm10 = vcmp.eq.s32.totalorder %v11742_v3, %v12316_v28  ;;  %vm1366_vm11 = vcmp.eq.s32.totalorder %v11755_v20, %v12316_v28  ;;  %vm1281_vm12 = vcmp.eq.s32.totalorder %v11613_v6, %v12291_v13  ;;  %vm1454_vm15 = vcmp.eq.s32.totalorder %v11676_v33, %v12399_v50 }
  0xd7   : > { %4745 = vmatpush.bf16.msrb.mxu1 %v9954_v17  ;;  %v2677_v46 = vpop.f32.mrf.mxu0  ;;  %4736 = vmatpush.bf16.msra.mxu3 %v9942_v1  ;;  %v10049_v0 = vld [vmem:[#allocation2 + $0x118] sm:$0xff]  ;;  %v9876_v1 = vld [vmem:[%s13239_s3 + $0x60] sm:$0xff]  ;;  %11218 = vst [vmem:[#allocation2 + $0x138] sm:$0xff] %v10680_v59   ;;  %vm2025_vm4 = vcmp.eq.s32.totalorder %v11692_v42, %v12358_v4 }
  0xd8   : > { %4758 = vmatpush.bf16.msrb.mxu2 %v9962_v14  ;;  %v10988_v40 = vpack.c.bf16 %v2677_v46, %v2675_v52  ;;  %v7767_v52 = vsel %vm1290_vm3, 1.0, %v11492_v10  ;;  %v7764_v14 = vsel %vm1287_vm8, 1.0, %v11492_v10  ;;  %4902 = vmatpush.bf16.msrb.mxu0 %v10049_v0  ;;  %v7781_v46 = vsel %vm1370_vm13, 1.0, %v11492_v10  ;;  %v9988_v0 = vld [vmem:[#allocation2 + $0x298] sm:$0xff] }
  0xd9   : > { %v10623_v9 = vpack.c.bf16 %v7767_v52, %v7766_v49  ;;  %vm1458_vm3 = vcmp.eq.s32.totalorder %v11637_v16, %v12399_v50  ;;  %v9980_v49 = vld [vmem:[#allocation2 + $0x3d0] sm:$0xff]  ;;  %v7760_v52 = vsel %vm1283_vm6, 1.0, %v11492_v10  ;;  %vm1455_vm8 = vcmp.eq.s32.totalorder %v11652_v23, %v12399_v50 }
  0xda   : > { %v3255_v51 = vunpack.c.l.b16 %v10988_v40  ;;  %v3256_v12 = vunpack.c.h.b16 %v10988_v40  ;;  %v7803_v45 = vsel %vm1458_vm3, 1.0, %v11492_v10  ;;  %vm1282_vm13 = vcmp.eq.s32.totalorder %v11780_v39, %v12291_v13 }
  0xdb   : > { %4746 = vmatpush.bf16.msrb.mxu1 %v9953_v22  ;;  %4737 = vmatpush.bf16.msra.mxu3 %v9941_v60  ;;  %11199 = vst [vmem:[#allocation2 + $0x430] sm:$0xff] %v10623_v9   ;;  %v10620_v22 = vpack.c.bf16 %v7765_v19, %v7764_v14  ;;  %v10644_v60 = vpack.c.bf16 %v7781_v46, %v7780_v30  ;;  %v7761_v9 = vsel %vm1284_vm7, 1.0, %v11492_v10  ;;  %v7776_v14 = vsel %vm1365_vm10, 1.0, %v11492_v10  ;;  %v9978_v30 = vld [vmem:[#allocation2 + $0x2e0] sm:$0xff] }
  0xdc   : > { %4759 = vmatpush.bf16.msrb.mxu2 %v9961_v34  ;;  %v3282_v58 = vpack.c.b16 %v3255_v51, %v3255_v51  ;;  %v3283_v17 = vpack.c.b16 %v3256_v12, %v3256_v12  ;;  %v7762_v34 = vsel %vm1285_vm14, 1.0, %v11492_v10  ;;  %v7779_v12 = vsel %vm1368_vm5, 1.0, %v11492_v10 }
  0xdd   : > { %11198 = vst [vmem:[#allocation2 + $0x360] sm:$0xff] %v10620_v22   ;;  %v10617_v40 = vpack.c.bf16 %v7763_v35, %v7762_v34  ;;  %v7777_v19 = vsel %vm1366_vm11, 1.0, %v11492_v10  ;;  %v7758_v22 = vsel %vm1281_vm12, 1.0, %v11492_v10  ;;  %v7759_v25 = vsel %vm1282_vm13, 1.0, %v11492_v10 }
  0xde   : > { %4712 = vmatmul.bf16.vlgmr.msra.gmra.mxu1 %v3282_v58  ;;  %4725 = vmatmul.bf16.vlgmr.msra.gmra.mxu2 %v3283_v17  ;;  %11206 = vst [vmem:[#allocation2 + $0x608] sm:$0xff] %v10644_v60   ;;  %v10614_v58 = vpack.c.bf16 %v7761_v9, %v7760_v52  ;;  %v7800_v17 = vsel %vm1455_vm8, 1.0, %v11492_v10  ;;  %v10638_v21 = vpack.c.bf16 %v7777_v19, %v7776_v14  ;;  %v7799_v60 = vsel %vm1454_vm15, 1.0, %v11492_v10 }
  0xdf   : > { %4747 = vmatpush.bf16.msrb.mxu1 %v9952_v31  ;;  %4769 = vmatpush.bf16.msrb.mxu3 %v9972_v38  ;;  %v2680_v36 = vpop.f32.mrf.mxu0  ;;  %v7802_v31 = vsel %vm1457_vm2, 1.0, %v11492_v10  ;;  %v9949_v38 = vld [vmem:[#allocation2 + $0x5a8] sm:$0xff]  ;;  %11197 = vst [vmem:[#allocation2 + $0x5b8] sm:$0xff] %v10617_v40   ;;  %vm1453_vm14 = vcmp.eq.s32.totalorder %v11673_v32, %v12399_v50  ;;  %v10611_v59 = vpack.c.bf16 %v7759_v25, %v7758_v22  ;;  %v12494_v40 = vld [vmem:[%s11591_s21 + $0x10] ss:$0 sm:$0xff] }
  0xe0   : > { %4760 = vmatpush.bf16.msrb.mxu2 %v9960_v53  ;;  %v10677_v51 = vpack.c.bf16 %v7803_v45, %v7802_v31  ;;  %v10641_v53 = vpack.c.bf16 %v7779_v12, %v7778_v48  ;;  %11196 = vst [vmem:[#allocation2 + $0x1e0] sm:$0xff] %v10614_v58   ;;  %v7798_v46 = vsel %vm1453_vm14, 1.0, %v11492_v10  ;;  %vm2026_vm5 = vcmp.eq.s32.totalorder %v11695_v43, %v12358_v4  ;;  %v9966_v45 = vld [vmem:[#allocation2 + $0x420] sm:$0xff]  ;;  %v9986_v48 = vld [vmem:[#allocation2 + $0x1f0] sm:$0xff] }
  0xe1   : > { %11204 = vst [vmem:[#allocation2 + $0x678] sm:$0xff] %v10638_v21   ;;  %v10671_v35 = vpack.c.bf16 %v7799_v60, %v7798_v46  ;;  %vm1363_vm6 = vcmp.eq.s32.totalorder %v11613_v6, %v12316_v28  ;;  %vm1364_vm7 = vcmp.eq.s32.totalorder %v11780_v39, %v12316_v28  ;;  %vm1451_vm8 = vcmp.eq.s32.totalorder %v11692_v42, %v12399_v50 }
  0xe2   : > { %8062 = vmatmul.msk.bf16.gmra.mxu0 %vm2604_vm1, %v9876_v1  ;;  %11217 = vst [vmem:[#allocation2 + $0x198] sm:$0xff] %v10677_v51   ;;  %v7774_v51 = vsel %vm1363_vm6, 1.0, %v11492_v10  ;;  %v9977_v12 = vld [vmem:[#allocation2 + $0x430] sm:$0xff]  ;;  %v7796_v9 = vsel %vm1451_vm8, 1.0, %v11492_v10  ;;  %vm1623_vm10 = vcmp.eq.s32.totalorder %v11616_v7, %v12494_v40  ;;  %vm1624_vm11 = vcmp.eq.s32.totalorder %v11619_v8, %v12494_v40 }
  0xe3   : > { %4748 = vmatpush.bf16.msrb.mxu1 %v9951_v61  ;;  %4770 = vmatpush.bf16.msrb.mxu3 %v9971_v63  ;;  %v7801_v61 = vsel %vm1456_vm9, 1.0, %v11492_v10  ;;  %v12467_v63 = vld [vmem:[%s11591_s21 + $0xf] ss:$0 sm:$0xff]  ;;  %11205 = vst [vmem:[#allocation2 + $0x340] sm:$0xff] %v10641_v53   ;;  %v7775_v53 = vsel %vm1364_vm7, 1.0, %v11492_v10  ;;  %vm1452_vm9 = vcmp.eq.s32.totalorder %v11695_v43, %v12399_v50  ;;  %v7836_v58 = vsel %vm1623_vm10, 1.0, %v11492_v10 }
  0xe4   : > { %4761 = vmatpush.bf16.msrb.mxu2 %v9959_v18  ;;  %v10674_v1 = vpack.c.bf16 %v7801_v61, %v7800_v17  ;;  %vm1541_vm2 = vcmp.eq.s32.totalorder %v11616_v7, %v12467_v63  ;;  %vm1542_vm3 = vcmp.eq.s32.totalorder %v11619_v8, %v12467_v63  ;;  %11195 = vst [vmem:[#allocation2 + $0x68] sm:$0xff] %v10611_v59   ;;  %v7837_v17 = vsel %vm1624_vm11, 1.0, %v11492_v10  ;;  %v9985_v61 = vld [vmem:[#allocation2 + $0x78] sm:$0xff] }
  0xe5   : > { %v7820_v34 = vsel %vm1541_vm2, 1.0, %v11492_v10  ;;  %11215 = vst [vmem:[#allocation2 + $0x310] sm:$0xff] %v10671_v35   ;;  %v10635_v28 = vpack.c.bf16 %v7775_v53, %v7774_v51  ;;  %vm1539_vm12 = vcmp.eq.s32.totalorder %v11634_v15, %v12467_v63  ;;  %vm1540_vm13 = vcmp.eq.s32.totalorder %v11637_v16, %v12467_v63 }
  0xe6   : > { %11216 = vst [vmem:[#allocation2 + $0x488] sm:$0xff] %v10674_v1   ;;  %v9996_v1 = vld [vmem:[#allocation2 + $0x138] sm:$0xff]  ;;  %vm1449_vm14 = vcmp.eq.s32.totalorder %v11718_v54, %v12399_v50  ;;  %vm1450_vm15 = vcmp.eq.s32.totalorder %v11726_v57, %v12399_v50  ;;  %vm1621_vm2 = vcmp.eq.s32.totalorder %v11634_v15, %v12494_v40  ;;  %vm1447_vm6 = vcmp.eq.s32.totalorder %v11742_v3, %v12399_v50 }
  0xe7   : > { %4749 = vmatpush.bf16.msrb.mxu1 %v9950_v27  ;;  %4771 = vmatpush.bf16.msrb.mxu3 %v9970_v29  ;;  %v2682_v55 = vpop.f32.mrf.mxu0  ;;  %v9967_v27 = vld [vmem:[#allocation2 + $0x460] sm:$0xff]  ;;  %11203 = vst [vmem:[#allocation2 + $0x150] sm:$0xff] %v10635_v28   ;;  %v7794_v19 = vsel %vm1449_vm14, 1.0, %v11492_v10  ;;  %v7834_v22 = vsel %vm1621_vm2, 1.0, %v11492_v10  ;;  %vm1448_vm7 = vcmp.eq.s32.totalorder %v11755_v20, %v12399_v50  ;;  %vm1619_vm8 = vcmp.eq.s32.totalorder %v11652_v23, %v12494_v40 }
  0xe8   : > { %4762 = vmatpush.bf16.msrb.mxu2 %v9958_v37  ;;  %v10993_v44 = vpack.c.bf16 %v2682_v55, %v2680_v36  ;;  %v9987_v29 = vld [vmem:[#allocation2 + $0xc0] sm:$0xff]  ;;  %v7821_v37 = vsel %vm1542_vm3, 1.0, %v11492_v10  ;;  %v7797_v55 = vsel %vm1452_vm9, 1.0, %v11492_v10  ;;  %vm1622_vm3 = vcmp.eq.s32.totalorder %v11637_v16, %v12494_v40 }
  0xe9   : > { %v7835_v25 = vsel %vm1622_vm3, 1.0, %v11492_v10  ;;  %v9995_v59 = vld [vmem:[#allocation2 + $0x198] sm:$0xff]  ;;  %vm1620_vm9 = vcmp.eq.s32.totalorder %v11655_v24, %v12494_v40  ;;  %vm1535_vm10 = vcmp.eq.s32.totalorder %v11673_v32, %v12467_v63  ;;  %v9974_v51 = vld [vmem:[#allocation2 + $0x1e0] sm:$0xff]  ;;  %vm1536_vm11 = vcmp.eq.s32.totalorder %v11676_v33, %v12467_v63 }
  0xea   : > { %v3257_v36 = vunpack.c.l.b16 %v10993_v44  ;;  %v3258_v18 = vunpack.c.h.b16 %v10993_v44  ;;  %v10728_v44 = vpack.c.bf16 %v7837_v17, %v7836_v58  ;;  %v7833_v53 = vsel %vm1620_vm9, 1.0, %v11492_v10 }
  0xeb   : > { %4750 = vmatpush.bf16.msrb.mxu1 %v9949_v38  ;;  %4772 = vmatpush.bf16.msrb.mxu3 %v9969_v41  ;;  %v10704_v38 = vpack.c.bf16 %v7821_v37, %v7820_v34  ;;  %v7908_v41 = vsel %vm2025_vm4, 1.0, %v11492_v10  ;;  %vm1537_vm4 = vcmp.eq.s32.totalorder %v11652_v23, %v12467_v63  ;;  %vm1617_vm14 = vcmp.eq.s32.totalorder %v11673_v32, %v12494_v40 }
  0xec   : > { %4763 = vmatpush.bf16.msrb.mxu2 %v9957_v56  ;;  %v3284_v13 = vpack.c.b16 %v3257_v36, %v3257_v36  ;;  %v3285_v26 = vpack.c.b16 %v3258_v18, %v3258_v18  ;;  %v10668_v56 = vpack.c.bf16 %v7797_v55, %v7796_v9  ;;  %11234 = vst [vmem:[#allocation2 + $0x368] sm:$0xff] %v10728_v44   ;;  %v7795_v36 = vsel %vm1450_vm15, 1.0, %v11492_v10 }
  0xed   : > { %11226 = vst [vmem:[#allocation2 + $0x168] sm:$0xff] %v10704_v38   ;;  %v10665_v21 = vpack.c.bf16 %v7795_v36, %v7794_v19  ;;  %v7793_v38 = vsel %vm1448_vm7, 1.0, %v11492_v10  ;;  %v7814_v9 = vsel %vm1535_vm10, 1.0, %v11492_v10  ;;  %v7815_v55 = vsel %vm1536_vm11, 1.0, %v11492_v10 }
  0xee   : > { %4738 = vmatmul.bf16.vlgmr.msra.gmra.mxu3 %v3284_v13  ;;  %4751 = vmatmul.bf16.vlgmr.msrb.gmra.mxu1 %v3285_v26  ;;  %11214 = vst [vmem:[#allocation2 + $0x128] sm:$0xff] %v10668_v56   ;;  %v9984_v26 = vld [vmem:[#allocation2 + $0x608] sm:$0xff]  ;;  %v12565_v56 = vld [vmem:[%s11591_s21 + $0x11] ss:$0 sm:$0xff]  ;;  %v10695_v17 = vpack.c.bf16 %v7815_v55, %v7814_v9  ;;  %vm1618_vm15 = vcmp.eq.s32.totalorder %v11676_v33, %v12494_v40 }
  0xef   : > { %4782 = vmatpush.bf16.msra.mxu1 %v9980_v49  ;;  %4773 = vmatpush.bf16.msrb.mxu3 %v9968_v47  ;;  %v2685_v31 = vpop.f32.mrf.mxu0  ;;  %v7909_v49 = vsel %vm2026_vm5, 1.0, %v11492_v10  ;;  %v7818_v47 = vsel %vm1539_vm12, 1.0, %v11492_v10  ;;  %vm1538_vm5 = vcmp.eq.s32.totalorder %v11655_v24, %v12467_v63  ;;  %11213 = vst [vmem:[#allocation2 + $0x188] sm:$0xff] %v10665_v21   ;;  %vm1445_vm12 = vcmp.eq.s32.totalorder %v11613_v6, %v12399_v50 }
  0xf0   : > { %4795 = vmatpush.bf16.msra.mxu2 %v9988_v0  ;;  %v10836_v52 = vpack.c.bf16 %v7909_v49, %v7908_v41  ;;  %v9976_v0 = vld [vmem:[#allocation2 + $0x360] sm:$0xff]  ;;  %v7817_v46 = vsel %vm1538_vm5, 1.0, %v11492_v10  ;;  %vm1533_vm2 = vcmp.eq.s32.totalorder %v11692_v42, %v12467_v63  ;;  %11223 = vst [vmem:[#allocation2 + $0x6b8] sm:$0xff] %v10695_v17   ;;  %vm1534_vm3 = vcmp.eq.s32.totalorder %v11695_v43, %v12467_v63 }
  0xf1   : > { %vm1706_vm5 = vcmp.eq.s32.totalorder %v11619_v8, %v12565_v56  ;;  %vm1616_vm7 = vcmp.eq.s32.totalorder %v11695_v43, %v12494_v40  ;;  %vm1532_vm9 = vcmp.eq.s32.totalorder %v11726_v57, %v12467_v63  ;;  %vm1703_vm10 = vcmp.eq.s32.totalorder %v11634_v15, %v12565_v56 }
  0xf2   : > { %8063 = vmatmul.msk.bf16.gmra.mxu0 %vm2604_vm1, %v12352_v62  ;;  %11270 = vst [vmem:[#allocation2 + $0x38] sm:$0xff] %v10836_v52   ;;  %v9965_v62 = vld [vmem:[#allocation2 + $0x5d0] sm:$0xff]  ;;  %v7832_v52 = vsel %vm1619_vm8, 1.0, %v11492_v10  ;;  %vm1531_vm8 = vcmp.eq.s32.totalorder %v11718_v54, %v12467_v63  ;;  %vm1704_vm11 = vcmp.eq.s32.totalorder %v11637_v16, %v12565_v56 }
  0xf3   : > { %4783 = vmatpush.bf16.msra.mxu1 %v9979_v11  ;;  %4774 = vmatpush.bf16.msrb.mxu3 %v9967_v27  ;;  %v7819_v11 = vsel %vm1540_vm13, 1.0, %v11492_v10  ;;  %v10725_v27 = vpack.c.bf16 %v7835_v25, %v7834_v22  ;;  %v10722_v28 = vpack.c.bf16 %v7833_v53, %v7832_v52  ;;  %vm1446_vm13 = vcmp.eq.s32.totalorder %v11780_v39, %v12399_v50  ;;  %v9973_v50 = vld [vmem:[#allocation2 + $0x68] sm:$0xff] }
  0xf4   : > { %4796 = vmatpush.bf16.msra.mxu2 %v9987_v29  ;;  %v10701_v14 = vpack.c.bf16 %v7819_v11, %v7818_v47  ;;  %v9975_v29 = vld [vmem:[#allocation2 + $0x5b8] sm:$0xff]  ;;  %v7791_v44 = vsel %vm1446_vm13, 1.0, %v11492_v10  ;;  %v7830_v47 = vsel %vm1617_vm14, 1.0, %v11492_v10  ;;  %v7831_v11 = vsel %vm1618_vm15, 1.0, %v11492_v10  ;;  %v10004_v19 = vld [vmem:[#allocation2 + $0x168] sm:$0xff] }
  0xf5   : > { %11233 = vst [vmem:[#allocation2 + $0x388] sm:$0xff] %v10725_v27   ;;  %v10719_v36 = vpack.c.bf16 %v7831_v11, %v7830_v47  ;;  %v7853_v25 = vsel %vm1706_vm5, 1.0, %v11492_v10  ;;  %vm1614_vm13 = vcmp.eq.s32.totalorder %v11726_v57, %v12494_v40  ;;  %vm1529_vm14 = vcmp.eq.s32.totalorder %v11742_v3, %v12467_v63 }
  0xf6   : > { %11225 = vst [vmem:[#allocation2 + $0x680] sm:$0xff] %v10701_v14   ;;  %v7812_v14 = vsel %vm1533_vm2, 1.0, %v11492_v10  ;;  %vm1530_vm15 = vcmp.eq.s32.totalorder %v11755_v20, %v12467_v63  ;;  %vm1701_vm2 = vcmp.eq.s32.totalorder %v11652_v23, %v12565_v56  ;;  %vm1612_vm5 = vcmp.eq.s32.totalorder %v11755_v20, %v12494_v40 }
  0xf7   : > { %4784 = vmatpush.bf16.msra.mxu1 %v9978_v30  ;;  %4775 = vmatpush.bf16.msrb.mxu3 %v9966_v45  ;;  %v2687_v18 = vpop.f32.mrf.mxu0  ;;  %v7816_v30 = vsel %vm1537_vm4, 1.0, %v11492_v10  ;;  %11232 = vst [vmem:[#allocation2 + $0x560] sm:$0xff] %v10722_v28   ;;  %vm1705_vm4 = vcmp.eq.s32.totalorder %v11616_v7, %v12565_v56  ;;  %v7809_v17 = vsel %vm1530_vm15, 1.0, %v11492_v10  ;;  %v7848_v47 = vsel %vm1701_vm2, 1.0, %v11492_v10 }
  0xf8   : > { %4797 = vmatpush.bf16.msra.mxu2 %v9986_v48  ;;  %v10998_v13 = vpack.c.bf16 %v2687_v18, %v2685_v31  ;;  %v10698_v37 = vpack.c.bf16 %v7817_v46, %v7816_v30  ;;  %v7792_v31 = vsel %vm1447_vm6, 1.0, %v11492_v10  ;;  %v9983_v48 = vld [vmem:[#allocation2 + $0x340] sm:$0xff]  ;;  %v7813_v18 = vsel %vm1534_vm3, 1.0, %v11492_v10  ;;  %11231 = vst [vmem:[#allocation2 + $0x448] sm:$0xff] %v10719_v36   ;;  %v10001_v36 = vld [vmem:[#allocation2 + $0x6b8] sm:$0xff] }
  0xf9   : > { %v10048_v35 = vld [vmem:[#allocation2 + $0x38] sm:$0xff]  ;;  %v10662_v49 = vpack.c.bf16 %v7793_v38, %v7792_v31  ;;  %v10692_v21 = vpack.c.bf16 %v7813_v18, %v7812_v14  ;;  %v7852_v22 = vsel %vm1705_vm4, 1.0, %v11492_v10  ;;  %vm1615_vm6 = vcmp.eq.s32.totalorder %v11692_v42, %v12494_v40 }
  0xfa   : > { %v3259_v60 = vunpack.c.l.b16 %v10998_v13  ;;  %v3260_v34 = vunpack.c.h.b16 %v10998_v13  ;;  %4903 = vmatpush.bf16.msrb.mxu0 %v10048_v35  ;;  %11224 = vst [vmem:[#allocation2 + $0x230] sm:$0xff] %v10698_v37   ;;  %v9981_v13 = vld [vmem:[#allocation2 + $0x150] sm:$0xff]  ;;  %v7828_v27 = vsel %vm1615_vm6, 1.0, %v11492_v10  ;;  %v7829_v30 = vsel %vm1616_vm7, 1.0, %v11492_v10 }
  0xfb   : > { %4785 = vmatpush.bf16.msra.mxu1 %v9977_v12  ;;  %4776 = vmatpush.bf16.msrb.mxu3 %v9965_v62  ;;  %v9994_v12 = vld [vmem:[#allocation2 + $0x488] sm:$0xff]  ;;  %11212 = vst [vmem:[#allocation2 + $0x2f8] sm:$0xff] %v10662_v49   ;;  %v7790_v62 = vsel %vm1445_vm12, 1.0, %v11492_v10  ;;  %v7810_v46 = vsel %vm1531_vm8, 1.0, %v11492_v10  ;;  %v7811_v35 = vsel %vm1532_vm9, 1.0, %v11492_v10  ;;  %v7850_v37 = vsel %vm1703_vm10, 1.0, %v11492_v10 }
  0xfc   : > { %4798 = vmatpush.bf16.msra.mxu2 %v9985_v61  ;;  %v3286_v41 = vpack.c.b16 %v3259_v60, %v3259_v60  ;;  %v3287_v45 = vpack.c.b16 %v3260_v34, %v3260_v34  ;;  %v9982_v61 = vld [vmem:[#allocation2 + $0x678] sm:$0xff]  ;;  %11222 = vst [vmem:[#allocation2 + $0x398] sm:$0xff] %v10692_v21   ;;  %v10716_v34 = vpack.c.bf16 %v7829_v30, %v7828_v27  ;;  %v10011_v52 = vld [vmem:[#allocation2 + $0x388] sm:$0xff]  ;;  %v7825_v18 = vsel %vm1612_vm5, 1.0, %v11492_v10 }
  0xfd   : > { %v10003_v60 = vld [vmem:[#allocation2 + $0x680] sm:$0xff]  ;;  %v10689_v38 = vpack.c.bf16 %v7811_v35, %v7810_v46  ;;  %vm1613_vm12 = vcmp.eq.s32.totalorder %v11718_v54, %v12494_v40  ;;  %vm1702_vm3 = vcmp.eq.s32.totalorder %v11655_v24, %v12565_v56  ;;  %vm1611_vm4 = vcmp.eq.s32.totalorder %v11742_v3, %v12494_v40 }
  0xfe   : > { %4764 = vmatmul.bf16.vlgmr.msrb.gmra.mxu2 %v3286_v41  ;;  %4777 = vmatmul.bf16.vlgmr.msrb.gmra.mxu3 %v3287_v45  ;;  %v7851_v41 = vsel %vm1704_vm11, 1.0, %v11492_v10  ;;  %11230 = vst [vmem:[#allocation2 + $0x170] sm:$0xff] %v10716_v34   ;;  %v7826_v49 = vsel %vm1613_vm12, 1.0, %v11492_v10  ;;  %v10010_v11 = vld [vmem:[#allocation2 + $0x560] sm:$0xff]  ;;  %vm1527_vm6 = vcmp.eq.s32.totalorder %v11613_v6, %v12467_v63  ;;  %vm1528_vm7 = vcmp.eq.s32.totalorder %v11780_v39, %v12467_v63 }
  0xff   : > { %4786 = vmatpush.bf16.msra.mxu1 %v9976_v0  ;;  %4808 = vmatpush.bf16.msra.mxu3 %v9996_v1  ;;  %v2690_v58 = vpop.f32.mrf.mxu0  ;;  %v9993_v0 = vld [vmem:[#allocation2 + $0x310] sm:$0xff]  ;;  %v10659_v1 = vpack.c.bf16 %v7791_v44, %v7790_v62  ;;  %11221 = vst [vmem:[#allocation2 + $0x120] sm:$0xff] %v10689_v38   ;;  %vm1699_vm8 = vcmp.eq.s32.totalorder %v11673_v32, %v12565_v56 }
 0x100   : > { %4799 = vmatpush.bf16.msra.mxu2 %v9984_v26  ;;  %v10752_v26 = vpack.c.bf16 %v7853_v25, %v7852_v22  ;;  %v7806_v25 = vsel %vm1527_vm6, 1.0, %v11492_v10  ;;  %vm1700_vm9 = vcmp.eq.s32.totalorder %v11676_v33, %v12565_v56  ;;  %v7846_v27 = vsel %vm1699_vm8, 1.0, %v11492_v10 }
 0x101   : > { %11211 = vst [vmem:[#allocation2 + $0x408] sm:$0xff] %v10659_v1   ;;  %v10002_v9 = vld [vmem:[#allocation2 + $0x230] sm:$0xff]  ;;  %vm2023_vm12 = vcmp.eq.s32.totalorder %v11718_v54, %v12358_v4  ;;  %vm1610_vm15 = vcmp.eq.s32.totalorder %v11780_v39, %v12494_v40  ;;  %vm1697_vm2 = vcmp.eq.s32.totalorder %v11692_v42, %v12565_v56  ;;  %vm1695_vm8 = vcmp.eq.s32.totalorder %v11718_v54, %v12565_v56 }
 0x102   : > { %11242 = vst [vmem:[#allocation2 + $0x70] sm:$0xff] %v10752_v26   ;;  %v9990_v1 = vld [vmem:[#allocation2 + $0x2f8] sm:$0xff]  ;;  %v7906_v38 = vsel %vm2023_vm12, 1.0, %v11492_v10 }
 0x103   : > { %4787 = vmatpush.bf16.msra.mxu1 %v9975_v29  ;;  %4809 = vmatpush.bf16.msra.mxu3 %v9995_v59  ;;  %v9992_v29 = vld [vmem:[#allocation2 + $0x128] sm:$0xff] }
 0x104   : > { %4800 = vmatpush.bf16.msra.mxu2 %v9983_v48  ;;  %v10012_v59 = vld [vmem:[#allocation2 + $0x368] sm:$0xff]  ;;  %v10749_v48 = vpack.c.bf16 %v7851_v41, %v7850_v37  ;;  %v12659_v37 = vld [vmem:[%s11591_s21 + $0x13] ss:$0 sm:$0xff] }
 0x105   : > { %vm1870_vm5 = vcmp.eq.s32.totalorder %v11619_v8, %v12659_v37 }
 0x106   : > { %11241 = vst [vmem:[#allocation2 + $0x100] sm:$0xff] %v10749_v48  }
 0x107   : > { %4788 = vmatpush.bf16.msra.mxu1 %v9974_v51  ;;  %4810 = vmatpush.bf16.msra.mxu3 %v9994_v12  ;;  %v2692_v31 = vpop.f32.mrf.mxu0  ;;  %v7827_v51 = vsel %vm1614_vm13, 1.0, %v11492_v10  ;;  %v9991_v12 = vld [vmem:[#allocation2 + $0x188] sm:$0xff]  ;;  %vm2024_vm13 = vcmp.eq.s32.totalorder %v11726_v57, %v12358_v4  ;;  %v10008_v4 = vld [vmem:[#allocation2 + $0x170] sm:$0xff] }
 0x108   : > { %4801 = vmatpush.bf16.msra.mxu2 %v9982_v61  ;;  %v11003_v45 = vpack.c.bf16 %v2692_v31, %v2690_v58  ;;  %v10713_v53 = vpack.c.bf16 %v7827_v51, %v7826_v49  ;;  %v7808_v58 = vsel %vm1529_vm14, 1.0, %v11492_v10  ;;  %v9989_v63 = vld [vmem:[#allocation2 + $0x408] sm:$0xff]  ;;  %vm1609_vm14 = vcmp.eq.s32.totalorder %v11613_v6, %v12494_v40  ;;  %v9999_v40 = vld [vmem:[#allocation2 + $0x120] sm:$0xff] }
 0x109   : > { %v10686_v62 = vpack.c.bf16 %v7809_v17, %v7808_v58  ;;  %v10020_v34 = vld [vmem:[#allocation2 + $0x70] sm:$0xff]  ;;  %v7907_v41 = vsel %vm2024_vm13, 1.0, %v11492_v10  ;;  %v7822_v48 = vsel %vm1609_vm14, 1.0, %v11492_v10  ;;  %v7823_v49 = vsel %vm1610_vm15, 1.0, %v11492_v10 }
 0x10a   : > { %v3261_v28 = vunpack.c.l.b16 %v11003_v45  ;;  %v3262_v55 = vunpack.c.h.b16 %v11003_v45  ;;  %11229 = vst [vmem:[#allocation2 + $0x4b8] sm:$0xff] %v10713_v53   ;;  %v10833_v45 = vpack.c.bf16 %v7907_v41, %v7906_v38  ;;  %v10707_v51 = vpack.c.bf16 %v7823_v49, %v7822_v48 }
 0x10b   : > { %4789 = vmatpush.bf16.msra.mxu1 %v9973_v50  ;;  %4811 = vmatpush.bf16.msra.mxu3 %v9993_v0  ;;  %v7849_v50 = vsel %vm1702_vm3, 1.0, %v11492_v10  ;;  %v12628_v0 = vld [vmem:[%s11591_s21 + $0x12] ss:$0 sm:$0xff]  ;;  %11220 = vst [vmem:[#allocation2 + $0x88] sm:$0xff] %v10686_v62   ;;  %vm1698_vm3 = vcmp.eq.s32.totalorder %v11695_v43, %v12565_v56  ;;  %v7885_v58 = vsel %vm1870_vm5, 1.0, %v11492_v10  ;;  %vm1693_vm14 = vcmp.eq.s32.totalorder %v11742_v3, %v12565_v56 }
 0x10c   : > { %4802 = vmatpush.bf16.msra.mxu2 %v9981_v13  ;;  %v3288_v61 = vpack.c.b16 %v3261_v28, %v3261_v28  ;;  %v3289_v44 = vpack.c.b16 %v3262_v55, %v3262_v55  ;;  %v10746_v14 = vpack.c.bf16 %v7849_v50, %v7848_v47  ;;  %v7807_v13 = vsel %vm1528_vm7, 1.0, %v11492_v10  ;;  %11269 = vst [vmem:[#allocation2 + $0x130] sm:$0xff] %v10833_v45  }
 0x10d   : > { %v10683_v26 = vpack.c.bf16 %v7807_v13, %v7806_v25  ;;  %vm1787_vm10 = vcmp.eq.s32.totalorder %v11616_v7, %v12628_v0  ;;  %vm1788_vm11 = vcmp.eq.s32.totalorder %v11619_v8, %v12628_v0  ;;  %v7845_v53 = vsel %vm1698_vm3, 1.0, %v11492_v10  ;;  %11227 = vst [vmem:[#allocation2 + $0x3f0] sm:$0xff] %v10707_v51  }
 0x10e   : > { %4790 = vmatmul.bf16.vlgmr.msra.gmra.mxu1 %v3288_v61  ;;  %11240 = vst [vmem:[#allocation2 + $0x610] sm:$0xff] %v10746_v14   ;;  %v7868_v46 = vsel %vm1787_vm10, 1.0, %v11492_v10  ;;  %v7869_v35 = vsel %vm1788_vm11, 1.0, %v11492_v10  ;;  %vm1785_vm6 = vcmp.eq.s32.totalorder %v11634_v15, %v12628_v0  ;;  %vm1786_vm7 = vcmp.eq.s32.totalorder %v11637_v16, %v12628_v0 }
 0x10f   : > { %4821 = vmatpush.bf16.msrb.mxu1 %v10004_v19  ;;  %4812 = vmatpush.bf16.msra.mxu3 %v9992_v29  ;;  %v7824_v19 = vsel %vm1611_vm4, 1.0, %v11492_v10  ;;  %v2695_v21 = vpop.f32.mrf.mxu0  ;;  %v7847_v29 = vsel %vm1700_vm9, 1.0, %v11492_v10  ;;  %11219 = vst [vmem:[#allocation2 + $0x370] sm:$0xff] %v10683_v26   ;;  %v10776_v31 = vpack.c.bf16 %v7869_v35, %v7868_v46  ;;  %vm1869_vm4 = vcmp.eq.s32.totalorder %v11616_v7, %v12659_v37 }
 0x110   : > { %4834 = vmatpush.bf16.msrb.mxu2 %v10012_v59  ;;  %v10710_v22 = vpack.c.bf16 %v7825_v18, %v7824_v19  ;;  %v10009_v59 = vld [vmem:[#allocation2 + $0x448] sm:$0xff]  ;;  %v10743_v30 = vpack.c.bf16 %v7847_v29, %v7846_v27  ;;  %v7884_v55 = vsel %vm1869_vm4, 1.0, %v11492_v10  ;;  %v7866_v61 = vsel %vm1785_vm6, 1.0, %v11492_v10 }
 0x111   : > { %4803 = vmatmul.bf16.vlgmr.msra.gmra.mxu2 %v3289_v44  ;;  %11250 = vst [vmem:[#allocation2 + $0x228] sm:$0xff] %v10776_v31   ;;  %v10800_v62 = vpack.c.bf16 %v7885_v58, %v7884_v55  ;;  %v10007_v44 = vld [vmem:[#allocation2 + $0x4b8] sm:$0xff]  ;;  %v7867_v47 = vsel %vm1786_vm7, 1.0, %v11492_v10  ;;  %vm1696_vm9 = vcmp.eq.s32.totalorder %v11726_v57, %v12565_v56  ;;  %vm1867_vm10 = vcmp.eq.s32.totalorder %v11634_v15, %v12659_v37 }
 0x112   : > { %11228 = vst [vmem:[#allocation2 + $0x2e8] sm:$0xff] %v10710_v22   ;;  %v9998_v50 = vld [vmem:[#allocation2 + $0x88] sm:$0xff]  ;;  %v10773_v19 = vpack.c.bf16 %v7867_v47, %v7866_v61  ;;  %v7843_v18 = vsel %vm1696_vm9, 1.0, %v11492_v10  ;;  %vm1868_vm11 = vcmp.eq.s32.totalorder %v11637_v16, %v12659_v37  ;;  %vm1783_vm12 = vcmp.eq.s32.totalorder %v11652_v23, %v12628_v0 }
 0x113   : > { %4822 = vmatpush.bf16.msrb.mxu1 %v10003_v60  ;;  %4813 = vmatpush.bf16.msra.mxu3 %v9991_v12  ;;  %v10000_v60 = vld [vmem:[#allocation2 + $0x398] sm:$0xff]  ;;  %11239 = vst [vmem:[#allocation2 + $0x1b0] sm:$0xff] %v10743_v30   ;;  %v7844_v12 = vsel %vm1697_vm2, 1.0, %v11492_v10  ;;  %v7883_v26 = vsel %vm1868_vm11, 1.0, %v11492_v10  ;;  %v10047_v29 = vld [vmem:[#allocation2 + $0x130] sm:$0xff]  ;;  %vm1784_vm13 = vcmp.eq.s32.totalorder %v11655_v24, %v12628_v0  ;;  %vm1694_vm15 = vcmp.eq.s32.totalorder %v11755_v20, %v12565_v56 }
 0x114   : > { %4835 = vmatpush.bf16.msrb.mxu2 %v10011_v52  ;;  %v10019_v52 = vld [vmem:[#allocation2 + $0x100] sm:$0xff]  ;;  %v10740_v28 = vpack.c.bf16 %v7845_v53, %v7844_v12  ;;  %11258 = vst [vmem:[#allocation2 + $0x270] sm:$0xff] %v10800_v62   ;;  %vm1865_vm2 = vcmp.eq.s32.totalorder %v11652_v23, %v12659_v37  ;;  %4904 = vmatpush.bf16.msrb.mxu0 %v10047_v29  ;;  %v7841_v41 = vsel %vm1694_vm15, 1.0, %v11492_v10 }
 0x115   : > { %11249 = vst [vmem:[#allocation2 + $0x428] sm:$0xff] %v10773_v19   ;;  %vm1866_vm3 = vcmp.eq.s32.totalorder %v11655_v24, %v12659_v37  ;;  %v7880_v45 = vsel %vm1865_vm2, 1.0, %v11492_v10  ;;  %vm1781_vm4 = vcmp.eq.s32.totalorder %v11673_v32, %v12628_v0  ;;  %vm1782_vm5 = vcmp.eq.s32.totalorder %v11676_v33, %v12628_v0 }
 0x116   : > { %11238 = vst [vmem:[#allocation2 + $0x648] sm:$0xff] %v10740_v28   ;;  %v9997_v30 = vld [vmem:[#allocation2 + $0x370] sm:$0xff]  ;;  %v7881_v49 = vsel %vm1866_vm3, 1.0, %v11492_v10  ;;  %v7862_v12 = vsel %vm1781_vm4, 1.0, %v11492_v10  ;;  %vm1691_vm6 = vcmp.eq.s32.totalorder %v11613_v6, %v12565_v56  ;;  %vm1692_vm7 = vcmp.eq.s32.totalorder %v11780_v39, %v12565_v56 }
 0x117   : > { %4823 = vmatpush.bf16.msrb.mxu1 %v10002_v9  ;;  %4814 = vmatpush.bf16.msra.mxu3 %v9990_v1  ;;  %v2697_v9 = vpop.f32.mrf.mxu0  ;;  %v10018_v1 = vld [vmem:[#allocation2 + $0x610] sm:$0xff]  ;;  %v10794_v51 = vpack.c.bf16 %v7881_v49, %v7880_v45  ;;  %v7838_v55 = vsel %vm1691_vm6, 1.0, %v11492_v10  ;;  %vm1864_vm9 = vcmp.eq.s32.totalorder %v11676_v33, %v12659_v37  ;;  %vm1780_vm11 = vcmp.eq.s32.totalorder %v11695_v43, %v12628_v0 }
 0x118   : > { %4836 = vmatpush.bf16.msrb.mxu2 %v10010_v11  ;;  %v11008_v17 = vpack.c.bf16 %v2697_v9, %v2695_v21  ;;  %v7882_v21 = vsel %vm1867_vm10, 1.0, %v11492_v10  ;;  %v10028_v31 = vld [vmem:[#allocation2 + $0x228] sm:$0xff]  ;;  %vm1779_vm10 = vcmp.eq.s32.totalorder %v11692_v42, %v12628_v0  ;;  %v7879_v61 = vsel %vm1864_vm9, 1.0, %v11492_v10 }
 0x119   : > { %v10006_v27 = vld [vmem:[#allocation2 + $0x2e8] sm:$0xff]  ;;  %11256 = vst [vmem:[#allocation2 + $0x218] sm:$0xff] %v10794_v51   ;;  %v7860_v47 = vsel %vm1779_vm10, 1.0, %v11492_v10  ;;  %vm1862_vm15 = vcmp.eq.s32.totalorder %v11695_v43, %v12659_v37  ;;  %vm1777_vm2 = vcmp.eq.s32.totalorder %v11718_v54, %v12628_v0  ;;  %vm1778_vm3 = vcmp.eq.s32.totalorder %v11726_v57, %v12628_v0 }
 0x11a   : > { %v3263_v11 = vunpack.c.l.b16 %v11008_v17  ;;  %v3264_v14 = vunpack.c.h.b16 %v11008_v17  ;;  %v10017_v46 = vld [vmem:[#allocation2 + $0x1b0] sm:$0xff]  ;;  %v7839_v17 = vsel %vm1692_vm7, 1.0, %v11492_v10  ;;  %vm1859_vm6 = vcmp.eq.s32.totalorder %v11718_v54, %v12659_v37 }
 0x11b   : > { %4824 = vmatpush.bf16.msrb.mxu1 %v10001_v36  ;;  %4815 = vmatpush.bf16.msra.mxu3 %v9989_v63  ;;  %v7842_v36 = vsel %vm1695_vm8, 1.0, %v11492_v10  ;;  %v10797_v63 = vpack.c.bf16 %v7883_v26, %v7882_v21  ;;  %v10036_v9 = vld [vmem:[#allocation2 + $0x270] sm:$0xff]  ;;  %vm1863_vm8 = vcmp.eq.s32.totalorder %v11673_v32, %v12659_v37  ;;  %v10731_v62 = vpack.c.bf16 %v7839_v17, %v7838_v55 }
 0x11c   : > { %4837 = vmatpush.bf16.msrb.mxu2 %v10009_v59  ;;  %v3290_v22 = vpack.c.b16 %v3263_v11, %v3263_v11  ;;  %v3291_v25 = vpack.c.b16 %v3264_v14, %v3264_v14  ;;  %v10737_v13 = vpack.c.bf16 %v7843_v18, %v7842_v36  ;;  %v7864_v59 = vsel %vm1783_vm12, 1.0, %v11492_v10  ;;  %v10027_v58 = vld [vmem:[#allocation2 + $0x428] sm:$0xff] }
 0x11d   : > { %11257 = vst [vmem:[#allocation2 + $0x208] sm:$0xff] %v10797_v63   ;;  %v10016_v53 = vld [vmem:[#allocation2 + $0x648] sm:$0xff]  ;;  %v7878_v56 = vsel %vm1863_vm8, 1.0, %v11492_v10  ;;  %v7877_v26 = vsel %vm1862_vm15, 1.0, %v11492_v10  ;;  %v7858_v63 = vsel %vm1777_vm2, 1.0, %v11492_v10  ;;  %vm1860_vm7 = vcmp.eq.s32.totalorder %v11726_v57, %v12659_v37 }
 0x11e   : > { %11237 = vst [vmem:[#allocation2 + $0xe8] sm:$0xff] %v10737_v13   ;;  %4816 = vmatmul.bf16.vlgmr.msra.gmra.mxu3 %v3290_v22  ;;  %vm1775_vm8 = vcmp.eq.s32.totalorder %v11742_v3, %v12628_v0  ;;  %vm1776_vm9 = vcmp.eq.s32.totalorder %v11755_v20, %v12628_v0  ;;  %vm1774_vm15 = vcmp.eq.s32.totalorder %v11780_v39, %v12628_v0 }
 0x11f   : > { %4825 = vmatpush.bf16.msrb.mxu1 %v10000_v60  ;;  %4847 = vmatpush.bf16.msrb.mxu3 %v10020_v34  ;;  %v7865_v60 = vsel %vm1784_vm13, 1.0, %v11492_v10  ;;  %v7840_v34 = vsel %vm1693_vm14, 1.0, %v11492_v10  ;;  %v2700_v35 = vpop.f32.mrf.mxu0  ;;  %11235 = vst [vmem:[#allocation2 + $0x4c0] sm:$0xff] %v10731_v62   ;;  %vm1861_vm14 = vcmp.eq.s32.totalorder %v11692_v42, %v12659_v37  ;;  %v7857_v55 = vsel %vm1776_vm9, 1.0, %v11492_v10 }
 0x120   : > { %4838 = vmatpush.bf16.msrb.mxu2 %v10008_v4  ;;  %v10770_v38 = vpack.c.bf16 %v7865_v60, %v7864_v59  ;;  %v10734_v48 = vpack.c.bf16 %v7841_v41, %v7840_v34  ;;  %v10005_v4 = vld [vmem:[#allocation2 + $0x3f0] sm:$0xff]  ;;  %v7876_v13 = vsel %vm1861_vm14, 1.0, %v11492_v10  ;;  %v7859_v34 = vsel %vm1778_vm3, 1.0, %v11492_v10 }
 0x121   : > { %v10788_v29 = vpack.c.bf16 %v7877_v26, %v7876_v13  ;;  %vm1773_vm14 = vcmp.eq.s32.totalorder %v11613_v6, %v12628_v0  ;;  %vm1856_vm9 = vcmp.eq.s32.totalorder %v11780_v39, %v12659_v37 }
 0x122   : > { %11248 = vst [vmem:[#allocation2 + $0x2f0] sm:$0xff] %v10770_v38   ;;  %v10761_v38 = vpack.c.bf16 %v7859_v34, %v7858_v63  ;;  %v12810_v63 = vld [vmem:[%s11591_s21 + $0x15] ss:$0 sm:$0xff]  ;;  %v12821_v34 = vld [vmem:[%s11591_s21 + $0x17] ss:$0 sm:$0xff] }
 0x123   : > { %4826 = vmatpush.bf16.msrb.mxu1 %v9999_v40  ;;  %4848 = vmatpush.bf16.msrb.mxu3 %v10019_v52  ;;  %v7863_v40 = vsel %vm1782_vm5, 1.0, %v11492_v10  ;;  %v12724_v52 = vld [vmem:[%s11591_s21 + $0x14] ss:$0 sm:$0xff]  ;;  %11236 = vst [vmem:[#allocation2 + $0x30] sm:$0xff] %v10734_v48  }
 0x124   : > { %4839 = vmatpush.bf16.msrb.mxu2 %v10007_v44  ;;  %v10767_v28 = vpack.c.bf16 %v7863_v40, %v7862_v12  ;;  %v10791_v44 = vpack.c.bf16 %v7879_v61, %v7878_v56  ;;  %vm1951_vm12 = vcmp.eq.s32.totalorder %v11616_v7, %v12724_v52  ;;  %v10035_v11 = vld [vmem:[#allocation2 + $0x208] sm:$0xff]  ;;  %vm1952_vm13 = vcmp.eq.s32.totalorder %v11619_v8, %v12724_v52 }
 0x125   : > { %v7900_v19 = vsel %vm1951_vm12, 1.0, %v11492_v10  ;;  %v7901_v18 = vsel %vm1952_vm13, 1.0, %v11492_v10  ;;  %vm1949_vm4 = vcmp.eq.s32.totalorder %v11634_v15, %v12724_v52  ;;  %vm1950_vm5 = vcmp.eq.s32.totalorder %v11637_v16, %v12724_v52  ;;  %11254 = vst [vmem:[#allocation2 + $0xf8] sm:$0xff] %v10788_v29  }
 0x126   : > { %11247 = vst [vmem:[#allocation2 + $0x268] sm:$0xff] %v10767_v28   ;;  %v7898_v41 = vsel %vm1949_vm4, 1.0, %v11492_v10  ;;  %v7899_v45 = vsel %vm1950_vm5, 1.0, %v11492_v10  ;;  %v7874_v12 = vsel %vm1859_vm6, 1.0, %v11492_v10  ;;  %v10013_v40 = vld [vmem:[#allocation2 + $0x4c0] sm:$0xff]  ;;  %v7856_v28 = vsel %vm1775_vm8, 1.0, %v11492_v10 }
 0x127   : > { %4827 = vmatpush.bf16.msrb.mxu1 %v9998_v50  ;;  %4849 = vmatpush.bf16.msrb.mxu3 %v10018_v1  ;;  %v7861_v50 = vsel %vm1780_vm11, 1.0, %v11492_v10  ;;  %v10015_v1 = vld [vmem:[#allocation2 + $0xe8] sm:$0xff]  ;;  %v2702_v36 = vpop.f32.mrf.mxu0  ;;  %11255 = vst [vmem:[#allocation2 + $0x288] sm:$0xff] %v10791_v44   ;;  %v10821_v51 = vpack.c.bf16 %v7899_v45, %v7898_v41  ;;  %vm1947_vm10 = vcmp.eq.s32.totalorder %v11652_v23, %v12724_v52 }
 0x128   : > { %4840 = vmatpush.bf16.msrb.mxu2 %v10006_v27  ;;  %v10764_v14 = vpack.c.bf16 %v7861_v50, %v7860_v47  ;;  %v11013_v21 = vpack.c.bf16 %v2702_v36, %v2700_v35  ;;  %v3233_v27 = vpop.permute.xlu0 %3232  ;;  %11245 = vst [vmem:[#allocation2 + $0x148] sm:$0xff] %v10761_v38   ;;  %v10758_v56 = vpack.c.bf16 %v7857_v55, %v7856_v28  ;;  %v7896_v61 = vsel %vm1947_vm10, 1.0, %v11492_v10 }
 0x129   : > { %v10026_v22 = vld [vmem:[#allocation2 + $0x2f0] sm:$0xff]  ;;  %11265 = vst [vmem:[#allocation2 + $0x620] sm:$0xff] %v10821_v51   ;;  %vm1948_vm11 = vcmp.eq.s32.totalorder %v11655_v24, %v12724_v52  ;;  %vm1857_vm12 = vcmp.eq.s32.totalorder %v11742_v3, %v12659_v37  ;;  %vm1858_vm13 = vcmp.eq.s32.totalorder %v11755_v20, %v12659_v37  ;;  %vm1945_vm2 = vcmp.eq.s32.totalorder %v11673_v32, %v12724_v52 }
 0x12a   : > { %11246 = vst [vmem:[#allocation2 + $0x3a0] sm:$0xff] %v10764_v14   ;;  %v10014_v59 = vld [vmem:[#allocation2 + $0x30] sm:$0xff]  ;;  %v3266_v60 = vunpack.c.h.b16 %v11013_v21  ;;  %v7897_v44 = vsel %vm1948_vm11, 1.0, %v11492_v10  ;;  %v7873_v14 = vsel %vm1858_vm13, 1.0, %v11492_v10  ;;  %vm1946_vm3 = vcmp.eq.s32.totalorder %v11676_v33, %v12724_v52 }
 0x12b   : > { %4828 = vmatpush.bf16.msrb.mxu1 %v9997_v30  ;;  %4850 = vmatpush.bf16.msrb.mxu3 %v10017_v46  ;;  %v10034_v30 = vld [vmem:[#allocation2 + $0x218] sm:$0xff]  ;;  %v3265_v46 = vunpack.c.l.b16 %v11013_v21  ;;  %v4635_v35 = vpop.f32.mrf.mxu1  ;;  %11244 = vst [vmem:[#allocation2 + $0x278] sm:$0xff] %v10758_v56   ;;  %v7895_v29 = vsel %vm1946_vm3, 1.0, %v11492_v10  ;;  %vm2021_vm4 = vcmp.eq.s32.totalorder %v11742_v3, %v12810_v63  ;;  %vm2022_vm5 = vcmp.eq.s32.totalorder %v11755_v20, %v12810_v63 }
 0x12c   : > { %4841 = vmatpush.bf16.msrb.mxu2 %v10005_v4  ;;  %v4636_v48 = vadd.f32 %v4635_v35, %v3233_v27  ;;  %v3293_v4 = vpack.c.b16 %v3266_v60, %v3266_v60  ;;  %v7894_v27 = vsel %vm1945_vm2, 1.0, %v11492_v10  ;;  %v7905_v60 = vsel %vm2022_vm5, 1.0, %v11492_v10 }
 0x12d   : > { %v3292_v49 = vpack.c.b16 %v3265_v46, %v3265_v46  ;;  %v7904_v46 = vsel %vm2021_vm4, 1.0, %v11492_v10  ;;  %vm1855_vm8 = vcmp.eq.s32.totalorder %v11613_v6, %v12659_v37  ;;  %vm1943_vm10 = vcmp.eq.s32.totalorder %v11692_v42, %v12724_v52 }
 0x12e   : > { %4829 = vmatmul.bf16.vlgmr.msrb.gmra.mxu1 %v3291_v25  ;;  %v10824_v25 = vpack.c.bf16 %v7901_v18, %v7900_v19  ;;  %v12797_v19 = vld [vmem:[%s11591_s21 + $0x16] ss:$0 sm:$0xff]  ;;  %v10032_v18 = vld [vmem:[#allocation2 + $0xf8] sm:$0xff]  ;;  %v10830_v35 = vpack.c.bf16 %v7905_v60, %v7904_v46  ;;  %v7870_v45 = vsel %vm1855_vm8, 1.0, %v11492_v10  ;;  %v7871_v51 = vsel %vm1856_vm9, 1.0, %v11492_v10 }
 0x12f   : > { %4860 = vmatpush.bf16.msra.mxu1 %v10028_v31  ;;  %4851 = vmatpush.bf16.msrb.mxu3 %v10016_v53  ;;  %v10025_v31 = vld [vmem:[#allocation2 + $0x268] sm:$0xff]  ;;  %vm2115_vm6 = vcmp.eq.s32.totalorder %v11616_v7, %v12797_v19  ;;  %vm1944_vm11 = vcmp.eq.s32.totalorder %v11695_v43, %v12724_v52  ;;  %v7892_v37 = vsel %vm1943_vm10, 1.0, %v11492_v10  ;;  %vm2198_vm13 = vcmp.eq.s32.totalorder %v11619_v8, %v12821_v34 }
 0x130   : > { %4873 = vmatpush.bf16.msra.mxu2 %v10036_v9  ;;  %11266 = vst [vmem:[#allocation2 + $0x458] sm:$0xff] %v10824_v25   ;;  %v10033_v53 = vld [vmem:[#allocation2 + $0x288] sm:$0xff]  ;;  %v7875_v9 = vsel %vm1860_vm7, 1.0, %v11492_v10  ;;  %v7855_v25 = vsel %vm1774_vm15, 1.0, %v11492_v10  ;;  %vm2116_vm7 = vcmp.eq.s32.totalorder %v11619_v8, %v12797_v19  ;;  %vm2114_vm15 = vcmp.eq.s32.totalorder %v11637_v16, %v12797_v19 }
 0x131   : > { %4842 = vmatmul.bf16.vlgmr.msrb.gmra.mxu2 %v3292_v49  ;;  %v10024_v17 = vld [vmem:[#allocation2 + $0x3a0] sm:$0xff]  ;;  %v10785_v62 = vpack.c.bf16 %v7875_v9, %v7874_v12  ;;  %v4648_v47 = vpop.f32.mrf.mxu2  ;;  %v10023_v0 = vld [vmem:[#allocation2 + $0x148] sm:$0xff]  ;;  %v7933_v41 = vsel %vm2116_vm7, 1.0, %v11492_v10  ;;  %11268 = vst [vmem:[#allocation2 + $0x698] sm:$0xff] %v10830_v35   ;;  %v7893_v9 = vsel %vm1944_vm11, 1.0, %v11492_v10  ;;  %vm1941_vm2 = vcmp.eq.s32.totalorder %v11718_v54, %v12724_v52 }
 0x132   : > { %v12799_v36 = vadd.f32 %v4648_v47, %v4636_v48  ;;  %vm1942_vm3 = vcmp.eq.s32.totalorder %v11726_v57, %v12724_v52  ;;  %vm2195_vm4 = vcmp.eq.s32.totalorder %v11634_v15, %v12821_v34  ;;  %vm2196_vm5 = vcmp.eq.s32.totalorder %v11637_v16, %v12821_v34 }
 0x133   : > { %4861 = vmatpush.bf16.msra.mxu1 %v10027_v58  ;;  %4852 = vmatpush.bf16.msrb.mxu3 %v10015_v1  ;;  %v12780_v58 = vpop.f32.mrf.mxu0  ;;  %11253 = vst [vmem:[#allocation2 + $0x6b0] sm:$0xff] %v10785_v62   ;;  %v10818_v1 = vpack.c.bf16 %v7897_v44, %v7896_v61  ;;  %v4637_v13 = vpop.f32.mrf.mxu1  ;;  %v7949_v61 = vsel %vm2198_vm13, 1.0, %v11492_v10  ;;  %vm2112_vm7 = vcmp.eq.s32.totalorder %v11655_v24, %v12797_v19 }
 0x134   : > { %4874 = vmatpush.bf16.msra.mxu2 %v10035_v11  ;;  %v7872_v11 = vsel %vm1857_vm12, 1.0, %v11492_v10  ;;  %vm2197_vm12 = vcmp.eq.s32.totalorder %v11616_v7, %v12821_v34  ;;  %v7891_v13 = vsel %vm1942_vm3, 1.0, %v11492_v10  ;;  %vm1939_vm8 = vcmp.eq.s32.totalorder %v11742_v3, %v12724_v52 }
 0x135   : > { %v10782_v21 = vpack.c.bf16 %v7873_v14, %v7872_v11  ;;  %11264 = vst [vmem:[#allocation2 + $0x5f0] sm:$0xff] %v10818_v1   ;;  %v7931_v14 = vsel %vm2114_vm15, 1.0, %v11492_v10  ;;  %vm1940_vm9 = vcmp.eq.s32.totalorder %v11755_v20, %v12724_v52  ;;  %vm2193_vm10 = vcmp.eq.s32.totalorder %v11652_v23, %v12821_v34 }
 0x136   : > { %vm2194_vm11 = vcmp.eq.s32.totalorder %v11655_v24, %v12821_v34  ;;  %vm2020_vm13 = vcmp.eq.s32.totalorder %v11780_v39, %v12810_v63  ;;  %vm2110_vm15 = vcmp.eq.s32.totalorder %v11676_v33, %v12797_v19  ;;  %vm1938_vm3 = vcmp.eq.s32.totalorder %v11780_v39, %v12724_v52 }
 0x137   : > { %4862 = vmatpush.bf16.msra.mxu1 %v10026_v22  ;;  %4853 = vmatpush.bf16.msrb.mxu3 %v10014_v59  ;;  %v10044_v50 = vld [vmem:[#allocation2 + $0x458] sm:$0xff]  ;;  %v7854_v22 = vsel %vm1773_vm14, 1.0, %v11492_v10  ;;  %11252 = vst [vmem:[#allocation2 + $0x418] sm:$0xff] %v10782_v21   ;;  %v10043_v59 = vld [vmem:[#allocation2 + $0x620] sm:$0xff]  ;;  %vm2113_vm14 = vcmp.eq.s32.totalorder %v11634_v15, %v12797_v19 }
 0x138   : > { %4875 = vmatpush.bf16.msra.mxu2 %v10034_v30  ;;  %v10755_v26 = vpack.c.bf16 %v7855_v25, %v7854_v22  ;;  %v10815_v30 = vpack.c.bf16 %v7895_v29, %v7894_v27  ;;  %v7930_v11 = vsel %vm2113_vm14, 1.0, %v11492_v10  ;;  %v7890_v25 = vsel %vm1941_vm2, 1.0, %v11492_v10 }
 0x139   : > { %v4650_v12 = vpop.f32.mrf.mxu2  ;;  %v10809_v27 = vpack.c.bf16 %v7891_v13, %v7890_v25  ;;  %v7946_v29 = vsel %vm2195_vm4, 1.0, %v11492_v10  ;;  %vm2109_vm14 = vcmp.eq.s32.totalorder %v11673_v32, %v12797_v19  ;;  %vm1937_vm2 = vcmp.eq.s32.totalorder %v11613_v6, %v12724_v52 }
 0x13a   : > { %11243 = vst [vmem:[#allocation2 + $0x5e0] sm:$0xff] %v10755_v26   ;;  %v10031_v49 = vld [vmem:[#allocation2 + $0x6b0] sm:$0xff]  ;;  %vm2191_vm4 = vcmp.eq.s32.totalorder %v11673_v32, %v12821_v34 }
 0x13b   : > { %4863 = vmatpush.bf16.msra.mxu1 %v10025_v31  ;;  %4854 = vmatpush.bf16.msrb.mxu3 %v10013_v40  ;;  %v7932_v31 = vsel %vm2115_vm6, 1.0, %v11492_v10  ;;  %v2707_v38 = vpop.f32.mrf.mxu0  ;;  %11263 = vst [vmem:[#allocation2 + $0x638] sm:$0xff] %v10815_v30   ;;  %v10022_v40 = vld [vmem:[#allocation2 + $0x278] sm:$0xff]  ;;  %v12845_v62 = vpop.f32.mrf.mxu1  ;;  %vm2111_vm6 = vcmp.eq.s32.totalorder %v11652_v23, %v12797_v19 }
 0x13c   : > { %4876 = vmatpush.bf16.msra.mxu2 %v10033_v53  ;;  %v11018_v48 = vpack.c.bf16 %v2707_v38, %v12780_v58  ;;  %v10779_v53 = vpack.c.bf16 %v7871_v51, %v7870_v45  ;;  %v10042_v28 = vld [vmem:[#allocation2 + $0x5f0] sm:$0xff]  ;;  %v10812_v58 = vpack.c.bf16 %v7893_v9, %v7892_v37  ;;  %v7928_v46 = vsel %vm2111_vm6, 1.0, %v11492_v10  ;;  %11261 = vst [vmem:[#allocation2 + $0x238] sm:$0xff] %v10809_v27  }
 0x13d   : > { %v7888_v38 = vsel %vm1939_vm8, 1.0, %v11492_v10  ;;  %vm2107_vm6 = vcmp.eq.s32.totalorder %v11692_v42, %v12797_v19 }
 0x13e   : > { %4855 = vmatmul.bf16.vlgmr.msrb.gmra.mxu3 %v3293_v4  ;;  %v10872_v4 = vpack.c.bf16 %v7933_v41, %v7932_v31  ;;  %v3267_v55 = vunpack.c.l.b16 %v11018_v48  ;;  %v10030_v56 = vld [vmem:[#allocation2 + $0x418] sm:$0xff]  ;;  %11251 = vst [vmem:[#allocation2 + $0x3e8] sm:$0xff] %v10779_v53   ;;  %v3268_v44 = vunpack.c.h.b16 %v11018_v48  ;;  %v7929_v31 = vsel %vm2112_vm7, 1.0, %v11492_v10 }
 0x13f   : > { %4864 = vmatpush.bf16.msra.mxu1 %v10024_v17  ;;  %4886 = vmatpush.bf16.msra.mxu3 %v10044_v50  ;;  %v7948_v17 = vsel %vm2197_vm12, 1.0, %v11492_v10  ;;  %11262 = vst [vmem:[#allocation2 + $0x1d0] sm:$0xff] %v10812_v58   ;;  %v10866_v48 = vpack.c.bf16 %v7929_v31, %v7928_v46  ;;  %v7945_v53 = vsel %vm2194_vm11, 1.0, %v11492_v10  ;;  %vm2019_vm12 = vcmp.eq.s32.totalorder %v11613_v6, %v12810_v63  ;;  %v12903_v63 = vld [vmem:[%s11591_s21 + $0x18] ss:$0 sm:$0xff] }
 0x140   : > { %4877 = vmatpush.bf16.msra.mxu2 %v10032_v18  ;;  %11282 = vst [vmem:[#allocation2 + $0x248] sm:$0xff] %v10872_v4   ;;  %v3294_v50 = vpack.c.b16 %v3267_v55, %v3267_v55  ;;  %v10896_v1 = vpack.c.bf16 %v7949_v61, %v7948_v17  ;;  %v10869_v18 = vpack.c.bf16 %v7931_v14, %v7930_v11  ;;  %v7902_v37 = vsel %vm2019_vm12, 1.0, %v11492_v10 }
 0x141   : > { %v10021_v47 = vld [vmem:[#allocation2 + $0x5e0] sm:$0xff]  ;;  %v12854_v21 = vpack.c.b16 %v3268_v44, %v3268_v44  ;;  %v4661_v35 = vpop.f32.mrf.mxu3  ;;  %11280 = vst [vmem:[#allocation2 + $0x658] sm:$0xff] %v10866_v48   ;;  %v7926_v55 = vsel %vm2109_vm14, 1.0, %v11492_v10  ;;  %v7886_v61 = vsel %vm1937_vm2, 1.0, %v11492_v10  ;;  %vm2108_vm7 = vcmp.eq.s32.totalorder %v11695_v43, %v12797_v19 }
 0x142   : > { %v10041_v22 = vld [vmem:[#allocation2 + $0x638] sm:$0xff]  ;;  %11290 = vst [vmem:[#allocation2 + $0x628] sm:$0xff] %v10896_v1   ;;  %v12882_v41 = vadd.f32 %v4661_v35, %v12799_v36  ;;  %vm2279_vm8 = vcmp.eq.s32.totalorder %v11616_v7, %v12903_v63  ;;  %v7925_v27 = vsel %vm2108_vm7, 1.0, %v11492_v10  ;;  %vm2189_vm12 = vcmp.eq.s32.totalorder %v11692_v42, %v12821_v34 }
 0x143   : > { %4865 = vmatpush.bf16.msra.mxu1 %v10023_v0  ;;  %4887 = vmatpush.bf16.msra.mxu3 %v10043_v59  ;;  %v2710_v26 = vpop.f32.mrf.mxu0  ;;  %v10046_v0 = vld [vmem:[#allocation2 + $0x698] sm:$0xff]  ;;  %11281 = vst [vmem:[#allocation2 + $0x668] sm:$0xff] %v10869_v18   ;;  %v7947_v59 = vsel %vm2196_vm5, 1.0, %v11492_v10  ;;  %v4676_v51 = vpop.f32.mrf.mxu1  ;;  %vm2192_vm5 = vcmp.eq.s32.totalorder %v11676_v33, %v12821_v34  ;;  %v7942_v18 = vsel %vm2191_vm4, 1.0, %v11492_v10  ;;  %vm2105_vm14 = vcmp.eq.s32.totalorder %v11718_v54, %v12797_v19 }
 0x144   : > { %4878 = vmatpush.bf16.msra.mxu2 %v10031_v49  ;;  %v10893_v30 = vpack.c.bf16 %v7947_v59, %v7946_v29  ;;  %4905 = vmatpush.bf16.msrb.mxu0 %v10046_v0  ;;  %v7889_v49 = vsel %vm1940_vm9, 1.0, %v11492_v10  ;;  %v12915_v1 = vld [vmem:[%s11591_s21 + $0x19] ss:$0 sm:$0xff]  ;;  %vm2280_vm9 = vcmp.eq.s32.totalorder %v11619_v8, %v12903_v63  ;;  %vm2277_vm2 = vcmp.eq.s32.totalorder %v11634_v15, %v12903_v63 }
 0x145   : > { %v10029_v45 = vld [vmem:[#allocation2 + $0x3e8] sm:$0xff]  ;;  %v10806_v12 = vpack.c.bf16 %v7889_v49, %v7888_v38  ;;  %v10039_v52 = vld [vmem:[#allocation2 + $0x238] sm:$0xff]  ;;  %v7965_v46 = vsel %vm2280_vm9, 1.0, %v11492_v10  ;;  %vm2362_vm11 = vcmp.eq.s32.totalorder %v11619_v8, %v12915_v1  ;;  %v4675_v49 = vadd.f32 %v12845_v62, %v12882_v41 }
 0x146   : > { %11289 = vst [vmem:[#allocation2 + $0x650] sm:$0xff] %v10893_v30   ;;  %v10040_v4 = vld [vmem:[#allocation2 + $0x1d0] sm:$0xff]  ;;  %v7964_v30 = vsel %vm2279_vm8, 1.0, %v11492_v10  ;;  %v7981_v48 = vsel %vm2362_vm11, 1.0, %v11492_v10  ;;  %v7922_v41 = vsel %vm2105_vm14, 1.0, %v11492_v10  ;;  %vm2359_vm4 = vcmp.eq.s32.totalorder %v11634_v15, %v12915_v1 }
 0x147   : > { %4866 = vmatpush.bf16.msra.mxu1 %v10022_v40  ;;  %4888 = vmatpush.bf16.msra.mxu3 %v10042_v28  ;;  %v10060_v60 = vld [vmem:[#allocation2 + $0x248] sm:$0xff]  ;;  %v7944_v40 = vsel %vm2193_vm10, 1.0, %v11492_v10  ;;  %11260 = vst [vmem:[#allocation2 + $0x470] sm:$0xff] %v10806_v12   ;;  %v7903_v28 = vsel %vm2020_vm13, 1.0, %v11492_v10  ;;  %vm2361_vm10 = vcmp.eq.s32.totalorder %v11616_v7, %v12915_v1  ;;  %v10920_v31 = vpack.c.bf16 %v7965_v46, %v7964_v30 }
 0x148   : > { %4879 = vmatpush.bf16.msra.mxu2 %v10030_v56  ;;  %v10890_v36 = vpack.c.bf16 %v7945_v53, %v7944_v40  ;;  %v10827_v17 = vpack.c.bf16 %v7903_v28, %v7902_v37  ;;  %v7927_v56 = vsel %vm2110_vm15, 1.0, %v11492_v10  ;;  %v10058_v29 = vld [vmem:[#allocation2 + $0x658] sm:$0xff]  ;;  %v7980_v38 = vsel %vm2361_vm10, 1.0, %v11492_v10 }
 0x149   : > { %v10068_v9 = vld [vmem:[#allocation2 + $0x628] sm:$0xff]  ;;  %v4663_v13 = vpop.f32.mrf.mxu3  ;;  %11298 = vst [vmem:[#allocation2 + $0x480] sm:$0xff] %v10920_v31   ;;  %v10944_v51 = vpack.c.bf16 %v7981_v48, %v7980_v38  ;;  %vm2190_vm13 = vcmp.eq.s32.totalorder %v11695_v43, %v12821_v34  ;;  %v7940_v12 = vsel %vm2189_vm12, 1.0, %v11492_v10  ;;  %vm2106_vm15 = vcmp.eq.s32.totalorder %v11726_v57, %v12797_v19 }
 0x14a   : > { %v10059_v58 = vld [vmem:[#allocation2 + $0x668] sm:$0xff]  ;;  %11288 = vst [vmem:[#allocation2 + $0x508] sm:$0xff] %v10890_v36   ;;  %v7941_v62 = vsel %vm2190_vm13, 1.0, %v11492_v10  ;;  %v7923_v28 = vsel %vm2106_vm15, 1.0, %v11492_v10  ;;  %vm2188_vm7 = vcmp.eq.s32.totalorder %v11726_v57, %v12821_v34  ;;  %vm2103_vm8 = vcmp.eq.s32.totalorder %v11742_v3, %v12797_v19 }
 0x14b   : > { %4867 = vmatpush.bf16.msra.mxu1 %v10021_v47  ;;  %4889 = vmatpush.bf16.msra.mxu3 %v10041_v22  ;;  %v2712_v44 = vpop.f32.mrf.mxu0  ;;  %v10863_v47 = vpack.c.bf16 %v7927_v56, %v7926_v55  ;;  %11267 = vst [vmem:[#allocation2 + $0x4a8] sm:$0xff] %v10827_v17   ;;  %v7943_v22 = vsel %vm2192_vm5, 1.0, %v11492_v10  ;;  %v10857_v56 = vpack.c.bf16 %v7923_v28, %v7922_v41 }
 0x14c   : > { %4880 = vmatpush.bf16.msra.mxu2 %v10029_v45  ;;  %v11023_v11 = vpack.c.bf16 %v2712_v44, %v2710_v26  ;;  %v10887_v0 = vpack.c.bf16 %v7943_v22, %v7942_v18  ;;  %v7924_v26 = vsel %vm2107_vm6, 1.0, %v11492_v10  ;;  %11306 = vst [vmem:[#allocation2 + $0x468] sm:$0xff] %v10944_v51   ;;  %vm2360_vm5 = vcmp.eq.s32.totalorder %v11637_v16, %v12915_v1 }
 0x14d   : > { %v10067_v25 = vld [vmem:[#allocation2 + $0x650] sm:$0xff]  ;;  %11279 = vst [vmem:[#allocation2 + $0x1b8] sm:$0xff] %v10863_v47   ;;  %v10860_v59 = vpack.c.bf16 %v7925_v27, %v7924_v26  ;;  %vm2187_vm6 = vcmp.eq.s32.totalorder %v11718_v54, %v12821_v34  ;;  %vm2104_vm9 = vcmp.eq.s32.totalorder %v11755_v20, %v12797_v19  ;;  %v7920_v27 = vsel %vm2103_vm8, 1.0, %v11492_v10 }
 0x14e   : > { %4868 = vmatmul.bf16.vlgmr.msra.gmra.mxu1 %v3294_v50  ;;  %v7887_v50 = vsel %vm1938_vm3, 1.0, %v11492_v10  ;;  %11287 = vst [vmem:[#allocation2 + $0x6a8] sm:$0xff] %v10887_v0   ;;  %vm2278_vm3 = vcmp.eq.s32.totalorder %v11637_v16, %v12903_v63  ;;  %v7938_v13 = vsel %vm2187_vm6, 1.0, %v11492_v10  ;;  %v7939_v0 = vsel %vm2188_vm7, 1.0, %v11492_v10 }
 0x14f   : > { %4912 = vmatpush.bf16.msrb.mxu1 %v10060_v60  ;;  %4890 = vmatpush.bf16.msra.mxu3 %v10040_v4  ;;  %v10803_v14 = vpack.c.bf16 %v7887_v50, %v7886_v61  ;;  %v10038_v60 = vld [vmem:[#allocation2 + $0x470] sm:$0xff]  ;;  %11278 = vst [vmem:[#allocation2 + $0x598] sm:$0xff] %v10860_v59   ;;  %v3269_v4 = vunpack.c.l.b16 %v11023_v11  ;;  %v7962_v61 = vsel %vm2277_vm2, 1.0, %v11492_v10  ;;  %v7963_v44 = vsel %vm2278_vm3, 1.0, %v11492_v10 }
 0x150   : > { %4925 = vmatpush.bf16.msrb.mxu2 %v10068_v9  ;;  %v10884_v9 = vpack.c.bf16 %v7941_v62, %v7940_v12  ;;  %11277 = vst [vmem:[#allocation2 + $0x530] sm:$0xff] %v10857_v56   ;;  %v10881_v26 = vpack.c.bf16 %v7939_v0, %v7938_v13  ;;  %vm2275_vm10 = vcmp.eq.s32.totalorder %v11652_v23, %v12903_v63 }
 0x151   : > { %4881 = vmatmul.bf16.vlgmr.msra.gmra.mxu2 %v12854_v21  ;;  %11259 = vst [vmem:[#allocation2 + $0x90] sm:$0xff] %v10803_v14   ;;  %v3270_v21 = vunpack.c.h.b16 %v11023_v11  ;;  %v10066_v45 = vld [vmem:[#allocation2 + $0x508] sm:$0xff]  ;;  %v3296_v36 = vpack.c.b16 %v3269_v4, %v3269_v4  ;;  %v4700_v17 = vpop.f32.mrf.mxu3  ;;  %v10917_v11 = vpack.c.bf16 %v7963_v44, %v7962_v61  ;;  %v7979_v14 = vsel %vm2360_vm5, 1.0, %v11492_v10 }
 0x152   : > { %v10045_v53 = vld [vmem:[#allocation2 + $0x4a8] sm:$0xff]  ;;  %11286 = vst [vmem:[#allocation2 + $0x2d8] sm:$0xff] %v10884_v9   ;;  %vm2276_vm11 = vcmp.eq.s32.totalorder %v11655_v24, %v12903_v63  ;;  %v7960_v59 = vsel %vm2275_vm10, 1.0, %v11492_v10  ;;  %vm2357_vm12 = vcmp.eq.s32.totalorder %v11652_v23, %v12915_v1  ;;  %vm2358_vm13 = vcmp.eq.s32.totalorder %v11655_v24, %v12915_v1 }
 0x153   : > { %4913 = vmatpush.bf16.msrb.mxu1 %v10059_v58  ;;  %4891 = vmatpush.bf16.msra.mxu3 %v10039_v52  ;;  %v3297_v35 = vpack.c.b16 %v3270_v21, %v3270_v21  ;;  %v2715_v40 = vpop.f32.mrf.mxu0  ;;  %v4687_v58 = vpop.f32.mrf.mxu2  ;;  %v7978_v52 = vsel %vm2359_vm4, 1.0, %v11492_v10  ;;  %11297 = vst [vmem:[#allocation2 + $0x478] sm:$0xff] %v10917_v11   ;;  %v10076_v21 = vld [vmem:[#allocation2 + $0x480] sm:$0xff]  ;;  %v10084_v46 = vld [vmem:[#allocation2 + $0x468] sm:$0xff]  ;;  %v7976_v31 = vsel %vm2357_vm12, 1.0, %v11492_v10  ;;  %v7977_v48 = vsel %vm2358_vm13, 1.0, %v11492_v10 }
 0x154   : > { %4926 = vmatpush.bf16.msrb.mxu2 %v10067_v25  ;;  %v10057_v37 = vld [vmem:[#allocation2 + $0x1b8] sm:$0xff]  ;;  %4906 = vmatpush.bf16.msrb.mxu0 %v10045_v53  ;;  %v4688_v50 = vadd.f32 %v4687_v58, %v4675_v49  ;;  %v10941_v25 = vpack.c.bf16 %v7979_v14, %v7978_v52  ;;  %11285 = vst [vmem:[#allocation2 + $0xd8] sm:$0xff] %v10881_v26  }
 0x155   : > { %v10065_v47 = vld [vmem:[#allocation2 + $0x6a8] sm:$0xff]  ;;  %vm2185_vm14 = vcmp.eq.s32.totalorder %v11742_v3, %v12821_v34  ;;  %v10938_v4 = vpack.c.bf16 %v7977_v48, %v7976_v31  ;;  %vm2186_vm15 = vcmp.eq.s32.totalorder %v11755_v20, %v12821_v34  ;;  %vm2101_vm2 = vcmp.eq.s32.totalorder %v11613_v6, %v12797_v19 }
 0x156   : > { %v10056_v18 = vld [vmem:[#allocation2 + $0x598] sm:$0xff]  ;;  %v4701_v22 = vadd.f32 %v4700_v17, %v4688_v50  ;;  %11305 = vst [vmem:[#allocation2 + $0xe0] sm:$0xff] %v10941_v25   ;;  %v7936_v53 = vsel %vm2185_vm14, 1.0, %v11492_v10  ;;  %v7937_v62 = vsel %vm2186_vm15, 1.0, %v11492_v10  ;;  %vm2102_vm3 = vcmp.eq.s32.totalorder %v11780_v39, %v12797_v19 }
 0x157   : > { %4914 = vmatpush.bf16.msrb.mxu1 %v10058_v29  ;;  %4892 = vmatpush.bf16.msra.mxu3 %v10038_v60  ;;  %v7921_v29 = vsel %vm2104_vm9, 1.0, %v11492_v10  ;;  %v7918_v41 = vsel %vm2101_vm2, 1.0, %v11492_v10  ;;  %vm2273_vm4 = vcmp.eq.s32.totalorder %v11673_v32, %v12903_v63  ;;  %11304 = vst [vmem:[#allocation2 + $0x180] sm:$0xff] %v10938_v4   ;;  %v10878_v9 = vpack.c.bf16 %v7937_v62, %v7936_v53 }
 0x158   : > { %4927 = vmatpush.bf16.msrb.mxu2 %v10066_v45  ;;  %v10037_v55 = vld [vmem:[#allocation2 + $0x90] sm:$0xff]  ;;  %4907 = vmatmul.bf16.vlgmr.msrb.gmra.mxu0 %v3297_v35  ;;  %v10854_v60 = vpack.c.bf16 %v7921_v29, %v7920_v27  ;;  %v7961_v35 = vsel %vm2276_vm11, 1.0, %v11492_v10  ;;  %vm2274_vm5 = vcmp.eq.s32.totalorder %v11676_v33, %v12903_v63  ;;  %v7958_v58 = vsel %vm2273_vm4, 1.0, %v11492_v10 }
 0x159   : > { %v10914_v45 = vpack.c.bf16 %v7961_v35, %v7960_v59  ;;  %4951 = vmatpush.bf16.msra.mxu0 %v10084_v46  ;;  %v10064_v49 = vld [vmem:[#allocation2 + $0x2d8] sm:$0xff]  ;;  %v4702_v12 = vpop.f32.mrf.mxu3  ;;  %v7959_v56 = vsel %vm2274_vm5, 1.0, %v11492_v10  ;;  %vm2355_vm6 = vcmp.eq.s32.totalorder %v11673_v32, %v12915_v1  ;;  %11284 = vst [vmem:[#allocation2 + $0x550] sm:$0xff] %v10878_v9   ;;  %vm2356_vm7 = vcmp.eq.s32.totalorder %v11676_v33, %v12915_v1 }
 0x15a   : > { %11276 = vst [vmem:[#allocation2 + $0x688] sm:$0xff] %v10854_v60   ;;  %v10911_v44 = vpack.c.bf16 %v7959_v56, %v7958_v58  ;;  %v7975_v11 = vsel %vm2356_vm7, 1.0, %v11492_v10  ;;  %vm2183_vm10 = vcmp.eq.s32.totalorder %v11613_v6, %v12821_v34  ;;  %vm2184_vm11 = vcmp.eq.s32.totalorder %v11780_v39, %v12821_v34 }
 0x15b   : > { %4915 = vmatpush.bf16.msrb.mxu1 %v10057_v37  ;;  %4893 = vmatpush.bf16.msra.mxu3 %v10037_v55  ;;  %v2717_v30 = vpop.f32.mrf.mxu0  ;;  %v4689_v51 = vpop.f32.mrf.mxu2  ;;  %11296 = vst [vmem:[#allocation2 + $0x4e8] sm:$0xff] %v10914_v45   ;;  %v10075_v37 = vld [vmem:[#allocation2 + $0x478] sm:$0xff]  ;;  %v7919_v55 = vsel %vm2102_vm3, 1.0, %v11492_v10  ;;  %v7934_v0 = vsel %vm2183_vm10, 1.0, %v11492_v10  ;;  %vm2271_vm12 = vcmp.eq.s32.totalorder %v11692_v42, %v12903_v63  ;;  %vm2272_vm13 = vcmp.eq.s32.totalorder %v11695_v43, %v12903_v63 }
 0x15c   : > { %4928 = vmatpush.bf16.msrb.mxu2 %v10065_v47  ;;  %v12987_v38 = vpack.c.bf16 %v2717_v30, %v2715_v40  ;;  %v12998_v40 = vld [vmem:[%s11591_s21 + $0x1a] ss:$0 sm:$0xff]  ;;  %v4713_v28 = vpop.f32.mrf.mxu1  ;;  %v10851_v19 = vpack.c.bf16 %v7919_v55, %v7918_v41  ;;  %v7974_v47 = vsel %vm2355_vm6, 1.0, %v11492_v10  ;;  %11295 = vst [vmem:[#allocation2 + $0x20] sm:$0xff] %v10911_v44   ;;  %vm2353_vm14 = vcmp.eq.s32.totalorder %v11692_v42, %v12915_v1 }
 0x15d   : > { %v4714_v17 = vadd.f32 %v4713_v28, %v4701_v22  ;;  %v10083_v61 = vld [vmem:[#allocation2 + $0xe0] sm:$0xff]  ;;  %vm2443_vm8 = vcmp.eq.s32.totalorder %v11616_v7, %v12998_v40  ;;  %v10063_v50 = vld [vmem:[#allocation2 + $0xd8] sm:$0xff]  ;;  %vm2444_vm9 = vcmp.eq.s32.totalorder %v11619_v8, %v12998_v40  ;;  %v10935_v22 = vpack.c.bf16 %v7975_v11, %v7974_v47 }
 0x15e   : > { %4894 = vmatmul.bf16.vlgmr.msra.gmra.mxu3 %v3296_v36  ;;  %v10055_v36 = vld [vmem:[#allocation2 + $0x530] sm:$0xff]  ;;  %11275 = vst [vmem:[#allocation2 + $0x60] sm:$0xff] %v10851_v19   ;;  %v7996_v52 = vsel %vm2443_vm8, 1.0, %v11492_v10  ;;  %v3271_v14 = vunpack.c.l.b16 %v12987_v38  ;;  %4952 = vmatpush.bf16.msra.mxu0 %v10083_v61  ;;  %v7997_v25 = vsel %vm2444_vm9, 1.0, %v11492_v10  ;;  %v10082_v29 = vld [vmem:[#allocation2 + $0x180] sm:$0xff]  ;;  %v7956_v59 = vsel %vm2271_vm12, 1.0, %v11492_v10 }
 0x15f   : > { %4916 = vmatpush.bf16.msrb.mxu1 %v10056_v18  ;;  %4938 = vmatpush.bf16.msrb.mxu3 %v10076_v21  ;;  %v10968_v13 = vpack.c.bf16 %v7997_v25, %v7996_v52  ;;  %v7935_v21 = vsel %vm2184_vm11, 1.0, %v11492_v10  ;;  %11303 = vst [vmem:[#allocation2 + $0x568] sm:$0xff] %v10935_v22   ;;  %v7957_v30 = vsel %vm2272_vm13, 1.0, %v11492_v10  ;;  %vm2354_vm15 = vcmp.eq.s32.totalorder %v11695_v43, %v12915_v1 }
 0x160   : > { %4929 = vmatpush.bf16.msrb.mxu2 %v10064_v49  ;;  %v13028_v8 = vpack.c.b16 %v3271_v14, %v3271_v14  ;;  %v10875_v27 = vpack.c.bf16 %v7935_v21, %v7934_v0  ;;  %v7972_v46 = vsel %vm2353_vm14, 1.0, %v11492_v10  ;;  %v10908_v60 = vpack.c.bf16 %v7957_v30, %v7956_v59  ;;  %v10062_v45 = vld [vmem:[#allocation2 + $0x550] sm:$0xff] }
 0x161   : > { %v10054_v7 = vld [vmem:[#allocation2 + $0x688] sm:$0xff]  ;;  %11314 = vst [vmem:[#allocation2 + $0x1a8] sm:$0xff] %v10968_v13   ;;  %v7973_v35 = vsel %vm2354_vm15, 1.0, %v11492_v10  ;;  %vm2441_vm2 = vcmp.eq.s32.totalorder %v11634_v15, %v12998_v40  ;;  %vm2442_vm3 = vcmp.eq.s32.totalorder %v11637_v16, %v12998_v40  ;;  %vm2269_vm4 = vcmp.eq.s32.totalorder %v11718_v54, %v12903_v63 }
 0x162   : > { %v10074_v26 = vld [vmem:[#allocation2 + $0x4e8] sm:$0xff]  ;;  %11283 = vst [vmem:[#allocation2 + $0x1c0] sm:$0xff] %v10875_v27   ;;  %4953 = vmatpush.bf16.msra.mxu0 %v10082_v29  ;;  %v10932_v48 = vpack.c.bf16 %v7973_v35, %v7972_v46  ;;  %v7994_v49 = vsel %vm2441_vm2, 1.0, %v11492_v10  ;;  %v7995_v4 = vsel %vm2442_vm3, 1.0, %v11492_v10  ;;  %vm2270_vm5 = vcmp.eq.s32.totalorder %v11726_v57, %v12903_v63 }
 0x163   : > { %4917 = vmatpush.bf16.msrb.mxu1 %v10055_v36  ;;  %4939 = vmatpush.bf16.msrb.mxu3 %v10075_v37  ;;  %v2720_v18 = vpop.f32.mrf.mxu0  ;;  %v4726_v34 = vpop.f32.mrf.mxu2  ;;  %11294 = vst [vmem:[#allocation2 + $0x558] sm:$0xff] %v10908_v60   ;;  %v10965_v53 = vpack.c.bf16 %v7995_v4, %v7994_v49  ;;  %v3272_v36 = vunpack.c.h.b16 %v12987_v38  ;;  %v10073_v15 = vld [vmem:[#allocation2 + $0x20] sm:$0xff]  ;;  %v7954_v16 = vsel %vm2269_vm4, 1.0, %v11492_v10  ;;  %v7955_v62 = vsel %vm2270_vm5, 1.0, %v11492_v10 }
 0x164   : > { %4930 = vmatpush.bf16.msrb.mxu2 %v10063_v50  ;;  %v4715_v31 = vpop.f32.mrf.mxu1  ;;  %v13050_v51 = vadd.f32 %v4726_v34, %v4714_v17  ;;  %11302 = vst [vmem:[#allocation2 + $0x380] sm:$0xff] %v10932_v48   ;;  %vm2351_vm6 = vcmp.eq.s32.totalorder %v11718_v54, %v12915_v1  ;;  %vm2352_vm7 = vcmp.eq.s32.totalorder %v11726_v57, %v12915_v1 }
 0x165   : > { %v10053_v12 = vld [vmem:[#allocation2 + $0x60] sm:$0xff]  ;;  %11313 = vst [vmem:[#allocation2 + $0xf0] sm:$0xff] %v10965_v53   ;;  %v3299_v41 = vpack.c.b16 %v3272_v36, %v3272_v36  ;;  %v10905_v37 = vpack.c.bf16 %v7955_v62, %v7954_v16  ;;  %v7970_v9 = vsel %vm2351_vm6, 1.0, %v11492_v10  ;;  %v7971_v28 = vsel %vm2352_vm7, 1.0, %v11492_v10 }
 0x166   : > { %v10081_v55 = vld [vmem:[#allocation2 + $0x568] sm:$0xff]  ;;  %v10929_v17 = vpack.c.bf16 %v7971_v28, %v7970_v9  ;;  %vm2439_vm8 = vcmp.eq.s32.totalorder %v11652_v23, %v12998_v40  ;;  %vm2440_vm9 = vcmp.eq.s32.totalorder %v11655_v24, %v12998_v40  ;;  %vm2267_vm10 = vcmp.eq.s32.totalorder %v11742_v3, %v12903_v63 }
 0x167   : > { %4918 = vmatpush.bf16.msrb.mxu1 %v10054_v7  ;;  %4940 = vmatpush.bf16.msrb.mxu3 %v10074_v26  ;;  %11293 = vst [vmem:[#allocation2 + $0x1d8] sm:$0xff] %v10905_v37   ;;  %v7992_v56 = vsel %vm2439_vm8, 1.0, %v11492_v10  ;;  %v7993_v61 = vsel %vm2440_vm9, 1.0, %v11492_v10  ;;  %vm2268_vm11 = vcmp.eq.s32.totalorder %v11755_v20, %v12903_v63  ;;  %v7952_v24 = vsel %vm2267_vm10, 1.0, %v11492_v10 }
 0x168   : > { %4931 = vmatpush.bf16.msrb.mxu2 %v10062_v45  ;;  %v10092_v19 = vld [vmem:[#allocation2 + $0x1a8] sm:$0xff]  ;;  %4954 = vmatpush.bf16.msra.mxu0 %v10081_v55  ;;  %11301 = vst [vmem:[#allocation2 + $0x1a0] sm:$0xff] %v10929_v17   ;;  %v10962_v47 = vpack.c.bf16 %v7993_v61, %v7992_v56  ;;  %v7953_v50 = vsel %vm2268_vm11, 1.0, %v11492_v10  ;;  %vm2349_vm12 = vcmp.eq.s32.totalorder %v11742_v3, %v12915_v1 }
 0x169   : > { %v10061_v23 = vld [vmem:[#allocation2 + $0x1c0] sm:$0xff]  ;;  %v10902_v11 = vpack.c.bf16 %v7953_v50, %v7952_v24  ;;  %vm2350_vm13 = vcmp.eq.s32.totalorder %v11755_v20, %v12915_v1  ;;  %v7968_v52 = vsel %vm2349_vm12, 1.0, %v11492_v10  ;;  %vm2437_vm14 = vcmp.eq.s32.totalorder %v11673_v32, %v12998_v40 }
 0x16a   : > { %11312 = vst [vmem:[#allocation2 + $0xc8] sm:$0xff] %v10962_v47   ;;  %v7969_v22 = vsel %vm2350_vm13, 1.0, %v11492_v10  ;;  %vm2438_vm15 = vcmp.eq.s32.totalorder %v11676_v33, %v12998_v40  ;;  %v7990_v25 = vsel %vm2437_vm14, 1.0, %v11492_v10  ;;  %vm2265_vm2 = vcmp.eq.s32.totalorder %v11613_v6, %v12903_v63 }
 0x16b   : > { %4919 = vmatpush.bf16.msrb.mxu1 %v10053_v12  ;;  %v2722_v38 = vpop.f32.mrf.mxu0  ;;  %4941 = vmatpush.bf16.msrb.mxu3 %v10073_v15  ;;  %v4728_v44 = vpop.f32.mrf.mxu2  ;;  %v10080_v7 = vld [vmem:[#allocation2 + $0x380] sm:$0xff]  ;;  %11292 = vst [vmem:[#allocation2 + $0x160] sm:$0xff] %v10902_v11   ;;  %v10926_v13 = vpack.c.bf16 %v7969_v22, %v7968_v52  ;;  %v7991_v32 = vsel %vm2438_vm15, 1.0, %v11492_v10  ;;  %vm2266_vm3 = vcmp.eq.s32.totalorder %v11780_v39, %v12903_v63 }
 0x16c   : > { %v13065_v58 = vpack.c.bf16 %v2722_v38, %v2720_v18  ;;  %v13087_v14 = vpop.f32.mrf.mxu1  ;;  %4932 = vmatpush.bf16.msrb.mxu2 %v10061_v23  ;;  %v10072_v18 = vld [vmem:[#allocation2 + $0x558] sm:$0xff]  ;;  %v10091_v0 = vld [vmem:[#allocation2 + $0xf0] sm:$0xff]  ;;  %v10959_v21 = vpack.c.bf16 %v7991_v32, %v7990_v25  ;;  %v7951_v33 = vsel %vm2266_vm3, 1.0, %v11492_v10  ;;  %vm2347_vm4 = vcmp.eq.s32.totalorder %v11613_v6, %v12915_v1  ;;  %4955 = vmatpush.bf16.msra.mxu0 %v10080_v7 }
 0x16d   : > { %vm2348_vm5 = vcmp.eq.s32.totalorder %v11780_v39, %v12915_v1  ;;  %11300 = vst [vmem:[#allocation2 + $0x260] sm:$0xff] %v10926_v13   ;;  %v7966_v63 = vsel %vm2347_vm4, 1.0, %v11492_v10  ;;  %vm2435_vm6 = vcmp.eq.s32.totalorder %v11692_v42, %v12998_v40  ;;  %vm2436_vm7 = vcmp.eq.s32.totalorder %v11695_v43, %v12998_v40 }
 0x16e   : > { %4920 = vmatmul.bf16.vlgmr.msrb.gmra.mxu1 %v13028_v8  ;;  %v7950_v8 = vsel %vm2265_vm2, 1.0, %v11492_v10  ;;  %v7967_v34 = vsel %vm2348_vm5, 1.0, %v11492_v10  ;;  %v10071_v29 = vld [vmem:[#allocation2 + $0x1d8] sm:$0xff]  ;;  %11311 = vst [vmem:[#allocation2 + $0x220] sm:$0xff] %v10959_v21   ;;  %v7988_v1 = vsel %vm2435_vm6, 1.0, %v11492_v10  ;;  %v7989_v60 = vsel %vm2436_vm7, 1.0, %v11492_v10 }
 0x16f   : > { %4964 = vmatpush.bf16.msra.mxu1 %v10092_v19  ;;  %4942 = vmatpush.bf16.msrb.mxu3 %v10072_v18  ;;  %v10899_v27 = vpack.c.bf16 %v7951_v33, %v7950_v8  ;;  %v10923_v30 = vpack.c.bf16 %v7967_v34, %v7966_v63  ;;  %v10079_v46 = vld [vmem:[#allocation2 + $0x1a0] sm:$0xff]  ;;  %vm2433_vm8 = vcmp.eq.s32.totalorder %v11718_v54, %v12998_v40  ;;  %v3273_v48 = vunpack.c.l.b16 %v13065_v58 }
 0x170   : > { %4933 = vmatmul.bf16.vlgmr.msrb.gmra.mxu2 %v3299_v41  ;;  %v10956_v42 = vpack.c.bf16 %v7989_v60, %v7988_v1  ;;  %vm2434_vm9 = vcmp.eq.s32.totalorder %v11726_v57, %v12998_v40  ;;  %v7986_v31 = vsel %vm2433_vm8, 1.0, %v11492_v10  ;;  %4956 = vmatpush.bf16.msra.mxu0 %v10079_v46  ;;  %vm2431_vm10 = vcmp.eq.s32.totalorder %v11742_v3, %v12998_v40 }
 0x171   : > { %11291 = vst [vmem:[#allocation2 + $0x2d0] sm:$0xff] %v10899_v27   ;;  %v4739_v35 = vpop.f32.mrf.mxu3  ;;  %v10090_v45 = vld [vmem:[#allocation2 + $0xc8] sm:$0xff]  ;;  %v7987_v49 = vsel %vm2434_vm9, 1.0, %v11492_v10  ;;  %vm2432_vm11 = vcmp.eq.s32.totalorder %v11755_v20, %v12998_v40  ;;  %v7984_v57 = vsel %vm2431_vm10, 1.0, %v11492_v10  ;;  %vm2429_vm12 = vcmp.eq.s32.totalorder %v11613_v6, %v12998_v40 }
 0x172   : > { %v4740_v43 = vadd.f32 %v4739_v35, %v13050_v51  ;;  %11299 = vst [vmem:[#allocation2 + $0x5f8] sm:$0xff] %v10923_v30   ;;  %v10070_v54 = vld [vmem:[#allocation2 + $0x160] sm:$0xff]  ;;  %v10953_v12 = vpack.c.bf16 %v7987_v49, %v7986_v31  ;;  %v7985_v51 = vsel %vm2432_vm11, 1.0, %v11492_v10  ;;  %vm2430_vm13 = vcmp.eq.s32.totalorder %v11780_v39, %v12998_v40 }
 0x173   : > { %v2725_v26 = vpop.f32.mrf.mxu0  ;;  %4965 = vmatpush.bf16.msra.mxu1 %v10091_v0  ;;  %4943 = vmatpush.bf16.msrb.mxu3 %v10071_v29  ;;  %11310 = vst [vmem:[#allocation2 + $0x280] sm:$0xff] %v10956_v42   ;;  %v7982_v53 = vsel %vm2429_vm12, 1.0, %v11492_v10  ;;  %v10950_v15 = vpack.c.bf16 %v7985_v51, %v7984_v57  ;;  %v7983_v20 = vsel %vm2430_vm13, 1.0, %v11492_v10  ;;  %v3274_v62 = vunpack.c.h.b16 %v13065_v58 }
 0x174   : > { %v2781_v59 = vpack.c.bf16 %v2725_v26, %v2725_v26  ;;  %v4754_v4 = vpop.f32.mrf.mxu1  ;;  %v4753_v3 = vadd.f32 %v13087_v14, %v4740_v43  ;;  %v10078_v36 = vld [vmem:[#allocation2 + $0x260] sm:$0xff]  ;;  %11309 = vst [vmem:[#allocation2 + $0x4f8] sm:$0xff] %v10953_v12   ;;  %v10947_v38 = vpack.c.bf16 %v7983_v20, %v7982_v53  ;;  %v3300_v39 = vpack.c.b16 %v3273_v48, %v3273_v48 }
 0x175   : > { %v10089_v16 = vld [vmem:[#allocation2 + $0x220] sm:$0xff]  ;;  %4957 = vmatpush.bf16.msra.mxu0 %v10078_v36  ;;  %11308 = vst [vmem:[#allocation2 + $0x3d8] sm:$0xff] %v10950_v15   ;;  %v3301_v28 = vpack.c.b16 %v3274_v62, %v3274_v62 }
 0x176   : > { %2782 = vst [vmem:[#allocation3 + $0x68] sm:$0xf] %v2781_v59 }
 0x177   : > { %4966 = vmatpush.bf16.msra.mxu1 %v10090_v45  ;;  %4944 = vmatpush.bf16.msrb.mxu3 %v10070_v54  ;;  %11307 = vst [vmem:[#allocation2 + $0x578] sm:$0xff] %v10947_v38  }
 0x178   : > { %v10069_v41 = vld [vmem:[#allocation2 + $0x2d0] sm:$0xff] }
 0x179   : > { %v4741_v40 = vpop.f32.mrf.mxu3  ;;  %v10077_v37 = vld [vmem:[#allocation2 + $0x5f8] sm:$0xff] }
 0x17a   : > { %v10088_v9 = vld [vmem:[#allocation2 + $0x280] sm:$0xff]  ;;  %4958 = vmatpush.bf16.msra.mxu0 %v10077_v37 }
 0x17b   : > { %v2727_v6 = vpop.f32.mrf.mxu0  ;;  %4967 = vmatpush.bf16.msra.mxu1 %v10089_v16  ;;  %4945 = vmatpush.bf16.msrb.mxu3 %v10069_v41  ;;  %v10087_v10 = vld [vmem:[#allocation2 + $0x4f8] sm:$0xff]  ;;  %v10093_v40 = vld [vmem:[%s13240_s4] sm:$0xff] }
 0x17c   : > { %v10086_v55 = vld [vmem:[#allocation2 + $0x3d8] sm:$0xff] }
 0x17d   : > { %4959 = vmatmul.bf16.vlgmr.msra.gmra.mxu0 %v3301_v28  ;;  %v2796_v58 = vld [vmem:[#allocation3 + $0x68] sm:$0xf]  ;;  %v10095_v28 = vld [vmem:[%s13240_s4 + $0x10] sm:$0xff] }
 0x17e   : > { %4946 = vmatmul.bf16.vlgmr.msrb.gmra.mxu3 %v3300_v39  ;;  %v3275_v61 = vunpack.c.l.b16 %v2796_v58  ;;  %v10085_v23 = vld [vmem:[#allocation2 + $0x578] sm:$0xff]  ;;  %v10097_v58 = vld [vmem:[%s13240_s4 + $0x20] sm:$0xff] }
 0x17f   : > { %5708 = vmatpush.bf16.msra.mxu3 %v11600_v2  ;;  %4968 = vmatpush.bf16.msra.mxu1 %v10088_v9  ;;  %v10094_v9 = vld [vmem:[%s13240_s4 + $0x8] sm:$0xff] }
 0x180   : > { %v3302_v47 = vpack.c.b16 %v3275_v61, %v3275_v61  ;;  %v10120_v61 = vld [vmem:[#allocation2 + $0x58] sm:$0xff] }
 0x181   : > { %v4765_v17 = vpop.f32.mrf.mxu2  ;;  %v4778_v19 = vpop.f32.mrf.mxu3 }
 0x182   : > { %v4766_v56 = vadd.f32 %v4765_v17, %v4753_v3  ;;  %v10112_v17 = vld [vmem:[#allocation2 + $0x440] sm:$0xff] }
 0x183   : > { %4969 = vmatpush.bf16.msra.mxu1 %v10087_v10  ;;  %v10096_v10 = vld [vmem:[%s13240_s4 + $0x18] sm:$0xff] }
 0x184   : > { %v4779_v44 = vadd.f32 %v4778_v19, %v4766_v56  ;;  %v10121_v19 = vld [vmem:[#allocation2 + $0x2b8] sm:$0xff]  ;;  %v10111_v56 = vld [vmem:[#allocation2 + $0x328] sm:$0xff] }
 0x185   : > { %7120 = vmatpush.bf16.msrb.mxu3 %v10121_v19 }
 0x187   : > { %4970 = vmatpush.bf16.msra.mxu1 %v10086_v55  ;;  %v10113_v55 = vld [vmem:[#allocation2 + $0x378] sm:$0xff] }
 0x188   : > { %7107 = vmatpush.bf16.msrb.mxu0 %v10113_v55  ;;  %v10161_v55 = vld [vmem:[#allocation2 + $0x4f0] sm:$0xff] }
 0x189   : > { %v4767_v24 = vpop.f32.mrf.mxu2  ;;  %v4780_v50 = vpop.f32.mrf.mxu3  ;;  %7121 = vmatpush.bf16.msrb.mxu3 %v10120_v61  ;;  %v10160_v61 = vld [vmem:[#allocation2 + $0x348] sm:$0xff] }
 0x18a   : > { %v10129_v24 = vld [vmem:[#allocation2 + $0x3b8] sm:$0xff]  ;;  %v10098_v50 = vld [vmem:[%s13240_s4 + $0x28] sm:$0xff] }
 0x18b   : > { %4971 = vmatpush.bf16.msra.mxu1 %v10085_v23  ;;  %v4791_v2 = vpop.f32.mrf.mxu1  ;;  %v10119_v23 = vld [vmem:[#allocation2 + $0x500] sm:$0xff] }
 0x18c   : > { %v4792_v11 = vadd.f32 %v4791_v2, %v4779_v44  ;;  %7108 = vmatpush.bf16.msrb.mxu0 %v10112_v17  ;;  %v10110_v44 = vld [vmem:[#allocation2 + $0x450] sm:$0xff]  ;;  %v10118_v2 = vld [vmem:[#allocation2 + $0x548] sm:$0xff] }
 0x18d   : > { %7122 = vmatpush.bf16.msrb.mxu3 %v10119_v23  ;;  %v10159_v23 = vld [vmem:[#allocation2 + $0x4d0] sm:$0xff] }
 0x18e   : > { %4972 = vmatmul.bf16.vlgmr.msra.gmra.mxu1 %v3302_v47  ;;  %v10109_v47 = vld [vmem:[#allocation2 + $0x18] sm:$0xff] }
 0x18f   : > { %7133 = vmatpush.bf16.msrb.mxu1 %v10129_v24 }
 0x190   : > { %7109 = vmatpush.bf16.msrb.mxu0 %v10111_v56 }
 0x191   : > { %7123 = vmatpush.bf16.msrb.mxu3 %v10118_v2  ;;  %v10166_v2 = vld [vmem:[#allocation2 + $0x640] sm:$0xff] }
 0x193   : > { %v4793_v18 = vpop.f32.mrf.mxu1 }
 0x194   : > { %v4804_v52 = vpop.f32.mrf.mxu2  ;;  %7110 = vmatpush.bf16.msrb.mxu0 %v10110_v44  ;;  %v10117_v18 = vld [vmem:[#allocation2 + $0x318] sm:$0xff]  ;;  %v10168_v44 = vld [vmem:[#allocation2 + $0x6a0] sm:$0xff] }
 0x195   : > { %v4805_v14 = vadd.f32 %v4804_v52, %v4792_v11  ;;  %v10108_v11 = vld [vmem:[#allocation2 + $0x4d8] sm:$0xff]  ;;  %v10128_v52 = vld [vmem:[#allocation2 + $0x40] sm:$0xff]  ;;  %7124 = vmatpush.bf16.msrb.mxu3 %v10117_v18 }
 0x196   : > { %7134 = vmatpush.bf16.msrb.mxu1 %v10128_v52  ;;  %v10103_v52 = vld [vmem:[%s13240_s4 + $0x50] sm:$0xff] }
 0x198   : > { %7111 = vmatpush.bf16.msrb.mxu0 %v10109_v47  ;;  %v10167_v47 = vld [vmem:[#allocation2 + $0x330] sm:$0xff] }
 0x19c   : > { %v4806_v22 = vpop.f32.mrf.mxu2  ;;  %7112 = vmatpush.bf16.msrb.mxu0 %v10108_v11 }
 0x19d   : > { %v10107_v22 = vld [vmem:[#allocation2 + $0x3b0] sm:$0xff] }
 0x1a0   : > { %7113 = vmatpush.bf16.msrb.mxu0 %v10107_v22  ;;  %v10157_v22 = vld [vmem:[#allocation2 + $0x400] sm:$0xff] }
 0x1a1   : > { %v4817_v25 = vpop.f32.mrf.mxu3 }
 0x1a2   : > { %v4818_v13 = vadd.f32 %v4817_v25, %v4805_v14  ;;  %v10265_v14 = vld [vmem:[#allocation2 + $0x270] sm:$0xff]  ;;  %v10127_v25 = vld [vmem:[#allocation2 + $0x338] sm:$0xff] }
 0x1a3   : > { %7135 = vmatpush.bf16.msrb.mxu1 %v10127_v25  ;;  %v10177_v25 = vld [vmem:[#allocation2 + $0x570] sm:$0xff] }
 0x1a9   : > { %v4819_v8 = vpop.f32.mrf.mxu3 }
 0x1aa   : > { %v10137_v8 = vld [vmem:[#allocation2 + $0x50] sm:$0xff] }
 0x1ab   : > { %v4830_v7 = vpop.f32.mrf.mxu1 }
 0x1ac   : > { %v4831_v32 = vadd.f32 %v4830_v7, %v4818_v13  ;;  %v10116_v7 = vld [vmem:[#allocation2 + $0x490] sm:$0xff] }
 0x1ad   : > { %v10106_v13 = vld [vmem:[#allocation2 + $0x2b0] sm:$0xff]  ;;  %7125 = vmatpush.bf16.msrb.mxu3 %v10116_v7 }
 0x1ae   : > { %7114 = vmatpush.bf16.msrb.mxu0 %v10106_v13 }
 0x1b2   : > { %7146 = vmatpush.bf16.msra.mxu0 %v10137_v8 }
 0x1b3   : > { %v4832_v0 = vpop.f32.mrf.mxu1 }
 0x1b4   : > { %v4843_v21 = vpop.f32.mrf.mxu2  ;;  %v10115_v0 = vld [vmem:[#allocation2 + $0x510] sm:$0xff] }
 0x1b5   : > { %v4844_v33 = vadd.f32 %v4843_v21, %v4831_v32  ;;  %v10126_v32 = vld [vmem:[#allocation2 + $0x660] sm:$0xff]  ;;  %7126 = vmatpush.bf16.msrb.mxu3 %v10115_v0  ;;  %v10156_v0 = vld [vmem:[#allocation2 + $0x2c8] sm:$0xff] }
 0x1b6   : > { %7136 = vmatpush.bf16.msrb.mxu1 %v10126_v32  ;;  %v10125_v21 = vld [vmem:[#allocation2 + $0x3c0] sm:$0xff]  ;;  %v10165_v32 = vld [vmem:[#allocation2 + $0x5c8] sm:$0xff] }
 0x1ba   : > { %7137 = vmatpush.bf16.msrb.mxu1 %v10125_v21  ;;  %v10176_v21 = vld [vmem:[#allocation2 + $0x350] sm:$0xff] }
 0x1bc   : > { %v4845_v27 = vpop.f32.mrf.mxu2 }
 0x1bd   : > { %v10114_v27 = vld [vmem:[#allocation2 + $0x108] sm:$0xff] }
 0x1be   : > { %7127 = vmatpush.bf16.msrb.mxu3 %v10114_v27  ;;  %v10155_v27 = vld [vmem:[#allocation2 + $0x4a0] sm:$0xff] }
 0x1c1   : > { %v4856_v26 = vpop.f32.mrf.mxu3 }
 0x1c2   : > { %v4857_v45 = vadd.f32 %v4856_v26, %v4844_v33  ;;  %v10136_v33 = vld [vmem:[#allocation2 + $0x5e8] sm:$0xff]  ;;  %v10099_v26 = vld [vmem:[%s13240_s4 + $0x30] sm:$0xff] }
 0x1c3   : > { %7147 = vmatpush.bf16.msra.mxu0 %v10136_v33  ;;  %v10262_v33 = vld [vmem:[#allocation2 + $0x288] sm:$0xff] }
 0x1c9   : > { %v4858_v34 = vpop.f32.mrf.mxu3 }
 0x1ca   : > { %v10145_v34 = vld [vmem:[#allocation2 + $0x5b0] sm:$0xff] }
 0x1cb   : > { %v4869_v63 = vpop.f32.mrf.mxu1 }
 0x1cc   : > { %v4870_v48 = vadd.f32 %v4869_v63, %v4857_v45  ;;  %v10124_v63 = vld [vmem:[#allocation2 + $0x540] sm:$0xff]  ;;  %v10132_v45 = vld [vmem:[#allocation2 + $0xd0] sm:$0xff] }
 0x1cd   : > { %7138 = vmatpush.bf16.msrb.mxu1 %v10124_v63  ;;  %v10175_v63 = vld [vmem:[#allocation2 + $0x1c8] sm:$0xff] }
 0x1d3   : > { %v4871_v29 = vpop.f32.mrf.mxu1 }
 0x1d4   : > { %v4882_v59 = vpop.f32.mrf.mxu2  ;;  %v5697_v29 = vld [vmem:[%s13241_s5] sm:$0xf] }
 0x1d5   : > { %v4908_v30 = vpop.f32.mrf.mxu0  ;;  %v4883_v49 = vadd.f32 %v4882_v59, %v4870_v48  ;;  %v10135_v59 = vld [vmem:[#allocation2 + $0x8] sm:$0xff]  ;;  %8994 = vmatmul.msk.bf16.vlgmr.msra.gmra.mxu3 %vm2604_vm1, %v5697_v29  ;;  %v10152_v48 = vld [vmem:[#allocation2 + $0x5d8] sm:$0xff] }
 0x1d6   : > { %7159 = vmatpush.bf16.msra.mxu3 %v10145_v34  ;;  %7148 = vmatpush.bf16.msra.mxu0 %v10135_v59  ;;  %v10163_v34 = vld [vmem:[#allocation2 + $0x630] sm:$0xff]  ;;  %v10154_v59 = vld [vmem:[#allocation2 + $0x358] sm:$0xff] }
 0x1dc   : > { %v4884_v1 = vpop.f32.mrf.mxu2 }
 0x1dd   : > { %v4910_v46 = vpop.f32.mrf.mxu0  ;;  %v10144_v1 = vld [vmem:[#allocation2 + $0x588] sm:$0xff] }
 0x1de   : > { %v10134_v46 = vld [vmem:[#allocation2 + $0x528] sm:$0xff]  ;;  %7160 = vmatpush.bf16.msra.mxu3 %v10144_v1 }
 0x1df   : > { %7149 = vmatpush.bf16.msra.mxu0 %v10134_v46  ;;  %v10104_v46 = vld [vmem:[%s13240_s4 + $0x58] sm:$0xff] }
 0x1e1   : > { %v4895_v60 = vpop.f32.mrf.mxu3 }
 0x1e2   : > { %v4896_v4 = vadd.f32 %v4895_v60, %v4883_v49  ;;  %v10122_v60 = vld [vmem:[#allocation2 + $0x580] sm:$0xff]  ;;  %v10100_v49 = vld [vmem:[%s13240_s4 + $0x38] sm:$0xff] }
 0x1e4   : > { %v4909_v57 = vadd.f32 %v4908_v30, %v4896_v4  ;;  %v10123_v30 = vld [vmem:[#allocation2 + $0x590] sm:$0xff]  ;;  %v10141_v4 = vld [vmem:[#allocation2 + $0x98] sm:$0xff] }
 0x1e5   : > { %7139 = vmatpush.bf16.msrb.mxu1 %v10123_v30  ;;  %v10174_v30 = vld [vmem:[#allocation2 + $0xb8] sm:$0xff] }
 0x1e9   : > { %v4897_v35 = vpop.f32.mrf.mxu3  ;;  %7140 = vmatpush.bf16.msrb.mxu1 %v10122_v60  ;;  %v10185_v60 = vld [vmem:[#allocation2 + $0x410] sm:$0xff] }
 0x1ea   : > { %v10143_v35 = vld [vmem:[#allocation2 + $0x690] sm:$0xff] }
 0x1eb   : > { %v4921_v42 = vpop.f32.mrf.mxu1  ;;  %7161 = vmatpush.bf16.msra.mxu3 %v10143_v35  ;;  %v10162_v35 = vld [vmem:[#allocation2 + $0x178] sm:$0xff] }
 0x1ec   : > { %v4922_v51 = vadd.f32 %v4921_v42, %v4909_v57  ;;  %v10133_v42 = vld [vmem:[#allocation2 + $0x390] sm:$0xff]  ;;  %v10264_v57 = vld [vmem:[#allocation2 + $0x208] sm:$0xff] }
 0x1ed   : > { %7150 = vmatpush.bf16.msra.mxu0 %v10133_v42 }
 0x1f1   : > { %7151 = vmatpush.bf16.msra.mxu0 %v10132_v45  ;;  %v10193_v45 = vld [vmem:[#allocation2 + $0x48] sm:$0xff] }
 0x1f3   : > { %v4923_v31 = vpop.f32.mrf.mxu1  ;;  %v4934_v43 = vpop.f32.mrf.mxu2 }
 0x1f4   : > { %v4935_v3 = vadd.f32 %v4934_v43, %v4922_v51  ;;  %v10153_v31 = vld [vmem:[#allocation2 + $0xa0] sm:$0xff]  ;;  %v10140_v51 = vld [vmem:[#allocation2 + $0x670] sm:$0xff] }
 0x1f5   : > { %7172 = vmatpush.bf16.msra.mxu1 %v10153_v31  ;;  %v10142_v43 = vld [vmem:[#allocation2] sm:$0xff] }
 0x1f6   : > { %7162 = vmatpush.bf16.msra.mxu3 %v10142_v43  ;;  %v10173_v43 = vld [vmem:[#allocation2 + $0x1e8] sm:$0xff] }
 0x1f9   : > { %7173 = vmatpush.bf16.msra.mxu1 %v10152_v48 }
 0x1fa   : > { %v4960_v12 = vpop.f32.mrf.mxu0  ;;  %7163 = vmatpush.bf16.msra.mxu3 %v10141_v4  ;;  %v10184_v4 = vld [vmem:[#allocation2 + $0x158] sm:$0xff] }
 0x1fb   : > { %v4936_v54 = vpop.f32.mrf.mxu2 }
 0x1fc   : > { %v10131_v54 = vld [vmem:[#allocation2 + $0x250] sm:$0xff] }
 0x1fd   : > { %7152 = vmatpush.bf16.msra.mxu0 %v10131_v54 }
 0x1fe   : > { %7164 = vmatpush.bf16.msra.mxu3 %v10140_v51  ;;  %v10183_v51 = vld [vmem:[#allocation2 + $0x320] sm:$0xff] }
 0x201   : > { %v4947_v53 = vpop.f32.mrf.mxu3 }
 0x202   : > { %v4948_v36 = vadd.f32 %v4947_v53, %v4935_v3  ;;  %v4962_v15 = vpop.f32.mrf.mxu0  ;;  %v10130_v53 = vld [vmem:[#allocation2 + $0x190] sm:$0xff]  ;;  %v10150_v3 = vld [vmem:[#allocation2 + $0x308] sm:$0xff] }
 0x203   : > { %7153 = vmatpush.bf16.msra.mxu0 %v10130_v53  ;;  %v10149_v15 = vld [vmem:[#allocation2 + $0x210] sm:$0xff]  ;;  %v10171_v53 = vld [vmem:[#allocation2 + $0x538] sm:$0xff] }
 0x204   : > { %v4961_v20 = vadd.f32 %v4960_v12, %v4948_v36  ;;  %v10151_v12 = vld [vmem:[#allocation2 + $0x3e0] sm:$0xff]  ;;  %v10139_v36 = vld [vmem:[#allocation2 + $0x3c8] sm:$0xff] }
 0x205   : > { %7174 = vmatpush.bf16.msra.mxu1 %v10151_v12  ;;  %7165 = vmatpush.bf16.msra.mxu3 %v10139_v36  ;;  %v10172_v12 = vld [vmem:[#allocation2 + $0x110] sm:$0xff]  ;;  %v10182_v36 = vld [vmem:[#allocation2 + $0x28] sm:$0xff] }
 0x209   : > { %v4949_v16 = vpop.f32.mrf.mxu3  ;;  %7175 = vmatpush.bf16.msra.mxu1 %v10150_v3  ;;  %v10191_v3 = vld [vmem:[#allocation2 + $0x2c0] sm:$0xff] }
 0x20a   : > { %v10148_v16 = vld [vmem:[#allocation2 + $0x600] sm:$0xff] }
 0x20b   : > { %v4973_v62 = vpop.f32.mrf.mxu1 }
 0x20c   : > { %v4974_v6 = vadd.f32 %v4973_v62, %v4961_v20  ;;  %v10138_v20 = vld [vmem:[#allocation2 + $0x10] sm:$0xff]  ;;  %v10101_v62 = vld [vmem:[%s13240_s4 + $0x40] sm:$0xff] }
 0x20d   : > { %7176 = vmatpush.bf16.msra.mxu1 %v10149_v15  ;;  %7166 = vmatpush.bf16.msra.mxu3 %v10138_v20  ;;  %v10170_v20 = vld [vmem:[#allocation2 + $0x5a0] sm:$0xff] }
 0x20e   : > { %v4977_v38 = vmax.f32 %v4974_v6, 0.0  ;;  %v10147_v6 = vld [vmem:[#allocation2 + $0x4e0] sm:$0xff] }
 0x210   : > { %v4978_v41 = vpack.c.bf16 %v4977_v38, %v4977_v38  ;;  %v10146_v38 = vld [vmem:[#allocation2 + $0x5c0] sm:$0xff] }
 0x211   : > { %7177 = vmatpush.bf16.msra.mxu1 %v10148_v16  ;;  %v10190_v16 = vld [vmem:[#allocation2 + $0x2a0] sm:$0xff] }
 0x212   : > { %v5117_v39 = vsel %vm2647_vm0, %v4978_v41, 0 }
 0x213   : > { %v4975_v37 = vpop.f32.mrf.mxu1  ;;  %5126 = vmatpush.bf16.msra.mxu2 %v5117_v39 }
 0x214   : > { %v10102_v37 = vld [vmem:[%s13240_s4 + $0x48] sm:$0xff] }
 0x215   : > { %7178 = vmatpush.bf16.msra.mxu1 %v10147_v6  ;;  %v10105_v6 = vld [vmem:[%s13240_s4 + $0x60] sm:$0xff] }
 0x216   : > { %8980 = vmatmul.msk.bf16.vlgmr.msra.gmra.mxu2 %vm2604_vm1, %v10093_v40 }
 0x217   : > { %7354 = vmatpush.bf16.msrb.mxu2 %v10265_v14 }
 0x219   : > { %7179 = vmatpush.bf16.msra.mxu1 %v10146_v38  ;;  %v10181_v38 = vld [vmem:[#allocation2 + $0x140] sm:$0xff] }
 0x21b   : > { %7355 = vmatpush.bf16.msrb.mxu2 %v10264_v57  ;;  %v10192_v57 = vld [vmem:[#allocation2 + $0x4c8] sm:$0xff] }
 0x226   : > { %8981 = vmatmul.msk.bf16.gmra.mxu2 %vm2604_vm1, %v10094_v9 }
 0x236   : > { %8982 = vmatmul.msk.bf16.gmra.mxu2 %vm2604_vm1, %v10095_v28 }
 0x246   : > { %8983 = vmatmul.msk.bf16.gmra.mxu2 %vm2604_vm1, %v10096_v10  ;;  %v10263_v10 = vld [vmem:[#allocation2 + $0x218] sm:$0xff] }
 0x247   : > { %7356 = vmatpush.bf16.msrb.mxu2 %v10263_v10  ;;  %v10180_v10 = vld [vmem:[#allocation2 + $0x1f8] sm:$0xff] }
 0x24b   : > { %7357 = vmatpush.bf16.msrb.mxu2 %v10262_v33  ;;  %v10196_v33 = vld [vmem:[#allocation2 + $0x460] sm:$0xff] }
 0x256   : > { %8984 = vmatmul.msk.bf16.gmra.mxu2 %vm2604_vm1, %v10097_v58  ;;  %v10169_v58 = vld [vmem:[#allocation2 + $0x2a8] sm:$0xff] }
 0x266   : > { %8985 = vmatmul.msk.bf16.gmra.mxu2 %vm2604_vm1, %v10098_v50  ;;  %v10158_v50 = vld [vmem:[#allocation2 + $0x3f8] sm:$0xff] }
 0x276   : > { %8986 = vmatmul.msk.bf16.gmra.mxu2 %vm2604_vm1, %v10099_v26  ;;  %v10164_v26 = vld [vmem:[#allocation2 + $0x518] sm:$0xff] }
 0x286   : > { %8987 = vmatmul.msk.bf16.gmra.mxu2 %vm2604_vm1, %v10100_v49 }
 0x296   : > { %8988 = vmatmul.msk.bf16.gmra.mxu2 %vm2604_vm1, %v10101_v62 }
 0x299   : > { %v5128_v41 = vpop.f32.mrf.mxu2 }
 0x2a1   : > { %v5130_v39 = vpop.f32.mrf.mxu2 }
 0x2a2   : > { %v11038_v40 = vpack.c.bf16 %v5130_v39, %v5128_v41  ;;  %v10201_v41 = vld [vmem:[#allocation2 + $0x290] sm:$0xff] }
 0x2a4   : > { %v5730_v9 = vunpack.c.l.b16 %v11038_v40  ;;  %v5731_v28 = vunpack.c.h.b16 %v11038_v40 }
 0x2a6   : > { %8989 = vmatmul.msk.bf16.gmra.mxu2 %vm2604_vm1, %v10102_v37  ;;  %v5757_v17 = vpack.c.b16 %v5730_v9, %v5730_v9  ;;  %v5758_v19 = vpack.c.b16 %v5731_v28, %v5731_v28  ;;  %v10189_v37 = vld [vmem:[#allocation2 + $0x438] sm:$0xff] }
 0x2a8   : > { %7115 = vmatmul.bf16.vlgmr.msrb.gmra.mxu0 %v5757_v17  ;;  %7128 = vmatmul.bf16.vlgmr.msrb.gmra.mxu3 %v5758_v19  ;;  %v10188_v17 = vld [vmem:[#allocation2 + $0x3a8] sm:$0xff]  ;;  %v10261_v19 = vld [vmem:[#allocation2 + $0xf8] sm:$0xff] }
 0x2a9   : > { %v5133_v56 = vpop.f32.mrf.mxu2  ;;  %7185 = vmatpush.bf16.msrb.mxu0 %v10161_v55  ;;  %7198 = vmatpush.bf16.msrb.mxu3 %v10169_v58  ;;  %v10200_v55 = vld [vmem:[#allocation2 + $0x300] sm:$0xff] }
 0x2aa   : > { %7358 = vmatpush.bf16.msrb.mxu2 %v10261_v19 }
 0x2ad   : > { %7186 = vmatpush.bf16.msrb.mxu0 %v10160_v61  ;;  %7199 = vmatpush.bf16.msrb.mxu3 %v10168_v44  ;;  %v10199_v61 = vld [vmem:[#allocation2 + $0x240] sm:$0xff]  ;;  %v5005_v44 = vld [vmem:[%s13240_s4 + $0x68] sm:$0xf] }
 0x2b1   : > { %v5135_v24 = vpop.f32.mrf.mxu2  ;;  %7187 = vmatpush.bf16.msrb.mxu0 %v10159_v23  ;;  %7200 = vmatpush.bf16.msrb.mxu3 %v10167_v47  ;;  %v10187_v23 = vld [vmem:[#allocation2 + $0xa8] sm:$0xff] }
 0x2b2   : > { %v11043_v11 = vpack.c.bf16 %v5135_v24, %v5133_v56  ;;  %v10179_v56 = vld [vmem:[#allocation2 + $0x618] sm:$0xff]  ;;  %v10178_v47 = vld [vmem:[#allocation2 + $0x5a8] sm:$0xff]  ;;  %v5059_v24 = vunpack.c.l.b16 %v5005_v44 }
 0x2b3   : > { %v10230_v44 = vld [vmem:[#allocation2 + $0x6b8] sm:$0xff] }
 0x2b4   : > { %v5732_v14 = vunpack.c.l.b16 %v11043_v11  ;;  %v5733_v18 = vunpack.c.h.b16 %v11043_v11 }
 0x2b5   : > { %7188 = vmatpush.bf16.msrb.mxu0 %v10158_v50  ;;  %7201 = vmatpush.bf16.msrb.mxu3 %v10166_v2  ;;  %v10198_v50 = vld [vmem:[#allocation2 + $0x200] sm:$0xff]  ;;  %v10209_v2 = vld [vmem:[#allocation2 + $0x3d0] sm:$0xff] }
 0x2b6   : > { %8990 = vmatmul.msk.bf16.gmra.mxu2 %vm2604_vm1, %v10103_v52  ;;  %v5759_v7 = vpack.c.b16 %v5732_v14, %v5732_v14  ;;  %v5760_v13 = vpack.c.b16 %v5733_v18, %v5733_v18  ;;  %v10186_v52 = vld [vmem:[#allocation2 + $0x258] sm:$0xff]  ;;  %v5073_v18 = vpack.c.b16 %v5059_v24, %v5059_v24  ;;  %v10218_v24 = vld [vmem:[#allocation2 + $0x408] sm:$0xff] }
 0x2b8   : > { %7141 = vmatmul.bf16.vlgmr.msrb.gmra.mxu1 %v5759_v7  ;;  %7154 = vmatmul.bf16.vlgmr.msra.gmra.mxu0 %v5760_v13  ;;  %v10208_v7 = vld [vmem:[#allocation2 + $0x80] sm:$0xff] }
 0x2b9   : > { %v5138_v8 = vpop.f32.mrf.mxu2  ;;  %7189 = vmatpush.bf16.msrb.mxu0 %v10157_v22  ;;  %7211 = vmatpush.bf16.msrb.mxu1 %v10177_v25  ;;  %v10217_v22 = vld [vmem:[#allocation2 + $0x298] sm:$0xff]  ;;  %v10197_v25 = vld [vmem:[#allocation2 + $0xb0] sm:$0xff] }
 0x2ba   : > { %7202 = vmatpush.bf16.msrb.mxu3 %v10165_v32 }
 0x2bd   : > { %7190 = vmatpush.bf16.msrb.mxu0 %v10156_v0  ;;  %7212 = vmatpush.bf16.msrb.mxu1 %v10176_v21  ;;  %v10216_v21 = vld [vmem:[#allocation2 + $0xc0] sm:$0xff] }
 0x2be   : > { %7203 = vmatpush.bf16.msrb.mxu3 %v10164_v26  ;;  %v10207_v26 = vld [vmem:[#allocation2 + $0x2e0] sm:$0xff] }
 0x2c1   : > { %v5140_v29 = vpop.f32.mrf.mxu2  ;;  %7191 = vmatpush.bf16.msrb.mxu0 %v10155_v27  ;;  %7213 = vmatpush.bf16.msrb.mxu1 %v10175_v63  ;;  %v10215_v63 = vld [vmem:[#allocation2 + $0x1f0] sm:$0xff] }
 0x2c2   : > { %v11048_v1 = vpack.c.bf16 %v5140_v29, %v5138_v8  ;;  %7204 = vmatpush.bf16.msrb.mxu3 %v10163_v34  ;;  %v10195_v34 = vld [vmem:[#allocation2 + $0x420] sm:$0xff]  ;;  %v10206_v29 = vld [vmem:[#allocation2 + $0x430] sm:$0xff] }
 0x2c4   : > { %v5734_v42 = vunpack.c.l.b16 %v11048_v1  ;;  %v5735_v31 = vunpack.c.h.b16 %v11048_v1  ;;  %v10205_v1 = vld [vmem:[#allocation2 + $0x360] sm:$0xff] }
 0x2c5   : > { %7192 = vmatpush.bf16.msrb.mxu0 %v10154_v59  ;;  %7214 = vmatpush.bf16.msrb.mxu1 %v10174_v30  ;;  %v10214_v59 = vld [vmem:[#allocation2 + $0x78] sm:$0xff]  ;;  %v10194_v30 = vld [vmem:[#allocation2 + $0x5d0] sm:$0xff] }
 0x2c6   : > { %8991 = vmatmul.msk.bf16.gmra.mxu2 %vm2604_vm1, %v10104_v46  ;;  %v5761_v48 = vpack.c.b16 %v5734_v42, %v5734_v42  ;;  %v5762_v49 = vpack.c.b16 %v5735_v31, %v5735_v31  ;;  %7205 = vmatpush.bf16.msrb.mxu3 %v10162_v35  ;;  %v10225_v46 = vld [vmem:[#allocation2 + $0x138] sm:$0xff]  ;;  %v10213_v42 = vld [vmem:[#allocation2 + $0x608] sm:$0xff] }
 0x2c7   : > { %v10204_v31 = vld [vmem:[#allocation2 + $0x5b8] sm:$0xff] }
 0x2c8   : > { %7167 = vmatmul.bf16.vlgmr.msra.gmra.mxu3 %v5761_v48  ;;  %7180 = vmatmul.bf16.vlgmr.msra.gmra.mxu1 %v5762_v49  ;;  %v10260_v49 = vld [vmem:[#allocation2 + $0x6b0] sm:$0xff] }
 0x2c9   : > { %7224 = vmatpush.bf16.msra.mxu0 %v10185_v60  ;;  %v5143_v54 = vpop.f32.mrf.mxu2  ;;  %7215 = vmatpush.bf16.msrb.mxu1 %v10173_v43  ;;  %v10224_v43 = vld [vmem:[#allocation2 + $0x198] sm:$0xff] }
 0x2ca   : > { %7237 = vmatpush.bf16.msra.mxu3 %v10193_v45  ;;  %7359 = vmatpush.bf16.msrb.mxu2 %v10260_v49 }
 0x2cd   : > { %7225 = vmatpush.bf16.msra.mxu0 %v10184_v4  ;;  %7216 = vmatpush.bf16.msrb.mxu1 %v10172_v12  ;;  %v10212_v12 = vld [vmem:[#allocation2 + $0x340] sm:$0xff] }
 0x2ce   : > { %7238 = vmatpush.bf16.msra.mxu3 %v10192_v57  ;;  %v10203_v57 = vld [vmem:[#allocation2 + $0x1e0] sm:$0xff] }
 0x2d1   : > { %7226 = vmatpush.bf16.msra.mxu0 %v10183_v51  ;;  %v5145_v15 = vpop.f32.mrf.mxu2  ;;  %7217 = vmatpush.bf16.msrb.mxu1 %v10171_v53  ;;  %v10223_v51 = vld [vmem:[#allocation2 + $0x488] sm:$0xff] }
 0x2d2   : > { %7239 = vmatpush.bf16.msra.mxu3 %v10191_v3  ;;  %v11053_v62 = vpack.c.bf16 %v5145_v15, %v5143_v54  ;;  %v10211_v3 = vld [vmem:[#allocation2 + $0x678] sm:$0xff]  ;;  %v10222_v15 = vld [vmem:[#allocation2 + $0x310] sm:$0xff] }
 0x2d4   : > { %v5736_v39 = vunpack.c.l.b16 %v11053_v62  ;;  %v5737_v40 = vunpack.c.h.b16 %v11053_v62  ;;  %v13196_v62 = vpop.f32.mrf.mxu3 }
 0x2d5   : > { %7227 = vmatpush.bf16.msra.mxu0 %v10182_v36  ;;  %7218 = vmatpush.bf16.msrb.mxu1 %v10170_v20  ;;  %v10202_v36 = vld [vmem:[#allocation2 + $0x68] sm:$0xff] }
 0x2d6   : > { %7240 = vmatpush.bf16.msra.mxu3 %v10190_v16  ;;  %8992 = vmatmul.msk.bf16.gmra.mxu2 %vm2604_vm1, %v10105_v6  ;;  %v5763_v9 = vpack.c.b16 %v5736_v39, %v5736_v39  ;;  %v5764_v28 = vpack.c.b16 %v5737_v40, %v5737_v40  ;;  %v10233_v20 = vld [vmem:[#allocation2 + $0x168] sm:$0xff]  ;;  %v10210_v16 = vld [vmem:[#allocation2 + $0x150] sm:$0xff] }
 0x2d7   : > { %v10241_v6 = vld [vmem:[#allocation2 + $0x368] sm:$0xff] }
 0x2d8   : > { %7193 = vmatmul.bf16.vlgmr.msrb.gmra.mxu0 %v5763_v9  ;;  %7206 = vmatmul.bf16.vlgmr.msrb.gmra.mxu3 %v5764_v28  ;;  %v10220_v9 = vld [vmem:[#allocation2 + $0x188] sm:$0xff]  ;;  %v10231_v28 = vld [vmem:[#allocation2 + $0x230] sm:$0xff] }
 0x2d9   : > { %7228 = vmatpush.bf16.msra.mxu0 %v10181_v38  ;;  %7250 = vmatpush.bf16.msra.mxu1 %v10201_v41  ;;  %v5148_v58 = vpop.f32.mrf.mxu2  ;;  %v10221_v38 = vld [vmem:[#allocation2 + $0x128] sm:$0xff]  ;;  %v10232_v41 = vld [vmem:[#allocation2 + $0x680] sm:$0xff] }
 0x2da   : > { %7241 = vmatpush.bf16.msra.mxu3 %v10189_v37  ;;  %v10240_v37 = vld [vmem:[#allocation2 + $0x388] sm:$0xff] }
 0x2dc   : > { %v5712_v19 = vpop.f32.mrf.mxu3 }
 0x2dd   : > { %7229 = vmatpush.bf16.msra.mxu0 %v10180_v10  ;;  %7251 = vmatpush.bf16.msra.mxu1 %v10200_v55 }
 0x2de   : > { %7242 = vmatpush.bf16.msra.mxu3 %v10188_v17 }
 0x2e1   : > { %7230 = vmatpush.bf16.msra.mxu0 %v10179_v56  ;;  %7252 = vmatpush.bf16.msra.mxu1 %v10199_v61  ;;  %v5150_v11 = vpop.f32.mrf.mxu2  ;;  %v10239_v56 = vld [vmem:[#allocation2 + $0x560] sm:$0xff]  ;;  %v10219_v61 = vld [vmem:[#allocation2 + $0x2f8] sm:$0xff] }
 0x2e2   : > { %7243 = vmatpush.bf16.msra.mxu3 %v10187_v23  ;;  %v11058_v14 = vpack.c.bf16 %v5150_v11, %v5148_v58  ;;  %v10237_v11 = vld [vmem:[#allocation2 + $0x170] sm:$0xff] }
 0x2e4   : > { %v5738_v13 = vunpack.c.l.b16 %v11058_v14  ;;  %v5739_v32 = vunpack.c.h.b16 %v11058_v14 }
 0x2e5   : > { %7231 = vmatpush.bf16.msra.mxu0 %v10178_v47  ;;  %7253 = vmatpush.bf16.msra.mxu1 %v10198_v50  ;;  %v10238_v47 = vld [vmem:[#allocation2 + $0x448] sm:$0xff]  ;;  %v10229_v50 = vld [vmem:[#allocation2 + $0x398] sm:$0xff] }
 0x2e6   : > { %7244 = vmatpush.bf16.msra.mxu3 %v10186_v52  ;;  %8993 = vmatmul.msk.bf16.gmra.mxu2 %vm2604_vm1, %v5073_v18  ;;  %v5765_v8 = vpack.c.b16 %v5738_v13, %v5738_v13  ;;  %v5766_v0 = vpack.c.b16 %v5739_v32, %v5739_v32  ;;  %v10228_v52 = vld [vmem:[#allocation2 + $0x120] sm:$0xff]  ;;  %v10227_v13 = vld [vmem:[#allocation2 + $0x88] sm:$0xff] }
 0x2e7   : > { %v10248_v18 = vld [vmem:[#allocation2 + $0x100] sm:$0xff] }
 0x2e8   : > { %7219 = vmatmul.bf16.vlgmr.msrb.gmra.mxu1 %v5765_v8  ;;  %7232 = vmatmul.bf16.vlgmr.msra.gmra.mxu0 %v5766_v0  ;;  %v10247_v8 = vld [vmem:[#allocation2 + $0x610] sm:$0xff] }
 0x2e9   : > { %7263 = vmatpush.bf16.msrb.mxu0 %v10209_v2  ;;  %7254 = vmatpush.bf16.msra.mxu1 %v10197_v25  ;;  %v5153_v27 = vpop.f32.mrf.mxu2  ;;  %v10249_v2 = vld [vmem:[#allocation2 + $0x70] sm:$0xff]  ;;  %v10259_v25 = vld [vmem:[#allocation2 + $0x418] sm:$0xff] }
 0x2ea   : > { %7276 = vmatpush.bf16.msrb.mxu3 %v10217_v22  ;;  %7360 = vmatpush.bf16.msrb.mxu2 %v10259_v25  ;;  %v10289_v25 = vld [vmem:[#allocation2 + $0x248] sm:$0xff] }
 0x2ed   : > { %7264 = vmatpush.bf16.msrb.mxu0 %v10208_v7  ;;  %7255 = vmatpush.bf16.msra.mxu1 %v10196_v33  ;;  %v10236_v7 = vld [vmem:[#allocation2 + $0x4b8] sm:$0xff]  ;;  %v10235_v33 = vld [vmem:[#allocation2 + $0x2e8] sm:$0xff] }
 0x2ee   : > { %7277 = vmatpush.bf16.msrb.mxu3 %v10216_v21  ;;  %v10258_v21 = vld [vmem:[#allocation2 + $0x3e8] sm:$0xff] }
 0x2ef   : > { %7361 = vmatpush.bf16.msrb.mxu2 %v10258_v21 }
 0x2f1   : > { %7265 = vmatpush.bf16.msrb.mxu0 %v10207_v26  ;;  %7256 = vmatpush.bf16.msra.mxu1 %v10195_v34  ;;  %v5155_v60 = vpop.f32.mrf.mxu2  ;;  %v10226_v26 = vld [vmem:[#allocation2 + $0x370] sm:$0xff]  ;;  %v10257_v34 = vld [vmem:[#allocation2 + $0x228] sm:$0xff] }
 0x2f2   : > { %7278 = vmatpush.bf16.msrb.mxu3 %v10215_v63  ;;  %v11063_v35 = vpack.c.bf16 %v5155_v60, %v5153_v27  ;;  %v10246_v63 = vld [vmem:[#allocation2 + $0x1b0] sm:$0xff]  ;;  %v10245_v60 = vld [vmem:[#allocation2 + $0x648] sm:$0xff] }
 0x2f4   : > { %v5740_v45 = vunpack.c.l.b16 %v11063_v35  ;;  %v5741_v48 = vunpack.c.h.b16 %v11063_v35  ;;  %v10256_v35 = vld [vmem:[#allocation2 + $0x428] sm:$0xff] }
 0x2f5   : > { %7266 = vmatpush.bf16.msrb.mxu0 %v10206_v29  ;;  %7257 = vmatpush.bf16.msra.mxu1 %v10194_v30  ;;  %v10234_v30 = vld [vmem:[#allocation2 + $0x3f0] sm:$0xff] }
 0x2f6   : > { %7279 = vmatpush.bf16.msrb.mxu3 %v10214_v59  ;;  %v5767_v4 = vpack.c.b16 %v5740_v45, %v5740_v45  ;;  %v5768_v54 = vpack.c.b16 %v5741_v48, %v5741_v48  ;;  %v10297_v59 = vld [vmem:[#allocation2 + $0x628] sm:$0xff]  ;;  %v10255_v48 = vld [vmem:[#allocation2 + $0x2f0] sm:$0xff] }
 0x2f7   : > { %7406 = vmatpush.bf16.msra.mxu2 %v10297_v59  ;;  %v10244_v45 = vld [vmem:[#allocation2 + $0xe8] sm:$0xff]  ;;  %v10276_v59 = vld [vmem:[#allocation2 + $0x130] sm:$0xff] }
 0x2f8   : > { %7245 = vmatmul.bf16.vlgmr.msra.gmra.mxu3 %v5767_v4  ;;  %7258 = vmatmul.bf16.vlgmr.msra.gmra.mxu1 %v5768_v54  ;;  %v10295_v4 = vld [vmem:[#allocation2 + $0x508] sm:$0xff] }
 0x2f9   : > { %7267 = vmatpush.bf16.msrb.mxu0 %v10205_v1  ;;  %7289 = vmatpush.bf16.msrb.mxu1 %v10225_v46  ;;  %v5158_v53 = vpop.f32.mrf.mxu2  ;;  %v10273_v1 = vld [vmem:[#allocation2 + $0x458] sm:$0xff] }
 0x2fa   : > { %7280 = vmatpush.bf16.msrb.mxu3 %v10213_v42  ;;  %v10296_v42 = vld [vmem:[#allocation2 + $0x650] sm:$0xff] }
 0x2fb   : > { %7407 = vmatpush.bf16.msra.mxu2 %v10296_v42  ;;  %v10286_v42 = vld [vmem:[#allocation2 + $0x1b8] sm:$0xff] }
 0x2fd   : > { %7268 = vmatpush.bf16.msrb.mxu0 %v10204_v31  ;;  %7290 = vmatpush.bf16.msrb.mxu1 %v10224_v43  ;;  %v10272_v31 = vld [vmem:[#allocation2 + $0x620] sm:$0xff] }
 0x2fe   : > { %7281 = vmatpush.bf16.msrb.mxu3 %v10212_v12 }
 0x2ff   : > { %7408 = vmatpush.bf16.msra.mxu2 %v10295_v4  ;;  %v10285_v4 = vld [vmem:[#allocation2 + $0x598] sm:$0xff] }
 0x301   : > { %7269 = vmatpush.bf16.msrb.mxu0 %v10203_v57  ;;  %7291 = vmatpush.bf16.msrb.mxu1 %v10223_v51  ;;  %v5160_v39 = vpop.f32.mrf.mxu2  ;;  %v10243_v57 = vld [vmem:[#allocation2 + $0x30] sm:$0xff]  ;;  %v10254_v51 = vld [vmem:[#allocation2 + $0x268] sm:$0xff] }
 0x302   : > { %7282 = vmatpush.bf16.msrb.mxu3 %v10211_v3  ;;  %v11068_v40 = vpack.c.bf16 %v5160_v39, %v5158_v53  ;;  %v10270_v39 = vld [vmem:[#allocation2 + $0x638] sm:$0xff] }
 0x304   : > { %v5742_v10 = vunpack.c.l.b16 %v11068_v40  ;;  %v5743_v55 = vunpack.c.h.b16 %v11068_v40  ;;  %v10293_v40 = vld [vmem:[#allocation2 + $0x2d8] sm:$0xff] }
 0x305   : > { %7270 = vmatpush.bf16.msrb.mxu0 %v10202_v36  ;;  %7292 = vmatpush.bf16.msrb.mxu1 %v10222_v15  ;;  %v10271_v36 = vld [vmem:[#allocation2 + $0x5f0] sm:$0xff]  ;;  %v10294_v15 = vld [vmem:[#allocation2 + $0x6a8] sm:$0xff] }
 0x306   : > { %7283 = vmatpush.bf16.msrb.mxu3 %v10210_v16  ;;  %v5769_v58 = vpack.c.b16 %v5742_v10, %v5742_v10  ;;  %v5770_v17 = vpack.c.b16 %v5743_v55, %v5743_v55  ;;  %7409 = vmatpush.bf16.msra.mxu2 %v10294_v15  ;;  %v10242_v16 = vld [vmem:[#allocation2 + $0x4c0] sm:$0xff]  ;;  %v10280_v55 = vld [vmem:[#allocation2 + $0x4b0] sm:$0xff] }
 0x307   : > { %v10312_v15 = vld [vmem:[#allocation2 + $0xe0] sm:$0xff] }
 0x308   : > { %7271 = vmatmul.bf16.vlgmr.msrb.gmra.mxu0 %v5769_v58  ;;  %v10269_v58 = vld [vmem:[#allocation2 + $0x1d0] sm:$0xff] }
 0x309   : > { %7302 = vmatpush.bf16.msra.mxu0 %v10233_v20  ;;  %7293 = vmatpush.bf16.msrb.mxu1 %v10221_v38  ;;  %v5163_v23 = vpop.f32.mrf.mxu2  ;;  %v10281_v38 = vld [vmem:[#allocation2 + $0x520] sm:$0xff] }
 0x30a   : > { %7315 = vmatpush.bf16.msra.mxu3 %v10241_v6  ;;  %v10253_v6 = vld [vmem:[#allocation2 + $0x3a0] sm:$0xff]  ;;  %7410 = vmatpush.bf16.msra.mxu2 %v10293_v40 }
 0x30b   : > { %7284 = vmatmul.bf16.vlgmr.msrb.gmra.mxu3 %v5770_v17  ;;  %v10292_v17 = vld [vmem:[#allocation2 + $0xd8] sm:$0xff] }
 0x30d   : > { %7303 = vmatpush.bf16.msra.mxu0 %v10232_v41  ;;  %7294 = vmatpush.bf16.msrb.mxu1 %v10220_v9 }
 0x30e   : > { %7316 = vmatpush.bf16.msra.mxu3 %v10240_v37  ;;  %7411 = vmatpush.bf16.msra.mxu2 %v10292_v17 }
 0x311   : > { %7304 = vmatpush.bf16.msra.mxu0 %v10231_v28  ;;  %7295 = vmatpush.bf16.msrb.mxu1 %v10219_v61  ;;  %v5165_v14 = vpop.f32.mrf.mxu2  ;;  %v10252_v28 = vld [vmem:[#allocation2 + $0x148] sm:$0xff] }
 0x312   : > { %7317 = vmatpush.bf16.msra.mxu3 %v10239_v56  ;;  %v11073_v22 = vpack.c.bf16 %v5165_v14, %v5163_v23  ;;  %v10251_v56 = vld [vmem:[#allocation2 + $0x278] sm:$0xff] }
 0x313   : > { %v10268_v23 = vld [vmem:[#allocation2 + $0x238] sm:$0xff] }
 0x314   : > { %v5744_v32 = vunpack.c.l.b16 %v11073_v22  ;;  %v5745_v29 = vunpack.c.h.b16 %v11073_v22  ;;  %v10278_v22 = vld [vmem:[#allocation2 + $0x118] sm:$0xff] }
 0x315   : > { %7305 = vmatpush.bf16.msra.mxu0 %v10230_v44  ;;  %7296 = vmatpush.bf16.msrb.mxu1 %v10218_v24  ;;  %v10279_v44 = vld [vmem:[#allocation2 + $0x498] sm:$0xff] }
 0x316   : > { %7318 = vmatpush.bf16.msra.mxu3 %v10238_v47  ;;  %v5771_v0 = vpack.c.b16 %v5744_v32, %v5744_v32  ;;  %v5772_v46 = vpack.c.b16 %v5745_v29, %v5745_v29  ;;  %v10291_v47 = vld [vmem:[#allocation2 + $0x550] sm:$0xff] }
 0x317   : > { %7412 = vmatpush.bf16.msra.mxu2 %v10291_v47  ;;  %v10267_v32 = vld [vmem:[#allocation2 + $0x470] sm:$0xff]  ;;  %v10309_v47 = vld [vmem:[#allocation2 + $0x380] sm:$0xff] }
 0x318   : > { %7297 = vmatmul.bf16.vlgmr.msrb.gmra.mxu1 %v5771_v0 }
 0x319   : > { %7306 = vmatpush.bf16.msra.mxu0 %v10229_v50  ;;  %7328 = vmatpush.bf16.msra.mxu1 %v10249_v2  ;;  %v5168_v27 = vpop.f32.mrf.mxu2 }
 0x31a   : > { %7319 = vmatpush.bf16.msra.mxu3 %v10237_v11 }
 0x31d   : > { %7307 = vmatpush.bf16.msra.mxu0 %v10228_v52  ;;  %7329 = vmatpush.bf16.msra.mxu1 %v10248_v18  ;;  %v10250_v52 = vld [vmem:[#allocation2 + $0x5e0] sm:$0xff] }
 0x31e   : > { %7320 = vmatpush.bf16.msra.mxu3 %v10236_v7 }
 0x321   : > { %7308 = vmatpush.bf16.msra.mxu0 %v10227_v13  ;;  %7330 = vmatpush.bf16.msra.mxu1 %v10247_v8  ;;  %v5170_v43 = vpop.f32.mrf.mxu2  ;;  %v10290_v13 = vld [vmem:[#allocation2 + $0x1c0] sm:$0xff] }
 0x322   : > { %7321 = vmatpush.bf16.msra.mxu3 %v10235_v33  ;;  %v11078_v49 = vpack.c.bf16 %v5170_v43, %v5168_v27  ;;  %7413 = vmatpush.bf16.msra.mxu2 %v10290_v13  ;;  %v10277_v33 = vld [vmem:[#allocation2 + $0x38] sm:$0xff]  ;;  %v10266_v27 = vld [vmem:[#allocation2 + $0x90] sm:$0xff]  ;;  %v10318_v13 = vld [vmem:[#allocation2 + $0x220] sm:$0xff] }
 0x324   : > { %v5746_v54 = vunpack.c.l.b16 %v11078_v49  ;;  %v5747_v41 = vunpack.c.h.b16 %v11078_v49  ;;  %v10274_v49 = vld [vmem:[#allocation2 + $0x4a8] sm:$0xff] }
 0x325   : > { %7309 = vmatpush.bf16.msra.mxu0 %v10226_v26  ;;  %7331 = vmatpush.bf16.msra.mxu1 %v10246_v63  ;;  %v7116_v12 = vpop.f32.mrf.mxu0  ;;  %v10288_v26 = vld [vmem:[#allocation2 + $0x668] sm:$0xff]  ;;  %v10305_v63 = vld [vmem:[#allocation2 + $0x480] sm:$0xff] }
 0x326   : > { %7322 = vmatpush.bf16.msra.mxu3 %v10234_v30  ;;  %v7117_v53 = vadd.f32 %v7116_v12, %v13196_v62  ;;  %v5773_v3 = vpack.c.b16 %v5746_v54, %v5746_v54  ;;  %v5774_v10 = vpack.c.b16 %v5747_v41, %v5747_v41  ;;  %v10287_v30 = vld [vmem:[#allocation2 + $0x658] sm:$0xff]  ;;  %v10313_v54 = vld [vmem:[#allocation2 + $0x468] sm:$0xff] }
 0x328   : > { %7310 = vmatmul.bf16.vlgmr.msra.gmra.mxu0 %v5772_v46 }
 0x329   : > { %7341 = vmatpush.bf16.msrb.mxu0 %v10257_v34  ;;  %7332 = vmatpush.bf16.msra.mxu1 %v10245_v60  ;;  %v5173_v20 = vpop.f32.mrf.mxu2 }
 0x32a   : > { %7367 = vmatpush.bf16.msrb.mxu3 %v10273_v1  ;;  %v10304_v1 = vld [vmem:[#allocation2 + $0x478] sm:$0xff] }
 0x32b   : > { %7323 = vmatmul.bf16.vlgmr.msra.gmra.mxu3 %v5773_v3  ;;  %v7129_v37 = vpop.f32.mrf.mxu3 }
 0x32c   : > { %v7130_v9 = vadd.f32 %v7129_v37, %v7117_v53  ;;  %v10284_v53 = vld [vmem:[#allocation2 + $0x530] sm:$0xff]  ;;  %v10300_v37 = vld [vmem:[#allocation2 + $0x1d8] sm:$0xff] }
 0x32d   : > { %7342 = vmatpush.bf16.msrb.mxu0 %v10256_v35  ;;  %7333 = vmatpush.bf16.msra.mxu1 %v10244_v45  ;;  %v7118_v62 = vpop.f32.mrf.mxu0  ;;  %v10275_v35 = vld [vmem:[#allocation2 + $0x698] sm:$0xff]  ;;  %v10303_v45 = vld [vmem:[#allocation2 + $0x4e8] sm:$0xff] }
 0x32e   : > { %7368 = vmatpush.bf16.msrb.mxu3 %v10272_v31  ;;  %v10282_v62 = vld [vmem:[#allocation2 + $0x60] sm:$0xff] }
 0x331   : > { %7343 = vmatpush.bf16.msrb.mxu0 %v10255_v48  ;;  %7334 = vmatpush.bf16.msra.mxu1 %v10243_v57  ;;  %v5175_v19 = vpop.f32.mrf.mxu2 }
 0x332   : > { %7369 = vmatpush.bf16.msrb.mxu3 %v10271_v36  ;;  %v11083_v61 = vpack.c.bf16 %v5175_v19, %v5173_v20 }
 0x333   : > { %v7131_v24 = vpop.f32.mrf.mxu3 }
 0x334   : > { %v5749_v50 = vunpack.c.h.b16 %v11083_v61  ;;  %v5748_v7 = vunpack.c.l.b16 %v11083_v61  ;;  %v10320_v24 = vld [vmem:[#allocation2 + $0xf0] sm:$0xff] }
 0x335   : > { %7344 = vmatpush.bf16.msrb.mxu0 %v10254_v51  ;;  %7335 = vmatpush.bf16.msra.mxu1 %v10242_v16  ;;  %v7142_v2 = vpop.f32.mrf.mxu1  ;;  %v7155_v11 = vpop.f32.mrf.mxu0  ;;  %v10302_v51 = vld [vmem:[#allocation2 + $0x20] sm:$0xff] }
 0x336   : > { %7370 = vmatpush.bf16.msrb.mxu3 %v10270_v39  ;;  %v7143_v14 = vadd.f32 %v7142_v2, %v7130_v9  ;;  %v5776_v18 = vpack.c.b16 %v5749_v50, %v5749_v50  ;;  %v5775_v21 = vpack.c.b16 %v5748_v7, %v5748_v7  ;;  %v10311_v39 = vld [vmem:[#allocation2 + $0x180] sm:$0xff]  ;;  %v10298_v2 = vld [vmem:[#allocation2 + $0x2d0] sm:$0xff] }
 0x337   : > { %v10307_v7 = vld [vmem:[#allocation2 + $0x260] sm:$0xff] }
 0x338   : > { %7336 = vmatmul.bf16.vlgmr.msra.gmra.mxu1 %v5774_v10  ;;  %v7156_v8 = vadd.f32 %v7155_v11, %v7143_v14  ;;  %7362 = vmatmul.bf16.vlgmr.msrb.gmra.mxu2 %v5776_v18  ;;  %v10310_v10 = vld [vmem:[#allocation2 + $0x568] sm:$0xff] }
 0x339   : > { %7345 = vmatpush.bf16.msrb.mxu0 %v10253_v6  ;;  %7380 = vmatpush.bf16.msrb.mxu1 %v10281_v38  ;;  %v5178_v0 = vpop.f32.mrf.mxu2  ;;  %v10301_v6 = vld [vmem:[#allocation2 + $0x558] sm:$0xff]  ;;  %v10283_v38 = vld [vmem:[#allocation2 + $0x688] sm:$0xff] }
 0x33a   : > { %7371 = vmatpush.bf16.msrb.mxu3 %v10269_v58  ;;  %v10319_v14 = vld [vmem:[#allocation2 + $0xc8] sm:$0xff] }
 0x33d   : > { %7346 = vmatpush.bf16.msrb.mxu0 %v10252_v28  ;;  %7381 = vmatpush.bf16.msrb.mxu1 %v10280_v55  ;;  %v7144_v34 = vpop.f32.mrf.mxu1  ;;  %v7157_v29 = vpop.f32.mrf.mxu0  ;;  %v10321_v55 = vld [vmem:[#allocation2 + $0x1a8] sm:$0xff] }
 0x33e   : > { %7372 = vmatpush.bf16.msrb.mxu3 %v10268_v23 }
 0x341   : > { %7347 = vmatpush.bf16.msrb.mxu0 %v10251_v56  ;;  %7382 = vmatpush.bf16.msrb.mxu1 %v10279_v44  ;;  %v5180_v46 = vpop.f32.mrf.mxu2  ;;  %v10299_v56 = vld [vmem:[#allocation2 + $0x160] sm:$0xff] }
 0x342   : > { %7373 = vmatpush.bf16.msrb.mxu3 %v10267_v32  ;;  %v11088_v60 = vpack.c.bf16 %v5180_v46, %v5178_v0  ;;  %v11494_v32 = vmov 1   ;;  %v10316_v46 = vld [vmem:[#allocation2 + $0x4f8] sm:$0xff] }
 0x343   : > { %11383 = vset.pattern.permute.xlu0 %v11494_v32 }
 0x344   : > { %v5750_v31 = vunpack.c.l.b16 %v11088_v60  ;;  %v5751_v12 = vunpack.c.h.b16 %v11088_v60 }
 0x345   : > { %7348 = vmatpush.bf16.msrb.mxu0 %v10250_v52  ;;  %7383 = vmatpush.bf16.msrb.mxu1 %v10278_v22  ;;  %v7181_v43 = vpop.f32.mrf.mxu1  ;;  %v10308_v52 = vld [vmem:[#allocation2 + $0x1a0] sm:$0xff] }
 0x346   : > { %7374 = vmatpush.bf16.msrb.mxu3 %v10266_v27  ;;  %v5777_v48 = vpack.c.b16 %v5750_v31, %v5750_v31  ;;  %v5778_v36 = vpack.c.b16 %v5751_v12, %v5751_v12  ;;  %v10315_v31 = vld [vmem:[#allocation2 + $0x3d8] sm:$0xff] }
 0x348   : > { %7349 = vmatmul.bf16.vlgmr.msrb.gmra.mxu0 %v5775_v21 }
 0x349   : > { %7393 = vmatpush.bf16.msra.mxu0 %v10289_v25  ;;  %7384 = vmatpush.bf16.msrb.mxu1 %v10277_v33  ;;  %v5183_v57 = vpop.f32.mrf.mxu2  ;;  %v7458_v25 = vld [vmem:[%s13242_s6] sm:$0xff]  ;;  %v10306_v33 = vld [vmem:[#allocation2 + $0x5f8] sm:$0xff] }
 0x34a   : > { %7419 = vmatpush.bf16.msra.mxu3 %v10305_v63  ;;  %7461 = vperm.xlu0 %11383, %v7458_v25  }
 0x34b   : > { %7375 = vmatmul.bf16.vlgmr.msrb.gmra.mxu3 %v5777_v48  ;;  %v7168_v3 = vpop.f32.mrf.mxu3  ;;  %v10314_v48 = vld [vmem:[#allocation2 + $0x578] sm:$0xff] }
 0x34c   : > { %v7169_v20 = vadd.f32 %v7168_v3, %v7156_v8 }
 0x34d   : > { %7394 = vmatpush.bf16.msra.mxu0 %v10288_v26  ;;  %7385 = vmatpush.bf16.msrb.mxu1 %v10276_v59  ;;  %v7183_v16 = vpop.f32.mrf.mxu1  ;;  %v10317_v26 = vld [vmem:[#allocation2 + $0x280] sm:$0xff] }
 0x34e   : > { %7420 = vmatpush.bf16.msra.mxu3 %v10304_v1  ;;  %v7182_v41 = vadd.f32 %v7181_v43, %v7169_v20 }
 0x351   : > { %7395 = vmatpush.bf16.msra.mxu0 %v10287_v30  ;;  %7386 = vmatpush.bf16.msrb.mxu1 %v10275_v35  ;;  %v5185_v40 = vpop.f32.mrf.mxu2 }
 0x352   : > { %7421 = vmatpush.bf16.msra.mxu3 %v10303_v45  ;;  %v11093_v9 = vpack.c.bf16 %v5185_v40, %v5183_v57 }
 0x353   : > { %v7170_v28 = vpop.f32.mrf.mxu3 }
 0x354   : > { %v5752_v58 = vunpack.c.l.b16 %v11093_v9  ;;  %v5753_v17 = vunpack.c.h.b16 %v11093_v9 }
 0x355   : > { %7396 = vmatpush.bf16.msra.mxu0 %v10286_v42  ;;  %7387 = vmatpush.bf16.msrb.mxu1 %v10274_v49  ;;  %v7194_v19 = vpop.f32.mrf.mxu0 }
 0x356   : > { %7422 = vmatpush.bf16.msra.mxu3 %v10302_v51  ;;  %v7195_v61 = vadd.f32 %v7194_v19, %v7182_v41  ;;  %v5779_v44 = vpack.c.b16 %v5752_v58, %v5752_v58  ;;  %v5780_v23 = vpack.c.b16 %v5753_v17, %v5753_v17 }
 0x358   : > { %7388 = vmatmul.bf16.vlgmr.msrb.gmra.mxu1 %v5778_v36  ;;  %7414 = vmatmul.bf16.vlgmr.msra.gmra.mxu2 %v5780_v23 }
 0x359   : > { %7397 = vmatpush.bf16.msra.mxu0 %v10285_v4  ;;  %7432 = vmatpush.bf16.msra.mxu1 %v10313_v54  ;;  %v5188_v50 = vpop.f32.mrf.mxu2 }
 0x35a   : > { %7423 = vmatpush.bf16.msra.mxu3 %v10301_v6 }
 0x35b   : > { %v7207_v11 = vpop.f32.mrf.mxu3 }
 0x35c   : > { %v7208_v18 = vadd.f32 %v7207_v11, %v7195_v61 }
 0x35d   : > { %7398 = vmatpush.bf16.msra.mxu0 %v10284_v53  ;;  %7433 = vmatpush.bf16.msra.mxu1 %v10312_v15  ;;  %v7196_v22 = vpop.f32.mrf.mxu0 }
 0x35e   : > { %7424 = vmatpush.bf16.msra.mxu3 %v10300_v37 }
 0x361   : > { %7399 = vmatpush.bf16.msra.mxu0 %v10283_v38  ;;  %7434 = vmatpush.bf16.msra.mxu1 %v10311_v39  ;;  %v5190_v8 = vpop.f32.mrf.mxu2 }
 0x362   : > { %7425 = vmatpush.bf16.msra.mxu3 %v10299_v56  ;;  %v11098_v0 = vpack.c.bf16 %v5190_v8, %v5188_v50 }
 0x363   : > { %v7209_v21 = vpop.f32.mrf.mxu3 }
 0x364   : > { %v5754_v27 = vunpack.c.l.b16 %v11098_v0  ;;  %v5755_v63 = vunpack.c.h.b16 %v11098_v0 }
 0x365   : > { %7400 = vmatpush.bf16.msra.mxu0 %v10282_v62  ;;  %7435 = vmatpush.bf16.msra.mxu1 %v10310_v10  ;;  %v7220_v34 = vpop.f32.mrf.mxu1  ;;  %v7233_v29 = vpop.f32.mrf.mxu0 }
 0x366   : > { %7426 = vmatpush.bf16.msra.mxu3 %v10298_v2  ;;  %v7221_v59 = vadd.f32 %v7220_v34, %v7208_v18  ;;  %v5781_v30 = vpack.c.b16 %v5754_v27, %v5754_v27  ;;  %v5782_v1 = vpack.c.b16 %v5755_v63, %v5755_v63 }
 0x368   : > { %7401 = vmatmul.bf16.vlgmr.msra.gmra.mxu0 %v5779_v44  ;;  %v7234_v60 = vadd.f32 %v7233_v29, %v7221_v59 }
 0x369   : > { %7445 = vmatpush.bf16.msrb.mxu0 %v10321_v55  ;;  %7436 = vmatpush.bf16.msra.mxu1 %v10309_v47  ;;  %v5193_v35 = vpop.f32.mrf.mxu2 }
 0x36a   : > { %7427 = vmatmul.bf16.vlgmr.msra.gmra.mxu3 %v5781_v30  ;;  %v5249_v42 = vpack.c.bf16 %v5193_v35, %v5193_v35 }
 0x36c   : > { %5250 = vst [vmem:[#allocation3 + $0x68] sm:$0xf] %v5249_v42 }
 0x36d   : > { %7446 = vmatpush.bf16.msrb.mxu0 %v10320_v24  ;;  %7437 = vmatpush.bf16.msra.mxu1 %v10308_v52  ;;  %v7222_v43 = vpop.f32.mrf.mxu1  ;;  %v7235_v45 = vpop.f32.mrf.mxu0 }
 0x371   : > { %7447 = vmatpush.bf16.msrb.mxu0 %v10319_v14  ;;  %7438 = vmatpush.bf16.msra.mxu1 %v10307_v7  ;;  %v5195_v49 = vpop.f32.mrf.mxu2 }
 0x373   : > { %v5264_v4 = vld [vmem:[#allocation3 + $0x68] sm:$0xf] }
 0x374   : > { %v5756_v54 = vunpack.c.l.b16 %v5264_v4 }
 0x375   : > { %7448 = vmatpush.bf16.msrb.mxu0 %v10318_v13  ;;  %7439 = vmatpush.bf16.msra.mxu1 %v10306_v33  ;;  %v7259_v12 = vpop.f32.mrf.mxu1 }
 0x376   : > { %v5783_v57 = vpack.c.b16 %v5756_v54, %v5756_v54 }
 0x378   : > { %7440 = vmatmul.bf16.vlgmr.msra.gmra.mxu1 %v5782_v1  ;;  %v5715_v1 = vand.u32 127, %v278_v5 }
 0x379   : > { %7449 = vmatpush.bf16.msrb.mxu0 %v10317_v26 }
 0x37b   : > { %v7246_v51 = vpop.f32.mrf.mxu3 }
 0x37c   : > { %v7247_v53 = vadd.f32 %v7246_v51, %v7234_v60  ;;  %v7467_v60 = vstv %s7466_s9 }
 0x37d   : > { %7450 = vmatpush.bf16.msrb.mxu0 %v10316_v46  ;;  %v7261_v3 = vpop.f32.mrf.mxu1  ;;  %vm7468_vm0 = vcmp.lt.s32.totalorder %v5715_v1, %v7467_v60 }
 0x37e   : > { %v7260_v36 = vadd.f32 %v7259_v12, %v7247_v53 }
 0x381   : > { %7451 = vmatpush.bf16.msrb.mxu0 %v10315_v31 }
 0x383   : > { %v7248_v15 = vpop.f32.mrf.mxu3 }
 0x385   : > { %7452 = vmatpush.bf16.msrb.mxu0 %v10314_v48  ;;  %v7272_v20 = vpop.f32.mrf.mxu0 }
 0x386   : > { %v7273_v16 = vadd.f32 %v7272_v20, %v7260_v36 }
 0x388   : > { %7453 = vmatmul.bf16.vlgmr.msrb.gmra.mxu0 %v5783_v57 }
 0x38d   : > { %v7274_v41 = vpop.f32.mrf.mxu0 }
 0x38e   : > { %v7285_v6 = vpop.f32.mrf.mxu3 }
 0x38f   : > { %v7286_v38 = vadd.f32 %v7285_v6, %v7273_v16 }
 0x395   : > { %v7298_v40 = vpop.f32.mrf.mxu1 }
 0x396   : > { %v7287_v39 = vpop.f32.mrf.mxu3  ;;  %v7299_v37 = vadd.f32 %v7298_v40, %v7286_v38 }
 0x39d   : > { %v7300_v28 = vpop.f32.mrf.mxu1 }
 0x3a5   : > { %v7311_v9 = vpop.f32.mrf.mxu0 }
 0x3a6   : > { %v7312_v62 = vadd.f32 %v7311_v9, %v7299_v37 }
 0x3ad   : > { %v7313_v10 = vpop.f32.mrf.mxu0 }
 0x3ae   : > { %v7324_v55 = vpop.f32.mrf.mxu3 }
 0x3af   : > { %v7325_v52 = vadd.f32 %v7324_v55, %v7312_v62 }
 0x3b5   : > { %v7337_v58 = vpop.f32.mrf.mxu1 }
 0x3b6   : > { %v7326_v17 = vpop.f32.mrf.mxu3  ;;  %v7338_v18 = vadd.f32 %v7337_v58, %v7325_v52 }
 0x3bb   : > { %v7363_v61 = vpop.f32.mrf.mxu2 }
 0x3bc   : > { %v7462_v30 = vpop.permute.xlu0 %7461 }
 0x3bd   : > { %v7339_v19 = vpop.f32.mrf.mxu1 }
 0x3c3   : > { %v7365_v23 = vpop.f32.mrf.mxu2 }
 0x3c5   : > { %v7350_v56 = vpop.f32.mrf.mxu0 }
 0x3c6   : > { %v7351_v25 = vadd.f32 %v7350_v56, %v7338_v18 }
 0x3c8   : > { %v7364_v13 = vadd.f32 %v7363_v61, %v7351_v25 }
 0x3cd   : > { %v7352_v44 = vpop.f32.mrf.mxu0 }
 0x3ce   : > { %v7376_v24 = vpop.f32.mrf.mxu3 }
 0x3cf   : > { %v7377_v32 = vadd.f32 %v7376_v24, %v7364_v13 }
 0x3d5   : > { %v7389_v47 = vpop.f32.mrf.mxu1 }
 0x3d6   : > { %v7378_v2 = vpop.f32.mrf.mxu3  ;;  %v7390_v0 = vadd.f32 %v7389_v47, %v7377_v32 }
 0x3db   : > { %v7415_v14 = vpop.f32.mrf.mxu2 }
 0x3dd   : > { %v7391_v50 = vpop.f32.mrf.mxu1 }
 0x3e3   : > { %v7417_v7 = vpop.f32.mrf.mxu2 }
 0x3e5   : > { %v7402_v11 = vpop.f32.mrf.mxu0 }
 0x3e6   : > { %v7403_v33 = vadd.f32 %v7402_v11, %v7390_v0 }
 0x3e8   : > { %v7416_v26 = vadd.f32 %v7415_v14, %v7403_v33 }
 0x3ed   : > { %v7404_v22 = vpop.f32.mrf.mxu0  ;;  %v7428_v21 = vpop.f32.mrf.mxu3 }
 0x3ee   : > { %v7429_v63 = vadd.f32 %v7428_v21, %v7416_v26 }
 0x3f5   : > { %v7441_v8 = vpop.f32.mrf.mxu1  ;;  %v7430_v34 = vpop.f32.mrf.mxu3 }
 0x3f6   : > { %v7442_v29 = vadd.f32 %v7441_v8, %v7429_v63 }
 0x3fd   : > { %v7443_v27 = vpop.f32.mrf.mxu1 }
 0x405   : > { %v7454_v59 = vpop.f32.mrf.mxu0 }
 0x406   : > { %v7455_v46 = vadd.f32 %v7454_v59, %v7442_v29 }
 0x408   : > { %v7464_v35 = vadd.f32 %v7462_v30, %v7455_v46 }
 0x40a   : > { %v7465_v42 = vmax.f32 %v7464_v35, 0.0 }
 0x40c   : > { %v7469_v31 = vsel %vm7468_vm0, %v7465_v42, 0.0 }
 0x40d   : > { %v7456_v43 = vpop.f32.mrf.mxu0  ;;  %7470 = vst [vmem:[%s266_s20] sm:$0xff] %v7469_v31 }
 0x40e   : > { %11452 = shalt.err (!%p11449_p3)
}
 0x40f   : > { %11339 = dma.vmem_to_hbm [thread:$0]  (%p11576_p5), %s7485_s22, 128, %s7487_s23, %s7472_s0  }
 0x410 PF: > { %p11345_p4 = scmp.ge.s32.totalorder %s11489_s8, 2  ;;  %s7498_s11 = sand.u32 1, %s11477_s28  }
 0x411   : > { %s7499_s16 = scalar_lea.sflag [#allocation7], %s7498_s11 }
 0x412   : > { %p11342_p7 = pnand %p11345_p4, %p11580_p6 }
 0x414   : > { %p11343_p8 = pneg %p11342_p7 }
 0x416   : > { %11472 = dma.done.wait (%p11343_p8), %s7499_s16, 128  }
 0x417   : > { %11474 = vsyncadd (%p11343_p8), %s7499_s16, 4294967168  ;;  %p25_p9 = scmp.ge.s32.totalorder %s11563_s10, 4   ;;  %s13246_s28 = smov %s11481_s29 }
 0x418   : > { %s13247_s29 = smov %s11485_s30  ;;  %s13248_s30 = smov %s11574_s13 }
 0x419   : > { %s13249_s8 = smov %s11563_s10  ;;  %27 = sbr.rel (!%p25_p9) target bundleno = 9 (0x9), region = 82 }
 0x41e   :  { %7505 = vsyncpa [#allocation7], 1 }
 0x41f   :  { %7507 = vsyncpa [#allocation7 + $0x1], 1 }

</bundles_post_ra>
